<compile_context>
chip_gen: v7x
topology: tpu7x:2x2x1
jax: 0.10.0
libtpu: 0.0.40
codegen_flags: <defaults>
</compile_context>

<pallas_src>
import functools
import math

import jax
import jax.numpy as jnp
from jax import lax
from jax.experimental import pallas as pl
from jax.experimental.pallas import tpu as pltpu


# ----------------------------------------------------------------------------
# Fused kernel: all-head projections (one big matmul each), per-head scaled
# dot-product attention (batched over the B_TILE batch rows), per-head
# accumulation into the output projection, bias, residual and LayerNorm.
# Grid = (mb // b_tile,), marked "parallel".
# ----------------------------------------------------------------------------
def _fused_mha_kernel(q_ref, k_ref, v_ref, wq_ref, wk_ref, wv_ref,
                      wp_ref, bp_ref, a2_ref, b2_ref,
                      out_ref, *attn_refs,
                      n_head, d_k, d_v, b_tile, len_q, len_k, lkp,
                      eps, apply_ln, write_attn):
    attn_ref = attn_refs[0] if write_attn else None
    mm_dtype = wq_ref.dtype          # matmul operand dtype (f32 or bf16)
    d_model = wp_ref.shape[-1]
    r_q = b_tile * len_q

    qm = q_ref[...]                  # (b_tile*len_q, d_model), also the residual
    km = k_ref[...]                  # (b_tile*lkp,  d_model)  (zero-padded rows)
    vm = v_ref[...]

    # All-head projections as single MXU matmuls (M = b_tile*len).
    # 1/sqrt(d_model) is pre-folded into wq_ref at pack time.
    qp = jnp.dot(qm.astype(mm_dtype), wq_ref[...],
                 preferred_element_type=jnp.float32)        # (r_q, H*d_k)
    kp = jnp.dot(km.astype(mm_dtype), wk_ref[...],
                 preferred_element_type=jnp.float32)        # (b_tile*lkp, H*d_k)
    vp = jnp.dot(vm.astype(mm_dtype), wv_ref[...],
                 preferred_element_type=jnp.float32)        # (b_tile*lkp, H*d_v)

    # Output-projection accumulator (per-head accumulation; no lane-dim concat).
    acc = jnp.zeros((r_q, d_model), jnp.float32)

    for h in range(n_head):
        q_h = qp[:, h * d_k:(h + 1) * d_k].reshape(b_tile, len_q, d_k)
        k_h = kp[:, h * d_k:(h + 1) * d_k].reshape(b_tile, lkp, d_k)
        v_h = vp[:, h * d_v:(h + 1) * d_v].reshape(b_tile, lkp, d_v)

        # Scores: contract on d_k, batch over the b_tile batch elements
        # (no explicit K transpose / XLU transpose).
        s = lax.dot_general(q_h.astype(mm_dtype), k_h.astype(mm_dtype),
                            (((2,), (2,)), ((0,), (0,))),
                            preferred_element_type=jnp.float32)  # (b_tile, len_q, lkp)
        if lkp != len_k:
            col = lax.broadcasted_iota(jnp.int32, s.shape, 2)
            s = jnp.where(col < len_k, s, -1e30)      # padded keys -> prob 0

        m = jnp.max(s, axis=-1, keepdims=True)
        e = jnp.exp(s - m)
        p = e / jnp.sum(e, axis=-1, keepdims=True)    # exact softmax (parity)
        if write_attn:
            attn_ref[h] = p                           # lane-dense full-width store

        ctx = lax.dot_general(p.astype(mm_dtype), v_h.astype(mm_dtype),
                              (((2,), (1,)), ((0,), (0,))),
                              preferred_element_type=jnp.float32)  # (b_tile, len_q, d_v)

        # Accumulate this head's contribution to the output projection
        # (w_proj sliced on the sublane axis -- cheap).
        acc = acc + jnp.dot(ctx.reshape(r_q, d_v).astype(mm_dtype),
                            wp_ref[h * d_v:(h + 1) * d_v, :],
                            preferred_element_type=jnp.float32)

    # bias + residual
    z = acc + bp_ref[...] + qm

    # LayerNormalization: unbiased std (torch.std default), eps added to sigma.
    if apply_ln:                                      # skipped iff len_q == 1
        mu = jnp.mean(z, axis=-1, keepdims=True)
        var = jnp.sum((z - mu) ** 2, axis=-1, keepdims=True) / (d_model - 1)
        rstd = pl.reciprocal(jnp.sqrt(var) + eps, approx=False)  # EUP, exact
        z = (z - mu) * rstd * a2_ref[...] + b2_ref[...]

    out_ref[...] = z


# ----------------------------------------------------------------------------
# One-time weight packing (hoisted out of the forward path).
# ----------------------------------------------------------------------------
def pack_params(params, matmul_dtype=jnp.float32):
    """Pre-pack per-head weights head-major along the lane dim so a single
    matmul projects all heads.  Folds 1/sqrt(d_model) into the Q weights.
    Set matmul_dtype=jnp.bfloat16 on v6e/v7x for ~2-3x MXU throughput
    (f32 accumulation is kept inside the kernel)."""
    w_qs, w_ks, w_vs = params["w_qs"], params["w_ks"], params["w_vs"]
    n_head, d_model, d_k = w_qs.shape
    d_v = w_vs.shape[-1]
    inv_temper = 1.0 / math.sqrt(float(d_model))      # np.power(d_model, 0.5)

    wq_all = (jnp.transpose(w_qs, (1, 0, 2)).reshape(d_model, n_head * d_k)
              * inv_temper).astype(matmul_dtype)
    wk_all = jnp.transpose(w_ks, (1, 0, 2)).reshape(
        d_model, n_head * d_k).astype(matmul_dtype)
    wv_all = jnp.transpose(w_vs, (1, 0, 2)).reshape(
        d_model, n_head * d_v).astype(matmul_dtype)
    w_proj = params["w_proj"].astype(matmul_dtype)    # (n_head*d_v, d_model)

    return {
        "wq_all": wq_all, "wk_all": wk_all, "wv_all": wv_all, "w_proj": w_proj,
        "b_proj": params["b_proj"].reshape(1, -1).astype(jnp.float32),
        "a_2": params["a_2"].reshape(1, -1).astype(jnp.float32),
        "b_2": params["b_2"].reshape(1, -1).astype(jnp.float32),
        "n_head": int(n_head), "d_model": int(d_model),
        "d_k": int(d_k), "d_v": int(d_v),
    }


def _round_up(x, m):
    return ((x + m - 1) // m) * m


def _pick_b_tile(mb, len_q, target_rows=256, min_grid_steps=2):
    """Largest batch tile whose row count stays <= target_rows (MXU M target),
    preferring to keep >= min_grid_steps grid steps for pipelining/megacore,
    and keeping the block sublane dim 8-aligned (or full-array)."""
    divisors = [d for d in range(1, mb + 1) if mb % d == 0]

    def legal(d):
        return (d * len_q) % 8 == 0 or d == mb

    for need_steps in (min_grid_steps, 1):
        cands = [d for d in divisors
                 if legal(d) and d * len_q <= target_rows
                 and (mb // d) >= need_steps]
        if cands:
            return max(cands)
    return 1 if legal(1) else mb


# ----------------------------------------------------------------------------
# Wrapper
# ----------------------------------------------------------------------------
def multi_head_attention(q, k, v, packed, *, b_tile=None, return_attn=True,
                         eps=0.001, interpret=False):
    n_head, d_k, d_v = packed["n_head"], packed["d_k"], packed["d_v"]
    d_model = packed["d_model"]
    mb, len_q, _ = q.shape
    len_k = k.shape[1]

    if b_tile is None:
        b_tile = _pick_b_tile(mb, len_q)
    assert mb % b_tile == 0, "b_tile must divide the batch size"

    # Lane-dense key dimension: pad k/v sequence to a multiple of 128 so the
    # attention-prob output block has full 128-multiple lane width.
    lkp = _round_up(len_k, 128)
    if lkp != len_k:
        pad = ((0, 0), (0, lkp - len_k), (0, 0))
        k_in, v_in = jnp.pad(k, pad), jnp.pad(v, pad)
    else:
        k_in, v_in = k, v

    # Flatten rows so projections see M = b_tile*len (free reshapes in XLA).
    q_flat = q.reshape(mb * len_q, d_model)
    k_flat = k_in.reshape(mb * lkp, d_model)
    v_flat = v_in.reshape(mb * lkp, d_model)

    grid = (mb // b_tile,)
    apply_ln = (len_q != 1)

    kernel = functools.partial(
        _fused_mha_kernel, n_head=n_head, d_k=d_k, d_v=d_v, b_tile=b_tile,
        len_q=len_q, len_k=len_k, lkp=lkp, eps=eps, apply_ln=apply_ln,
        write_attn=return_attn)

    out_shapes = [jax.ShapeDtypeStruct((mb * len_q, d_model), jnp.float32)]
    out_specs = [pl.BlockSpec((b_tile * len_q, d_model), lambda i: (i, 0))]
    if return_attn:
        out_shapes.append(
            jax.ShapeDtypeStruct((n_head, mb, len_q, lkp), jnp.float32))
        out_specs.append(
            pl.BlockSpec((n_head, b_tile, len_q, lkp), lambda i: (0, i, 0, 0)))

    in_specs = [
        pl.BlockSpec((b_tile * len_q, d_model), lambda i: (i, 0)),   # q rows
        pl.BlockSpec((b_tile * lkp, d_model), lambda i: (i, 0)),     # k rows
        pl.BlockSpec((b_tile * lkp, d_model), lambda i: (i, 0)),     # v rows
        pl.BlockSpec((d_model, n_head * d_k), lambda i: (0, 0)),     # wq_all
        pl.BlockSpec((d_model, n_head * d_k), lambda i: (0, 0)),     # wk_all
        pl.BlockSpec((d_model, n_head * d_v), lambda i: (0, 0)),     # wv_all
        pl.BlockSpec((n_head * d_v, d_model), lambda i: (0, 0)),     # w_proj
        pl.BlockSpec((1, d_model), lambda i: (0, 0)),                # b_proj
        pl.BlockSpec((1, d_model), lambda i: (0, 0)),                # a_2
        pl.BlockSpec((1, d_model), lambda i: (0, 0)),                # b_2
    ]

    results = pl.pallas_call(
        kernel,
        out_shape=tuple(out_shapes),
        grid=grid,
        in_specs=in_specs,
        out_specs=tuple(out_specs),
        compiler_params=pltpu.CompilerParams(
            dimension_semantics=("parallel",),
            vmem_limit_bytes=64 * 1024 * 1024),
        interpret=interpret,
    )(q_flat, k_flat, v_flat,
      packed["wq_all"], packed["wk_all"], packed["wv_all"], packed["w_proj"],
      packed["b_proj"], packed["a_2"], packed["b_2"])

    out = results[0].reshape(mb, len_q, d_model)
    if return_attn:
        # (n_head, mb, len_q, lkp) -> slice off lane padding -> torch layout
        # (n_head*mb, len_q, len_k) (head index outer, batch index inner).
        attns = results[1][..., :len_k].reshape(n_head * mb, len_q, len_k)
    else:
        attns = None
    return out, attns


# ----------------------------------------------------------------------------
# Deterministic parameter initialization (xavier-normal like the module)
# ----------------------------------------------------------------------------
def init_params(key, n_head, d_model, d_k, d_v):
    k1, k2, k3, k4, k5 = jax.random.split(key, 5)

    def xavier(kk, shape, fan_in, fan_out):
        std = math.sqrt(2.0 / (fan_in + fan_out))
        return std * jax.random.normal(kk, shape, dtype=jnp.float32)

    w_qs = xavier(k1, (n_head, d_model, d_k), d_model * d_k, n_head * d_k)
    w_ks = xavier(k2, (n_head, d_model, d_k), d_model * d_k, n_head * d_k)
    w_vs = xavier(k3, (n_head, d_model, d_v), d_model * d_v, n_head * d_v)
    w_proj = xavier(k4, (n_head * d_v, d_model), n_head * d_v, d_model)
    bound = 1.0 / math.sqrt(n_head * d_v)
    b_proj = jax.random.uniform(k5, (d_model,), minval=-bound, maxval=bound,
                                dtype=jnp.float32)
    return {
        "w_qs": w_qs, "w_ks": w_ks, "w_vs": w_vs,
        "w_proj": w_proj, "b_proj": b_proj,
        "a_2": jnp.ones((d_model,), jnp.float32),
        "b_2": jnp.zeros((d_model,), jnp.float32),
    }


# ----------------------------------------------------------------------------
# Pure-JAX reference of the torch module (for a light sanity check).
# ----------------------------------------------------------------------------
def _reference_mha(q, k, v, params, eps=0.001):
    w_qs, w_ks, w_vs = params["w_qs"], params["w_ks"], params["w_vs"]
    n_head, d_model, d_k = w_qs.shape
    d_v = w_vs.shape[-1]
    mb, len_q, _ = q.shape
    len_k = k.shape[1]
    temper = math.sqrt(float(d_model))

    q_s = jnp.einsum("bld,hdk->hblk", q, w_qs).reshape(n_head * mb, len_q, d_k)
    k_s = jnp.einsum("bld,hdk->hblk", k, w_ks).reshape(n_head * mb, len_k, d_k)
    v_s = jnp.einsum("bld,hdk->hblk", v, w_vs).reshape(n_head * mb, len_k, d_v)

    attn = jax.nn.softmax(
        jnp.einsum("nqd,nkd->nqk", q_s, k_s) / temper, axis=-1)
    outputs = jnp.einsum("nqk,nkd->nqd", attn, v_s)
    outputs = outputs.reshape(n_head, mb, len_q, d_v).transpose(1, 2, 0, 3)
    outputs = outputs.reshape(mb, len_q, n_head * d_v)
    z = outputs @ params["w_proj"] + params["b_proj"] + q
    if len_q != 1:
        mu = jnp.mean(z, axis=-1, keepdims=True)
        sigma = jnp.std(z, axis=-1, keepdims=True, ddof=1)
        z = (z - mu) / (sigma + eps) * params["a_2"] + params["b_2"]
    return z, attn


if __name__ == "__main__":
    mb, seq, d_model = 4, 8, 32
    n_head, d_k, d_v = 4, 8, 8

    key = jax.random.PRNGKey(0)
    kq, kk, kv, kp = jax.random.split(key, 4)
    q = jax.random.normal(kq, (mb, seq, d_model), dtype=jnp.float32)
    k = jax.random.normal(kk, (mb, seq, d_model), dtype=jnp.float32)
    v = jax.random.normal(kv, (mb, seq, d_model), dtype=jnp.float32)
    params = init_params(kp, n_head, d_model, d_k, d_v)

    # Weight repack done ONCE, outside the forward path (use
    # matmul_dtype=jnp.bfloat16 on v6e/v7x for extra MXU throughput).
    packed = pack_params(params, matmul_dtype=jnp.float32)

    out, attns = multi_head_attention(q, k, v, packed)
    jax.block_until_ready(out)
    jax.block_until_ready(attns)

    assert out.shape == (mb, seq, d_model)
    assert attns.shape == (n_head * mb, seq, seq)

    # Light numerical sanity check against the pure-JAX reference.
    ref_out, ref_attn = _reference_mha(q, k, v, params)
    assert jnp.allclose(out, ref_out, atol=2e-2, rtol=2e-2), "output mismatch"
    assert jnp.allclose(attns, ref_attn, atol=2e-2, rtol=2e-2), "attn mismatch"

    print("KERNEL_OK")
</pallas_src>

<mosaic_0001>
module attributes {stable_mosaic.version = 11 : i64} {
  func.func @_fused_mha_kernel(%arg0: i32, %arg1: memref<16x32xf32, #tpu.memory_space<vmem>>, %arg2: memref<256x32xf32, #tpu.memory_space<vmem>>, %arg3: memref<256x32xf32, #tpu.memory_space<vmem>>, %arg4: memref<32x32xf32, #tpu.memory_space<vmem>>, %arg5: memref<32x32xf32, #tpu.memory_space<vmem>>, %arg6: memref<32x32xf32, #tpu.memory_space<vmem>>, %arg7: memref<32x32xf32, #tpu.memory_space<vmem>>, %arg8: memref<1x32xf32, #tpu.memory_space<vmem>>, %arg9: memref<1x32xf32, #tpu.memory_space<vmem>>, %arg10: memref<1x32xf32, #tpu.memory_space<vmem>>, %arg11: memref<16x32xf32, #tpu.memory_space<vmem>>, %arg12: memref<4x2x8x128xf32, #tpu.memory_space<vmem>>) attributes {dimension_semantics = [#tpu.dimension_semantics<parallel>], iteration_bounds = array<i64: 2>, scalar_prefetch = 0 : i64, scratch_operands = 0 : i64, tpu.core_type = #tpu.core_type<tc>, window_params = [{transform_indices = @transform_0, window_bounds = array<i64: 16, 32>}, {transform_indices = @transform_1, window_bounds = array<i64: 256, 32>}, {transform_indices = @transform_2, window_bounds = array<i64: 256, 32>}, {pipeline_mode = #tpu.pipeline_mode<synchronous>, transform_indices = @transform_3, window_bounds = array<i64: 32, 32>}, {pipeline_mode = #tpu.pipeline_mode<synchronous>, transform_indices = @transform_4, window_bounds = array<i64: 32, 32>}, {pipeline_mode = #tpu.pipeline_mode<synchronous>, transform_indices = @transform_5, window_bounds = array<i64: 32, 32>}, {pipeline_mode = #tpu.pipeline_mode<synchronous>, transform_indices = @transform_6, window_bounds = array<i64: 32, 32>}, {pipeline_mode = #tpu.pipeline_mode<synchronous>, transform_indices = @transform_7, window_bounds = array<i64: 1, 32>}, {pipeline_mode = #tpu.pipeline_mode<synchronous>, transform_indices = @transform_8, window_bounds = array<i64: 1, 32>}, {pipeline_mode = #tpu.pipeline_mode<synchronous>, transform_indices = @transform_9, window_bounds = array<i64: 1, 32>}, {transform_indices = @transform_10, window_bounds = array<i64: 16, 32>}, {transform_indices = @transform_11, window_bounds = array<i64: 4, 2, 8, 128>}]} {
    %c0 = arith.constant 0 : index
    %c0_0 = arith.constant 0 : index
    %0 = vector.load %arg1[%c0, %c0_0] : memref<16x32xf32, #tpu.memory_space<vmem>>, vector<16x32xf32>
    %c0_1 = arith.constant 0 : index
    %c0_2 = arith.constant 0 : index
    %1 = vector.load %arg2[%c0_1, %c0_2] : memref<256x32xf32, #tpu.memory_space<vmem>>, vector<256x32xf32>
    %c0_3 = arith.constant 0 : index
    %c0_4 = arith.constant 0 : index
    %2 = vector.load %arg3[%c0_3, %c0_4] : memref<256x32xf32, #tpu.memory_space<vmem>>, vector<256x32xf32>
    %c0_5 = arith.constant 0 : index
    %c0_6 = arith.constant 0 : index
    %3 = vector.load %arg4[%c0_5, %c0_6] : memref<32x32xf32, #tpu.memory_space<vmem>>, vector<32x32xf32>
    %cst = arith.constant dense<0.000000e+00> : vector<16x32xf32>
    %4 = tpu.matmul %0, %3, %cst {dimension_numbers = #tpu.dot_dimension_numbers<[1], [0], [0], [1], [0, 0, 1, 1], [], []>} : vector<16x32xf32>, vector<32x32xf32>, vector<16x32xf32> -> vector<16x32xf32>
    %c0_7 = arith.constant 0 : index
    %c0_8 = arith.constant 0 : index
    %5 = vector.load %arg5[%c0_7, %c0_8] : memref<32x32xf32, #tpu.memory_space<vmem>>, vector<32x32xf32>
    %cst_9 = arith.constant dense<0.000000e+00> : vector<256x32xf32>
    %6 = tpu.matmul %1, %5, %cst_9 {dimension_numbers = #tpu.dot_dimension_numbers<[1], [0], [0], [1], [0, 0, 1, 1], [], []>} : vector<256x32xf32>, vector<32x32xf32>, vector<256x32xf32> -> vector<256x32xf32>
    %c0_10 = arith.constant 0 : index
    %c0_11 = arith.constant 0 : index
    %7 = vector.load %arg6[%c0_10, %c0_11] : memref<32x32xf32, #tpu.memory_space<vmem>>, vector<32x32xf32>
    %cst_12 = arith.constant dense<0.000000e+00> : vector<256x32xf32>
    %8 = tpu.matmul %2, %7, %cst_12 {dimension_numbers = #tpu.dot_dimension_numbers<[1], [0], [0], [1], [0, 0, 1, 1], [], []>} : vector<256x32xf32>, vector<32x32xf32>, vector<256x32xf32> -> vector<256x32xf32>
    %cst_13 = arith.constant 0.000000e+00 : f32
    %9 = vector.broadcast %cst_13 : f32 to vector<16x32xf32>
    %10 = vector.extract_strided_slice %4 {offsets = [0, 0], sizes = [16, 8], strides = [1, 1]} : vector<16x32xf32> to vector<16x8xf32>
    %11 = vector.shape_cast %10 : vector<16x8xf32> to vector<2x8x8xf32>
    %12 = vector.extract_strided_slice %6 {offsets = [0, 0], sizes = [256, 8], strides = [1, 1]} : vector<256x32xf32> to vector<256x8xf32>
    %13 = vector.shape_cast %12 : vector<256x8xf32> to vector<2x128x8xf32>
    %14 = vector.extract_strided_slice %8 {offsets = [0, 0], sizes = [256, 8], strides = [1, 1]} : vector<256x32xf32> to vector<256x8xf32>
    %15 = vector.shape_cast %14 : vector<256x8xf32> to vector<2x128x8xf32>
    %cst_14 = arith.constant dense<0.000000e+00> : vector<2x8x128xf32>
    %16 = tpu.matmul %11, %13, %cst_14 {dimension_numbers = #tpu.dot_dimension_numbers<[2], [2], [1], [1], [0, 0, 0, 1, 1, 1], [0], [0]>} : vector<2x8x8xf32>, vector<2x128x8xf32>, vector<2x8x128xf32> -> vector<2x8x128xf32>
    %17 = tpu.iota {dimensions = array<i32: 2>} : vector<2x8x128xi32>
    %c8_i32 = arith.constant 8 : i32
    %18 = vector.broadcast %c8_i32 : i32 to vector<2x8x128xi32>
    %19 = arith.cmpi slt, %17, %18 : vector<2x8x128xi32>
    %cst_15 = arith.constant -1.000000e+30 : f32
    %20 = vector.broadcast %cst_15 : f32 to vector<2x8x128xf32>
    %21 = arith.select %19, %16, %20 : vector<2x8x128xi1>, vector<2x8x128xf32>
    %cst_16 = arith.constant dense<0xFF800000> : vector<2x8xf32>
    %22 = vector.multi_reduction <maximumf>, %21, %cst_16 [2] : vector<2x8x128xf32> to vector<2x8xf32>
    %23 = vector.shape_cast %22 : vector<2x8xf32> to vector<2x8x1xf32>
    %24 = vector.broadcast %23 : vector<2x8x1xf32> to vector<2x8x128xf32>
    %25 = arith.subf %21, %24 : vector<2x8x128xf32>
    %26 = math.exp %25 : vector<2x8x128xf32>
    %cst_17 = arith.constant dense<0.000000e+00> : vector<2x8xf32>
    %27 = vector.multi_reduction <add>, %26, %cst_17 [2] : vector<2x8x128xf32> to vector<2x8xf32>
    %28 = vector.shape_cast %27 : vector<2x8xf32> to vector<2x8x1xf32>
    %29 = vector.broadcast %28 : vector<2x8x1xf32> to vector<2x8x128xf32>
    %30 = arith.divf %26, %29 : vector<2x8x128xf32>
    %c0_18 = arith.constant 0 : index
    %c0_19 = arith.constant 0 : index
    %c0_20 = arith.constant 0 : index
    %c0_21 = arith.constant 0 : index
    %31 = vector.load %arg12[%c0_18, %c0_19, %c0_20, %c0_21] : memref<4x2x8x128xf32, #tpu.memory_space<vmem>>, vector<1x2x8x128xf32>
    %32 = vector.shape_cast %31 : vector<1x2x8x128xf32> to vector<2x8x128xf32>
    %33 = vector.shape_cast %30 : vector<2x8x128xf32> to vector<1x2x8x128xf32>
    tpu.vector_store %arg12[%c0_18, %c0_19, %c0_20, %c0_21], %33 {strides = array<i32>} : memref<4x2x8x128xf32, #tpu.memory_space<vmem>>, vector<1x2x8x128xf32>,
    %cst_22 = arith.constant dense<0.000000e+00> : vector<2x8x8xf32>
    %34 = tpu.matmul %30, %15, %cst_22 {dimension_numbers = #tpu.dot_dimension_numbers<[2], [1], [1], [2], [0, 0, 0, 1, 1, 2], [0], [0]>} : vector<2x8x128xf32>, vector<2x128x8xf32>, vector<2x8x8xf32> -> vector<2x8x8xf32>
    %35 = vector.shape_cast %34 : vector<2x8x8xf32> to vector<16x8xf32>
    %c0_23 = arith.constant 0 : index
    %c0_24 = arith.constant 0 : index
    %36 = vector.load %arg7[%c0_23, %c0_24] : memref<32x32xf32, #tpu.memory_space<vmem>>, vector<8x32xf32>
    %cst_25 = arith.constant dense<0.000000e+00> : vector<16x32xf32>
    %37 = tpu.matmul %35, %36, %cst_25 {dimension_numbers = #tpu.dot_dimension_numbers<[1], [0], [0], [1], [0, 0, 1, 1], [], []>} : vector<16x8xf32>, vector<8x32xf32>, vector<16x32xf32> -> vector<16x32xf32>
    %38 = arith.addf %9, %37 : vector<16x32xf32>
    %39 = vector.extract_strided_slice %4 {offsets = [0, 8], sizes = [16, 8], strides = [1, 1]} : vector<16x32xf32> to vector<16x8xf32>
    %40 = vector.shape_cast %39 : vector<16x8xf32> to vector<2x8x8xf32>
    %41 = vector.extract_strided_slice %6 {offsets = [0, 8], sizes = [256, 8], strides = [1, 1]} : vector<256x32xf32> to vector<256x8xf32>
    %42 = vector.shape_cast %41 : vector<256x8xf32> to vector<2x128x8xf32>
    %43 = vector.extract_strided_slice %8 {offsets = [0, 8], sizes = [256, 8], strides = [1, 1]} : vector<256x32xf32> to vector<256x8xf32>
    %44 = vector.shape_cast %43 : vector<256x8xf32> to vector<2x128x8xf32>
    %cst_26 = arith.constant dense<0.000000e+00> : vector<2x8x128xf32>
    %45 = tpu.matmul %40, %42, %cst_26 {dimension_numbers = #tpu.dot_dimension_numbers<[2], [2], [1], [1], [0, 0, 0, 1, 1, 1], [0], [0]>} : vector<2x8x8xf32>, vector<2x128x8xf32>, vector<2x8x128xf32> -> vector<2x8x128xf32>
    %46 = tpu.iota {dimensions = array<i32: 2>} : vector<2x8x128xi32>
    %c8_i32_27 = arith.constant 8 : i32
    %47 = vector.broadcast %c8_i32_27 : i32 to vector<2x8x128xi32>
    %48 = arith.cmpi slt, %46, %47 : vector<2x8x128xi32>
    %cst_28 = arith.constant -1.000000e+30 : f32
    %49 = vector.broadcast %cst_28 : f32 to vector<2x8x128xf32>
    %50 = arith.select %48, %45, %49 : vector<2x8x128xi1>, vector<2x8x128xf32>
    %cst_29 = arith.constant dense<0xFF800000> : vector<2x8xf32>
    %51 = vector.multi_reduction <maximumf>, %50, %cst_29 [2] : vector<2x8x128xf32> to vector<2x8xf32>
    %52 = vector.shape_cast %51 : vector<2x8xf32> to vector<2x8x1xf32>
    %53 = vector.broadcast %52 : vector<2x8x1xf32> to vector<2x8x128xf32>
    %54 = arith.subf %50, %53 : vector<2x8x128xf32>
    %55 = math.exp %54 : vector<2x8x128xf32>
    %cst_30 = arith.constant dense<0.000000e+00> : vector<2x8xf32>
    %56 = vector.multi_reduction <add>, %55, %cst_30 [2] : vector<2x8x128xf32> to vector<2x8xf32>
    %57 = vector.shape_cast %56 : vector<2x8xf32> to vector<2x8x1xf32>
    %58 = vector.broadcast %57 : vector<2x8x1xf32> to vector<2x8x128xf32>
    %59 = arith.divf %55, %58 : vector<2x8x128xf32>
    %c1 = arith.constant 1 : index
    %c0_31 = arith.constant 0 : index
    %c0_32 = arith.constant 0 : index
    %c0_33 = arith.constant 0 : index
    %60 = vector.load %arg12[%c1, %c0_31, %c0_32, %c0_33] : memref<4x2x8x128xf32, #tpu.memory_space<vmem>>, vector<1x2x8x128xf32>
    %61 = vector.shape_cast %60 : vector<1x2x8x128xf32> to vector<2x8x128xf32>
    %62 = vector.shape_cast %59 : vector<2x8x128xf32> to vector<1x2x8x128xf32>
    tpu.vector_store %arg12[%c1, %c0_31, %c0_32, %c0_33], %62 {strides = array<i32>} : memref<4x2x8x128xf32, #tpu.memory_space<vmem>>, vector<1x2x8x128xf32>,
    %cst_34 = arith.constant dense<0.000000e+00> : vector<2x8x8xf32>
    %63 = tpu.matmul %59, %44, %cst_34 {dimension_numbers = #tpu.dot_dimension_numbers<[2], [1], [1], [2], [0, 0, 0, 1, 1, 2], [0], [0]>} : vector<2x8x128xf32>, vector<2x128x8xf32>, vector<2x8x8xf32> -> vector<2x8x8xf32>
    %64 = vector.shape_cast %63 : vector<2x8x8xf32> to vector<16x8xf32>
    %c8 = arith.constant 8 : index
    %c0_35 = arith.constant 0 : index
    %65 = vector.load %arg7[%c8, %c0_35] : memref<32x32xf32, #tpu.memory_space<vmem>>, vector<8x32xf32>
    %cst_36 = arith.constant dense<0.000000e+00> : vector<16x32xf32>
    %66 = tpu.matmul %64, %65, %cst_36 {dimension_numbers = #tpu.dot_dimension_numbers<[1], [0], [0], [1], [0, 0, 1, 1], [], []>} : vector<16x8xf32>, vector<8x32xf32>, vector<16x32xf32> -> vector<16x32xf32>
    %67 = arith.addf %38, %66 : vector<16x32xf32>
    %68 = vector.extract_strided_slice %4 {offsets = [0, 16], sizes = [16, 8], strides = [1, 1]} : vector<16x32xf32> to vector<16x8xf32>
    %69 = vector.shape_cast %68 : vector<16x8xf32> to vector<2x8x8xf32>
    %70 = vector.extract_strided_slice %6 {offsets = [0, 16], sizes = [256, 8], strides = [1, 1]} : vector<256x32xf32> to vector<256x8xf32>
    %71 = vector.shape_cast %70 : vector<256x8xf32> to vector<2x128x8xf32>
    %72 = vector.extract_strided_slice %8 {offsets = [0, 16], sizes = [256, 8], strides = [1, 1]} : vector<256x32xf32> to vector<256x8xf32>
    %73 = vector.shape_cast %72 : vector<256x8xf32> to vector<2x128x8xf32>
    %cst_37 = arith.constant dense<0.000000e+00> : vector<2x8x128xf32>
    %74 = tpu.matmul %69, %71, %cst_37 {dimension_numbers = #tpu.dot_dimension_numbers<[2], [2], [1], [1], [0, 0, 0, 1, 1, 1], [0], [0]>} : vector<2x8x8xf32>, vector<2x128x8xf32>, vector<2x8x128xf32> -> vector<2x8x128xf32>
    %75 = tpu.iota {dimensions = array<i32: 2>} : vector<2x8x128xi32>
    %c8_i32_38 = arith.constant 8 : i32
    %76 = vector.broadcast %c8_i32_38 : i32 to vector<2x8x128xi32>
    %77 = arith.cmpi slt, %75, %76 : vector<2x8x128xi32>
    %cst_39 = arith.constant -1.000000e+30 : f32
    %78 = vector.broadcast %cst_39 : f32 to vector<2x8x128xf32>
    %79 = arith.select %77, %74, %78 : vector<2x8x128xi1>, vector<2x8x128xf32>
    %cst_40 = arith.constant dense<0xFF800000> : vector<2x8xf32>
    %80 = vector.multi_reduction <maximumf>, %79, %cst_40 [2] : vector<2x8x128xf32> to vector<2x8xf32>
    %81 = vector.shape_cast %80 : vector<2x8xf32> to vector<2x8x1xf32>
    %82 = vector.broadcast %81 : vector<2x8x1xf32> to vector<2x8x128xf32>
    %83 = arith.subf %79, %82 : vector<2x8x128xf32>
    %84 = math.exp %83 : vector<2x8x128xf32>
    %cst_41 = arith.constant dense<0.000000e+00> : vector<2x8xf32>
    %85 = vector.multi_reduction <add>, %84, %cst_41 [2] : vector<2x8x128xf32> to vector<2x8xf32>
    %86 = vector.shape_cast %85 : vector<2x8xf32> to vector<2x8x1xf32>
    %87 = vector.broadcast %86 : vector<2x8x1xf32> to vector<2x8x128xf32>
    %88 = arith.divf %84, %87 : vector<2x8x128xf32>
    %c2 = arith.constant 2 : index
    %c0_42 = arith.constant 0 : index
    %c0_43 = arith.constant 0 : index
    %c0_44 = arith.constant 0 : index
    %89 = vector.load %arg12[%c2, %c0_42, %c0_43, %c0_44] : memref<4x2x8x128xf32, #tpu.memory_space<vmem>>, vector<1x2x8x128xf32>
    %90 = vector.shape_cast %89 : vector<1x2x8x128xf32> to vector<2x8x128xf32>
    %91 = vector.shape_cast %88 : vector<2x8x128xf32> to vector<1x2x8x128xf32>
    tpu.vector_store %arg12[%c2, %c0_42, %c0_43, %c0_44], %91 {strides = array<i32>} : memref<4x2x8x128xf32, #tpu.memory_space<vmem>>, vector<1x2x8x128xf32>,
    %cst_45 = arith.constant dense<0.000000e+00> : vector<2x8x8xf32>
    %92 = tpu.matmul %88, %73, %cst_45 {dimension_numbers = #tpu.dot_dimension_numbers<[2], [1], [1], [2], [0, 0, 0, 1, 1, 2], [0], [0]>} : vector<2x8x128xf32>, vector<2x128x8xf32>, vector<2x8x8xf32> -> vector<2x8x8xf32>
    %93 = vector.shape_cast %92 : vector<2x8x8xf32> to vector<16x8xf32>
    %c16 = arith.constant 16 : index
    %c0_46 = arith.constant 0 : index
    %94 = vector.load %arg7[%c16, %c0_46] : memref<32x32xf32, #tpu.memory_space<vmem>>, vector<8x32xf32>
    %cst_47 = arith.constant dense<0.000000e+00> : vector<16x32xf32>
    %95 = tpu.matmul %93, %94, %cst_47 {dimension_numbers = #tpu.dot_dimension_numbers<[1], [0], [0], [1], [0, 0, 1, 1], [], []>} : vector<16x8xf32>, vector<8x32xf32>, vector<16x32xf32> -> vector<16x32xf32>
    %96 = arith.addf %67, %95 : vector<16x32xf32>
    %97 = vector.extract_strided_slice %4 {offsets = [0, 24], sizes = [16, 8], strides = [1, 1]} : vector<16x32xf32> to vector<16x8xf32>
    %98 = vector.shape_cast %97 : vector<16x8xf32> to vector<2x8x8xf32>
    %99 = vector.extract_strided_slice %6 {offsets = [0, 24], sizes = [256, 8], strides = [1, 1]} : vector<256x32xf32> to vector<256x8xf32>
    %100 = vector.shape_cast %99 : vector<256x8xf32> to vector<2x128x8xf32>
    %101 = vector.extract_strided_slice %8 {offsets = [0, 24], sizes = [256, 8], strides = [1, 1]} : vector<256x32xf32> to vector<256x8xf32>
    %102 = vector.shape_cast %101 : vector<256x8xf32> to vector<2x128x8xf32>
    %cst_48 = arith.constant dense<0.000000e+00> : vector<2x8x128xf32>
    %103 = tpu.matmul %98, %100, %cst_48 {dimension_numbers = #tpu.dot_dimension_numbers<[2], [2], [1], [1], [0, 0, 0, 1, 1, 1], [0], [0]>} : vector<2x8x8xf32>, vector<2x128x8xf32>, vector<2x8x128xf32> -> vector<2x8x128xf32>
    %104 = tpu.iota {dimensions = array<i32: 2>} : vector<2x8x128xi32>
    %c8_i32_49 = arith.constant 8 : i32
    %105 = vector.broadcast %c8_i32_49 : i32 to vector<2x8x128xi32>
    %106 = arith.cmpi slt, %104, %105 : vector<2x8x128xi32>
    %cst_50 = arith.constant -1.000000e+30 : f32
    %107 = vector.broadcast %cst_50 : f32 to vector<2x8x128xf32>
    %108 = arith.select %106, %103, %107 : vector<2x8x128xi1>, vector<2x8x128xf32>
    %cst_51 = arith.constant dense<0xFF800000> : vector<2x8xf32>
    %109 = vector.multi_reduction <maximumf>, %108, %cst_51 [2] : vector<2x8x128xf32> to vector<2x8xf32>
    %110 = vector.shape_cast %109 : vector<2x8xf32> to vector<2x8x1xf32>
    %111 = vector.broadcast %110 : vector<2x8x1xf32> to vector<2x8x128xf32>
    %112 = arith.subf %108, %111 : vector<2x8x128xf32>
    %113 = math.exp %112 : vector<2x8x128xf32>
    %cst_52 = arith.constant dense<0.000000e+00> : vector<2x8xf32>
    %114 = vector.multi_reduction <add>, %113, %cst_52 [2] : vector<2x8x128xf32> to vector<2x8xf32>
    %115 = vector.shape_cast %114 : vector<2x8xf32> to vector<2x8x1xf32>
    %116 = vector.broadcast %115 : vector<2x8x1xf32> to vector<2x8x128xf32>
    %117 = arith.divf %113, %116 : vector<2x8x128xf32>
    %c3 = arith.constant 3 : index
    %c0_53 = arith.constant 0 : index
    %c0_54 = arith.constant 0 : index
    %c0_55 = arith.constant 0 : index
    %118 = vector.load %arg12[%c3, %c0_53, %c0_54, %c0_55] : memref<4x2x8x128xf32, #tpu.memory_space<vmem>>, vector<1x2x8x128xf32>
    %119 = vector.shape_cast %118 : vector<1x2x8x128xf32> to vector<2x8x128xf32>
    %120 = vector.shape_cast %117 : vector<2x8x128xf32> to vector<1x2x8x128xf32>
    tpu.vector_store %arg12[%c3, %c0_53, %c0_54, %c0_55], %120 {strides = array<i32>} : memref<4x2x8x128xf32, #tpu.memory_space<vmem>>, vector<1x2x8x128xf32>,
    %cst_56 = arith.constant dense<0.000000e+00> : vector<2x8x8xf32>
    %121 = tpu.matmul %117, %102, %cst_56 {dimension_numbers = #tpu.dot_dimension_numbers<[2], [1], [1], [2], [0, 0, 0, 1, 1, 2], [0], [0]>} : vector<2x8x128xf32>, vector<2x128x8xf32>, vector<2x8x8xf32> -> vector<2x8x8xf32>
    %122 = vector.shape_cast %121 : vector<2x8x8xf32> to vector<16x8xf32>
    %c24 = arith.constant 24 : index
    %c0_57 = arith.constant 0 : index
    %123 = vector.load %arg7[%c24, %c0_57] : memref<32x32xf32, #tpu.memory_space<vmem>>, vector<8x32xf32>
    %cst_58 = arith.constant dense<0.000000e+00> : vector<16x32xf32>
    %124 = tpu.matmul %122, %123, %cst_58 {dimension_numbers = #tpu.dot_dimension_numbers<[1], [0], [0], [1], [0, 0, 1, 1], [], []>} : vector<16x8xf32>, vector<8x32xf32>, vector<16x32xf32> -> vector<16x32xf32>
    %125 = arith.addf %96, %124 : vector<16x32xf32>
    %c0_59 = arith.constant 0 : index
    %c0_60 = arith.constant 0 : index
    %126 = vector.load %arg8[%c0_59, %c0_60] : memref<1x32xf32, #tpu.memory_space<vmem>>, vector<1x32xf32>
    %127 = vector.broadcast %126 : vector<1x32xf32> to vector<16x32xf32>
    %128 = arith.addf %125, %127 : vector<16x32xf32>
    %129 = arith.addf %128, %0 : vector<16x32xf32>
    %cst_61 = arith.constant dense<0.000000e+00> : vector<16xf32>
    %130 = vector.multi_reduction <add>, %129, %cst_61 [1] : vector<16x32xf32> to vector<16xf32>
    %131 = vector.shape_cast %130 : vector<16xf32> to vector<16x1xf32>
    %cst_62 = arith.constant 3.200000e+01 : f32
    %132 = vector.broadcast %cst_62 : f32 to vector<16x1xf32>
    %133 = arith.divf %131, %132 : vector<16x1xf32>
    %134 = vector.broadcast %133 : vector<16x1xf32> to vector<16x32xf32>
    %135 = arith.subf %129, %134 : vector<16x32xf32>
    %136 = arith.mulf %135, %135 : vector<16x32xf32>
    %cst_63 = arith.constant dense<0.000000e+00> : vector<16xf32>
    %137 = vector.multi_reduction <add>, %136, %cst_63 [1] : vector<16x32xf32> to vector<16xf32>
    %138 = vector.shape_cast %137 : vector<16xf32> to vector<16x1xf32>
    %cst_64 = arith.constant 3.100000e+01 : f32
    %139 = vector.broadcast %cst_64 : f32 to vector<16x1xf32>
    %140 = arith.divf %138, %139 : vector<16x1xf32>
    %141 = math.sqrt %140 : vector<16x1xf32>
    %cst_65 = arith.constant 1.000000e-03 : f32
    %142 = vector.broadcast %cst_65 : f32 to vector<16x1xf32>
    %143 = arith.addf %141, %142 : vector<16x1xf32>
    %144 = tpu.reciprocal %143 : vector<16x1xf32> -> vector<16x1xf32>
    %145 = vector.broadcast %133 : vector<16x1xf32> to vector<16x32xf32>
    %146 = arith.subf %129, %145 : vector<16x32xf32>
    %147 = vector.broadcast %144 : vector<16x1xf32> to vector<16x32xf32>
    %148 = arith.mulf %146, %147 : vector<16x32xf32>
    %c0_66 = arith.constant 0 : index
    %c0_67 = arith.constant 0 : index
    %149 = vector.load %arg9[%c0_66, %c0_67] : memref<1x32xf32, #tpu.memory_space<vmem>>, vector<1x32xf32>
    %150 = vector.broadcast %149 : vector<1x32xf32> to vector<16x32xf32>
    %151 = arith.mulf %148, %150 : vector<16x32xf32>
    %c0_68 = arith.constant 0 : index
    %c0_69 = arith.constant 0 : index
    %152 = vector.load %arg10[%c0_68, %c0_69] : memref<1x32xf32, #tpu.memory_space<vmem>>, vector<1x32xf32>
    %153 = vector.broadcast %152 : vector<1x32xf32> to vector<16x32xf32>
    %154 = arith.addf %151, %153 : vector<16x32xf32>
    %c0_70 = arith.constant 0 : index
    %c0_71 = arith.constant 0 : index
    %155 = vector.load %arg11[%c0_70, %c0_71] : memref<16x32xf32, #tpu.memory_space<vmem>>, vector<16x32xf32>
    tpu.vector_store %arg11[%c0_70, %c0_71], %154 {strides = array<i32>} : memref<16x32xf32, #tpu.memory_space<vmem>>, vector<16x32xf32>,
    return
  }
  func.func @transform_0(%arg0: i32) -> (i32, i32) {
    %c0_i32 = arith.constant 0 : i32
    %c0_i32_0 = arith.constant 0 : i32
    return %arg0, %c0_i32 : i32, i32
  }
  func.func @transform_1(%arg0: i32) -> (i32, i32) {
    %c0_i32 = arith.constant 0 : i32
    %c0_i32_0 = arith.constant 0 : i32
    return %arg0, %c0_i32 : i32, i32
  }
  func.func @transform_2(%arg0: i32) -> (i32, i32) {
    %c0_i32 = arith.constant 0 : i32
    %c0_i32_0 = arith.constant 0 : i32
    return %arg0, %c0_i32 : i32, i32
  }
  func.func @transform_3(%arg0: i32) -> (i32, i32) {
    %c0_i32 = arith.constant 0 : i32
    %c0_i32_0 = arith.constant 0 : i32
    %c0_i32_1 = arith.constant 0 : i32
    return %c0_i32, %c0_i32_0 : i32, i32
  }
  func.func @transform_4(%arg0: i32) -> (i32, i32) {
    %c0_i32 = arith.constant 0 : i32
    %c0_i32_0 = arith.constant 0 : i32
    %c0_i32_1 = arith.constant 0 : i32
    return %c0_i32, %c0_i32_0 : i32, i32
  }
  func.func @transform_5(%arg0: i32) -> (i32, i32) {
    %c0_i32 = arith.constant 0 : i32
    %c0_i32_0 = arith.constant 0 : i32
    %c0_i32_1 = arith.constant 0 : i32
    return %c0_i32, %c0_i32_0 : i32, i32
  }
  func.func @transform_6(%arg0: i32) -> (i32, i32) {
    %c0_i32 = arith.constant 0 : i32
    %c0_i32_0 = arith.constant 0 : i32
    %c0_i32_1 = arith.constant 0 : i32
    return %c0_i32, %c0_i32_0 : i32, i32
  }
  func.func @transform_7(%arg0: i32) -> (i32, i32) {
    %c0_i32 = arith.constant 0 : i32
    %c0_i32_0 = arith.constant 0 : i32
    %c0_i32_1 = arith.constant 0 : i32
    return %c0_i32, %c0_i32_0 : i32, i32
  }
  func.func @transform_8(%arg0: i32) -> (i32, i32) {
    %c0_i32 = arith.constant 0 : i32
    %c0_i32_0 = arith.constant 0 : i32
    %c0_i32_1 = arith.constant 0 : i32
    return %c0_i32, %c0_i32_0 : i32, i32
  }
  func.func @transform_9(%arg0: i32) -> (i32, i32) {
    %c0_i32 = arith.constant 0 : i32
    %c0_i32_0 = arith.constant 0 : i32
    %c0_i32_1 = arith.constant 0 : i32
    return %c0_i32, %c0_i32_0 : i32, i32
  }
  func.func @transform_10(%arg0: i32) -> (i32, i32) {
    %c0_i32 = arith.constant 0 : i32
    %c0_i32_0 = arith.constant 0 : i32
    return %arg0, %c0_i32 : i32, i32
  }
  func.func @transform_11(%arg0: i32) -> (i32, i32, i32, i32) {
    %c0_i32 = arith.constant 0 : i32
    %c0_i32_0 = arith.constant 0 : i32
    %c0_i32_1 = arith.constant 0 : i32
    %c0_i32_2 = arith.constant 0 : i32
    return %c0_i32, %arg0, %c0_i32_0, %c0_i32_1 : i32, i32, i32, i32
  }
}

</mosaic_0001>

<bundles_post_ra>
// kernel: tpu_custom_call.1
= control target key start
LH: loop header
LB: loop body
LE: loop exit
PB: predicated region body
PF: predicated region fallthrough
CT: control target
= control target key end

     0   :  { %s8332_s0 = inlined_call_operand.hbm [shape: f32[32,32], index: 0, kind: input, shape index: {}]   ;;  %s8333_s1 = inlined_call_operand.hbm [shape: f32[512,32], index: 1, kind: input, shape index: {}]   ;;  %s8334_s2 = inlined_call_operand.hbm [shape: f32[512,32], index: 2, kind: input, shape index: {}]   ;;  %s8335_s3 = inlined_call_operand.hbm [shape: f32[32,32], index: 3, kind: input, shape index: {}]   ;;  %s8336_s4 = inlined_call_operand.hbm [shape: f32[32,32], index: 4, kind: input, shape index: {}]   ;;  %s8337_s5 = inlined_call_operand.hbm [shape: f32[32,32], index: 5, kind: input, shape index: {}]   ;;  %s8338_s6 = inlined_call_operand.hbm [shape: f32[32,32], index: 6, kind: input, shape index: {}]   ;;  %s8339_s7 = inlined_call_operand.hbm [shape: f32[1,32], index: 7, kind: input, shape index: {}]   ;;  %s8340_s8 = inlined_call_operand.hbm [shape: f32[1,32], index: 8, kind: input, shape index: {}]   ;;  %s8341_s9 = inlined_call_operand.hbm [shape: f32[1,32], index: 9, kind: input, shape index: {}]   ;;  %s8342_s10 = inlined_call_operand.hbm [shape: f32[32,32], index: 10, kind: output, shape index: {0}]   ;;  %s8343_s11 = inlined_call_operand.hbm [shape: f32[4,4,8,128], index: 11, kind: output, shape index: {1}]  }
   0x1   :  { %8376 = sst [smem:[#allocation42_spill]] %s8333_s1 }
   0x2   :  { %8377 = sst [smem:[#allocation43_spill]] %s8335_s3 }
   0x3   :  { %8378 = sst [smem:[#allocation44_spill]] %s8337_s5 }
   0x4   :  { %8379 = sst [smem:[#allocation45_spill]] %s8339_s7 }
   0x5   :  { %8380 = sst [smem:[#allocation46_spill]] %s8342_s10 }
   0x6   :  { %8381 = sst [smem:[#allocation47_spill]] %s8343_s11 }
   0x7   :  { %17 = vsyncpa [#allocation3], 0 }
   0x8   :  { %19 = vsyncpa [#allocation3 + $0x1], 0 }
   0x9   :  { %20 = vsyncpa [#allocation6], 0 }
   0xa   :  { %22 = vsyncpa [#allocation6 + $0x1], 0 }
   0xb   :  { %23 = vsyncpa [#allocation9], 0 }
   0xc   :  { %24 = vsyncpa [#allocation12], 0 }
   0xd   :  { %25 = vsyncpa [#allocation15], 0 }
   0xe   :  { %26 = vsyncpa [#allocation18], 0 }
   0xf   :  { %27 = vsyncpa [#allocation4], 0 }
  0x10   :  { %29 = vsyncpa [#allocation4 + $0x1], 0 }
  0x11   :  { %30 = vsyncpa [#allocation21], 0 }
  0x12   :  { %32 = vsyncpa [#allocation21 + $0x1], 0  ;;  %s7075_s17 = smov 0   ;;  %s7077_s18 = smov 0  }
  0x13   :  { %s7079_s19 = smov 0   ;;  %s7081_s20 = smov 0  }
  0x14 LB: > { %8382 = sst [smem:[#allocation32_spill]] %s6973_s17  ;;  %s6987_s21 = smov [#allocation8]   ;;  %s6985_s20 = sphi %s7081_s20, %s8436_s20   ;;  %s6981_s19 = sphi %s7079_s19, %s8439_s19   ;;  %s6977_s18 = sphi %s7077_s18, %s8438_s18   ;;  %s6973_s17 = sphi %s7075_s17, %s8437_s17  }
  0x15   : > { %8383 = sst [smem:[#allocation33_spill]] %s6977_s18  ;;  %s332_s22 = sshll.u32 %s6987_s21, 4  ;;  %s7101_s22 = int_to_ptr.vmem [resolvable:$true] %s332_s22 }
  0x16   : > { %8384 = sst [smem:[#allocation34_spill]] %s6981_s19  ;;  %s7096_s23 = sadd.s32 4294967295, %s6985_s20  }
  0x17   : > { %8385 = sst [smem:[#allocation35_spill]] %s7096_s23  ;;  %p4126_p0 = scmp.ge.s32.totalorder %s6985_s20, 1 }
  0x18   : > { %p8353_p1 = scmp.eq.s32.totalorder %s7096_s23, 0  ;;  %p320_p2 = scmp.lt.s32.totalorder %s6985_s20, 3 }
  0x19   : > { %s6988_s25 = smov [#allocation11]   ;;  %s6989_s28 = smov [#allocation14]  }
  0x1a   : > { %p7103_p3 = pnand %p4126_p0, %p320_p2  ;;  %s358_s26 = sshll.u32 %s6988_s25, 4  ;;  %s7116_s26 = int_to_ptr.vmem [resolvable:$true] %s358_s26 }
  0x1b   : > { %s385_s29 = sshll.u32 %s6989_s28, 4  ;;  %s8389_s3 = sld [smem:[#allocation43_spill]]  ;;  %s7118_s29 = int_to_ptr.vmem [resolvable:$true] %s385_s29 }
  0x1c   : > { %s8386_s24 = scalar_select %p7103_p3, 1, 0 }
  0x1d   : > { %p5976_p5 = pneg %p7103_p3 }
  0x1e   : > { %8387 = sst [smem:[#allocation36_spill]] %s8386_s24 }
  0x1f   : > { %p7112_p6 = pnand %p5976_p5, %p8353_p1 }
  0x21   : > { %s8388_s27 = scalar_select %p7112_p6, 1, 0 }
  0x22   : > { %s6609_s13 = scalar_lea.hbm %s8389_s3, 512  ;;  %p7128_p8 = pneg %p7112_p6 }
  0x23   : > { %p6610_p7 = scmp.ne.s32.totalorder %s8389_s3, %s6609_s13  ;;  %p6616_p11 = scmp.lt.u32.totalorder %s6609_s13, %s8389_s3 }
  0x24   : > { %s8390_s16 = scalar_select %p7128_p8, 1, 0 }
  0x25   : > { %p6612_p9 = pnand %p7128_p8, %p6610_p7 }
  0x27   : > { %p6613_p10 = pneg %p6612_p9 }
  0x29   : > { %p6618_p12 = pnand %p6616_p11, %p6613_p10 }
  0x2b   : > { %6621 = shalt.err (!%p6618_p12)
}
  0x2c   : > { %s6622_s28 = scalar_lea.vmem %s7101_s22, 512  ;;  %p6630_p5 = scmp.lt.s32.totalorder %s7101_s22, %s7101_s22 }
  0x2d   : > { %p6623_p13 = scmp.ne.s32.totalorder %s7101_s22, %s6622_s28  ;;  %p6631_p4 = scmp.lt.s32.totalorder %s6622_s28, %s6622_s28 }
  0x2f   : > { %p6625_p0 = pnand %p6623_p13, %p7128_p8  ;;  %p6632_p7 = por %p6631_p4, %p6630_p5 }
  0x31   : > { %p6626_p2 = pneg %p6625_p0 }
  0x33   : > { %p6633_p9 = pnand %p6632_p7, %p6626_p2 }
  0x35   : > { %6636 = shalt.err (!%p6633_p9)
}
  0x36   : > { %s8347_s30 = smov 128   ;;  %s8349_s12 = smov 8  }
  0x37   : > { %5979 = dma.hbm_to_vmem [thread:$0]  (!%p7112_p6), %s8389_s3, 512, %s7101_s22, [#allocation9], %s8347_s30, %s8347_s30, %s8349_s12  }
  0x38   : > { %s8391_s5 = sld [smem:[#allocation44_spill]] }
  0x3e   : > { %s6637_s25 = scalar_lea.hbm %s8391_s5, 512 }
  0x3f   : > { %p6638_p4 = scmp.ne.s32.totalorder %s8391_s5, %s6637_s25  ;;  %p6644_p12 = scmp.lt.u32.totalorder %s6637_s25, %s8391_s5 }
  0x41   : > { %p6640_p10 = pnand %p6638_p4, %p7128_p8 }
  0x43   : > { %p6641_p11 = pneg %p6640_p10 }
  0x45   : > { %p6646_p13 = pnand %p6644_p12, %p6641_p11 }
  0x47   : > { %6649 = shalt.err (!%p6646_p13)
}
  0x48   : > { %s6650_s22 = scalar_lea.vmem %s7116_s26, 512  ;;  %p6658_p7 = scmp.lt.s32.totalorder %s7116_s26, %s7116_s26 }
  0x49   : > { %p6651_p0 = scmp.ne.s32.totalorder %s7116_s26, %s6650_s22  ;;  %p6659_p9 = scmp.lt.s32.totalorder %s6650_s22, %s6650_s22 }
  0x4b   : > { %p6653_p2 = pnand %p6651_p0, %p7128_p8  ;;  %p6660_p4 = por %p6659_p9, %p6658_p7 }
  0x4d   : > { %p6654_p5 = pneg %p6653_p2 }
  0x4f   : > { %p6661_p10 = pnand %p6660_p4, %p6654_p5 }
  0x51   : > { %6664 = shalt.err (!%p6661_p10)
}
  0x52   : > { %5985 = dma.hbm_to_vmem [thread:$0]  (!%p7112_p6), %s8391_s5, 512, %s7116_s26, [#allocation12], %s8347_s30, %s8347_s30, %s8349_s12  }
  0x53   : > { %s8392_s7 = sld [smem:[#allocation45_spill]] }
  0x59   : > { %s6665_s14 = scalar_lea.hbm %s8392_s7, 16 }
  0x5a   : > { %p6666_p11 = scmp.ne.s32.totalorder %s8392_s7, %s6665_s14  ;;  %p6672_p0 = scmp.lt.u32.totalorder %s6665_s14, %s8392_s7 }
  0x5c   : > { %p6668_p12 = pnand %p6666_p11, %p7128_p8 }
  0x5e   : > { %p6669_p13 = pneg %p6668_p12 }
  0x60   : > { %p6674_p2 = pnand %p6672_p0, %p6669_p13 }
  0x62   : > { %6677 = shalt.err (!%p6674_p2)
}
  0x63   : > { %s6678_s26 = scalar_lea.vmem %s7118_s29, 16  ;;  %s6685_s22 = scalar_lea.vmem %s7118_s29, 32 }
  0x64   : > { %p6679_p5 = scmp.ne.s32.totalorder %s7118_s29, %s6678_s26  ;;  %p6686_p4 = scmp.lt.s32.totalorder %s7118_s29, %s7118_s29 }
  0x65   : > { %p6687_p10 = scmp.lt.s32.totalorder %s6685_s22, %s6678_s26 }
  0x66   : > { %p6681_p7 = pnand %p6679_p5, %p7128_p8 }
  0x67   : > { %p6688_p11 = por %p6687_p10, %p6686_p4 }
  0x68   : > { %p6682_p9 = pneg %p6681_p7 }
  0x6a   : > { %p6689_p12 = pnand %p6688_p11, %p6682_p9 }
  0x6c   : > { %6692 = shalt.err (!%p6689_p12)
}
  0x6d   : > { %5991 = dma.hbm_to_vmem [thread:$0]  (!%p7112_p6), %s8392_s7, 16, %s7118_s29, [#allocation15]  }
  0x6e   : > { %s4125_s24 = sadd.s32 4294967294, %s6985_s20   ;;  %s7204_s13 = sadd.s32 1, %s6985_s20  }
  0x6f   : > { %8393 = sst [smem:[#allocation37_spill]] %s7204_s13  ;;  %s45_s14 = sadd.s32 1, %s6981_s19 }
  0x70   : > { %s42_s15 = ssub.s32 %s6985_s20, %s7204_s13  ;;  %p52_p13 = scmp.ne.s32.totalorder %s6981_s19, %s6977_s18 }
  0x71   : > { %p43_p0 = scmp.eq.s32.totalorder %s42_s15, 0  ;;  %p53_p2 = scmp.eq.s32.totalorder %s6985_s20, 0 }
  0x72   : > { %p58_p5 = scmp.ne.s32.totalorder %s6977_s18, %s6973_s17  ;;  %p281_p7 = scmp.eq.s32.totalorder %s7096_s23, 1 }
  0x73   : > { %s7216_s21 = scalar_select %p43_p0, %s6981_s19, %s45_s14  }
  0x74   : > { %p54_p9 = por %p53_p2, %p52_p13  ;;  %p7220_p4 = por %p8353_p1, %p58_p5 }
  0x75   : > { %8394 = sst [smem:[#allocation38_spill]] %s7216_s21  ;;  %p7224_p10 = por %p281_p7, %p52_p13 }
  0x76   : > { %s8395_s29 = scalar_select %p7220_p4, 1, 0 }
  0x77   : > { %s8397_s25 = scalar_select %p7224_p10, 1, 0 }
  0x78   : > { %8396 = sst [smem:[#allocation39_spill]] %s8395_s29  ;;  %p287_p11 = scmp.eq.s32.totalorder %s4125_s24, 1 }
  0x79   : > { %8398 = sst [smem:[#allocation40_spill]] %s8397_s25  ;;  %p6022_p12 = scmp.lt.s32.totalorder %s6985_s20, 2 }
  0x7a   : > { %s7230_s28 = sand.u32 1, %s6981_s19   ;;  %p7232_p3 = por %p287_p11, %p58_p5 }
  0x7b   : > { %s439_s22 = sand.u32 1, %s6985_s20   ;;  %p7237_p0 = pnand %p6022_p12, %p54_p9 }
  0x7c   : > { %s8399_s26 = scalar_select %p7232_p3, 1, 0 }
  0x7d   : > { %s8401_s10 = scalar_select %p7237_p0, 1, 0 }
  0x7e   : > { %8400 = sst [smem:[#allocation41_spill]] %s8399_s26  ;;  %s8351_s11 = sshll.u32 %s7230_s28, 8 }
  0x7f   : > { %s8352_s14 = sshll.u32 %s6985_s20, 12  ;;  %s8402_s1 = sld [smem:[#allocation42_spill]] }
  0x80   : > { %s443_s12 = scalar_lea.vmem [#allocation5], %s8351_s11  ;;  %s7254_s5 = scalar_lea.sflag [#allocation6], %s439_s22 }
  0x81   : > { %s450_s3 = sshll.u32 %s443_s12, 4  ;;  %p7260_p2 = pneg %p7237_p0  ;;  %s7252_s3 = int_to_ptr.vmem [resolvable:$true] %s450_s3 }
  0x83   : > { %s8403_s21 = scalar_select %p7260_p2, 1, 0 }
  0x85   : > { %s7248_s30 = scalar_lea.hbm %s8402_s1, %s8352_s14  ;;  %s6698_s11 = scalar_lea.hbm %s8402_s1, 8192 }
  0x86   : > { %s6693_s7 = scalar_lea.hbm %s7248_s30, 4096  ;;  %p6699_p9 = scmp.lt.u32.totalorder %s7248_s30, %s8402_s1 }
  0x87   : > { %p6694_p13 = scmp.ne.s32.totalorder %s7248_s30, %s6693_s7  ;;  %p6700_p11 = scmp.lt.u32.totalorder %s6698_s11, %s6693_s7 }
  0x88   : > { %p6702_p1 = scmp.lt.u32.totalorder %s6693_s7, %s7248_s30 }
  0x89   : > { %p6696_p5 = pnand %p7260_p2, %p6694_p13  ;;  %p6701_p12 = por %p6700_p11, %p6699_p9 }
  0x8b   : > { %p6697_p7 = pneg %p6696_p5  ;;  %p6703_p3 = por %p6702_p1, %p6701_p12 }
  0x8d   : > { %p6704_p10 = pnand %p6703_p3, %p6697_p7 }
  0x8f   : > { %6707 = shalt.err (!%p6704_p10)
}
  0x90   : > { %s6708_s22 = scalar_lea.vmem %s7252_s3, 4096  ;;  %s6992_s15 = smov [#allocation5]  }
  0x91   : > { %p6709_p13 = scmp.ne.s32.totalorder %s7252_s3, %s6708_s22  ;;  %s6713_s24 = sshll.u32 %s6992_s15, 4  ;;  %s6714_s24 = int_to_ptr.vmem [resolvable:$false] %s6713_s24 }
  0x92   : > { %s6715_s14 = scalar_lea.vmem %s6714_s24, 8192  ;;  %p6716_p6 = scmp.lt.s32.totalorder %s7252_s3, %s6714_s24 }
  0x93   : > { %p6711_p5 = pnand %p6709_p13, %p7260_p2  ;;  %p6717_p8 = scmp.lt.s32.totalorder %s6715_s14, %s6708_s22 }
  0x95   : > { %p6712_p4 = pneg %p6711_p5  ;;  %p6718_p9 = por %p6717_p8, %p6716_p6 }
  0x97   : > { %p6719_p11 = pnand %p6718_p9, %p6712_p4 }
  0x99   : > { %6722 = shalt.err (!%p6719_p11)
}
  0x9a   : > { %s8404_s7 = smov 8   ;;  %s8405_s11 = smov 128  }
  0x9b   : > { %6004 = dma.hbm_to_vmem [thread:$0]  (!%p7237_p0), %s7248_s30, 4096, %s7252_s3, %s7254_s5, %s8405_s11, %s8405_s11, %s8404_s7  }
  0x9c   : > { %s8406_s12 = sshll.u32 %s6985_s20, 12  ;;  %s8407_s24 = sshll.u32 %s7230_s28, 8 }
  0x9d   : > { %s7292_s22 = scalar_lea.hbm %s8334_s2, %s8406_s12  ;;  %s7296_s14 = scalar_lea.vmem [#allocation7], %s8407_s24 }
  0x9e   : > { %s471_s19 = sshll.u32 %s7296_s14, 4  ;;  %s6993_s13 = smov [#allocation10]   ;;  %s7386_s19 = int_to_ptr.vmem [resolvable:$true] %s471_s19 }
  0x9f   : > { %s345_s26 = sshll.u32 %s6993_s13, 4  ;;  %s6994_s17 = smov [#allocation13]   ;;  %s346_s26 = int_to_ptr.vmem [resolvable:$true] %s345_s26 }
  0xa0   : > { %s371_s25 = sshll.u32 %s6994_s17, 4  ;;  %s6723_s3 = scalar_lea.hbm %s8336_s4, 512  ;;  %s372_s25 = int_to_ptr.vmem [resolvable:$true] %s371_s25 }
  0xa1   : > { %p6724_p1 = scmp.ne.s32.totalorder %s8336_s4, %s6723_s3  ;;  %p8408_p3 = scmp.ne.s32.totalorder %s8390_s16, 0 }
  0xa2   : > { %p6730_p4 = scmp.lt.u32.totalorder %s6723_s3, %s8336_s4 }
  0xa3   : > { %p6726_p6 = pnand %p6724_p1, %p8408_p3 }
  0xa5   : > { %p6727_p8 = pneg %p6726_p6 }
  0xa7   : > { %p6732_p10 = pnand %p6730_p4, %p6727_p8 }
  0xa9   : > { %6735 = shalt.err (!%p6732_p10)
}
  0xaa   : > { %s6736_s13 = scalar_lea.vmem %s346_s26, 512  ;;  %p6744_p5 = scmp.lt.s32.totalorder %s346_s26, %s346_s26 }
  0xab   : > { %p6737_p7 = scmp.ne.s32.totalorder %s346_s26, %s6736_s13  ;;  %p6745_p9 = scmp.lt.s32.totalorder %s6736_s13, %s6736_s13 }
  0xad   : > { %p6739_p12 = pnand %p6737_p7, %p8408_p3  ;;  %p6746_p11 = por %p6745_p9, %p6744_p5 }
  0xaf   : > { %p6740_p13 = pneg %p6739_p12 }
  0xb1   : > { %p6747_p0 = pnand %p6746_p11, %p6740_p13 }
  0xb3   : > { %6750 = shalt.err (!%p6747_p0)
}
  0xb4   : > { %p8409_p1 = scmp.ne.s32.totalorder %s8388_s27, 0  ;;  %s6751_s15 = scalar_lea.hbm %s8338_s6, 512 }
  0xb5   : > { %p6752_p6 = scmp.ne.s32.totalorder %s8338_s6, %s6751_s15  ;;  %p6758_p4 = scmp.lt.u32.totalorder %s6751_s15, %s8338_s6 }
  0xb6   : > { %5982 = dma.hbm_to_vmem [thread:$0]  (!%p8409_p1), %s8336_s4, 512, %s346_s26, [#allocation9], %s8405_s11, %s8405_s11, %s8404_s7  }
  0xb7   : > { %p6754_p0 = pnand %p6752_p6, %p8408_p3 }
  0xb9   : > { %p6755_p8 = pneg %p6754_p0 }
  0xbb   : > { %p6760_p10 = pnand %p6758_p4, %p6755_p8 }
  0xbd   : > { %6763 = shalt.err (!%p6760_p10)
}
  0xbe   : > { %s6764_s12 = scalar_lea.vmem %s372_s25, 512  ;;  %p6772_p5 = scmp.lt.s32.totalorder %s372_s25, %s372_s25 }
  0xbf   : > { %p6765_p7 = scmp.ne.s32.totalorder %s372_s25, %s6764_s12  ;;  %p6773_p9 = scmp.lt.s32.totalorder %s6764_s12, %s6764_s12 }
  0xc1   : > { %p6767_p12 = pnand %p6765_p7, %p8408_p3  ;;  %p6774_p11 = por %p6773_p9, %p6772_p5 }
  0xc3   : > { %p6768_p13 = pneg %p6767_p12 }
  0xc5   : > { %p6775_p2 = pnand %p6774_p11, %p6768_p13 }
  0xc7   : > { %6778 = shalt.err (!%p6775_p2)
}
  0xc8   : > { %5988 = dma.hbm_to_vmem [thread:$0]  (!%p8409_p1), %s8338_s6, 512, %s372_s25, [#allocation12], %s8405_s11, %s8405_s11, %s8404_s7  }
  0xc9   : > { %s6995_s17 = smov [#allocation16]   ;;  %s6996_s23 = smov [#allocation17]  }
  0xca   : > { %s396_s18 = sshll.u32 %s6995_s17, 4  ;;  %s407_s29 = sshll.u32 %s6996_s23, 4  ;;  %s397_s18 = int_to_ptr.vmem [resolvable:$true] %s396_s18  ;;  %s408_s29 = int_to_ptr.vmem [resolvable:$true] %s407_s29 }
  0xcb   : > { %s6779_s3 = scalar_lea.hbm %s8340_s8, 16 }
  0xcc   : > { %p6780_p2 = scmp.ne.s32.totalorder %s8340_s8, %s6779_s3  ;;  %p6786_p8 = scmp.lt.u32.totalorder %s6779_s3, %s8340_s8 }
  0xce   : > { %p6782_p6 = pnand %p6780_p2, %p8408_p3 }
  0xd0   : > { %p6783_p0 = pneg %p6782_p6 }
  0xd2   : > { %p6788_p4 = pnand %p6786_p8, %p6783_p0 }
  0xd4   : > { %6791 = shalt.err (!%p6788_p4)
}
  0xd5   : > { %s6792_s25 = scalar_lea.vmem %s397_s18, 16  ;;  %s6799_s13 = scalar_lea.vmem %s397_s18, 32 }
  0xd6   : > { %p6793_p10 = scmp.ne.s32.totalorder %s397_s18, %s6792_s25  ;;  %p6800_p13 = scmp.lt.s32.totalorder %s397_s18, %s397_s18 }
  0xd7   : > { %p6801_p5 = scmp.lt.s32.totalorder %s6799_s13, %s6792_s25 }
  0xd8   : > { %p6795_p7 = pnand %p6793_p10, %p8408_p3 }
  0xd9   : > { %p6802_p9 = por %p6801_p5, %p6800_p13 }
  0xda   : > { %p6796_p12 = pneg %p6795_p7 }
  0xdc   : > { %p6803_p11 = pnand %p6802_p9, %p6796_p12 }
  0xde   : > { %6806 = shalt.err (!%p6803_p11)
}
  0xdf   : > { %5994 = dma.hbm_to_vmem [thread:$0]  (!%p8409_p1), %s8340_s8, 16, %s397_s18, [#allocation15]  }
  0xe0   : > { %s6807_s3 = scalar_lea.hbm %s8341_s9, 16 }
  0xe1   : > { %p6808_p2 = scmp.ne.s32.totalorder %s8341_s9, %s6807_s3  ;;  %p6814_p8 = scmp.lt.u32.totalorder %s6807_s3, %s8341_s9 }
  0xe3   : > { %p6810_p6 = pnand %p6808_p2, %p8408_p3 }
  0xe5   : > { %p6811_p0 = pneg %p6810_p6 }
  0xe7   : > { %p6816_p4 = pnand %p6814_p8, %p6811_p0 }
  0xe9   : > { %6819 = shalt.err (!%p6816_p4)
}
  0xea   : > { %s6820_s25 = scalar_lea.vmem %s408_s29, 16  ;;  %s6827_s18 = scalar_lea.vmem %s408_s29, 32 }
  0xeb   : > { %p6821_p10 = scmp.ne.s32.totalorder %s408_s29, %s6820_s25  ;;  %p6828_p13 = scmp.lt.s32.totalorder %s408_s29, %s408_s29 }
  0xec   : > { %p6829_p5 = scmp.lt.s32.totalorder %s6827_s18, %s6820_s25 }
  0xed   : > { %p6823_p7 = pnand %p6821_p10, %p8408_p3 }
  0xee   : > { %p6830_p9 = por %p6829_p5, %p6828_p13 }
  0xef   : > { %p6824_p12 = pneg %p6823_p7 }
  0xf1   : > { %p6831_p11 = pnand %p6830_p9, %p6824_p12 }
  0xf3   : > { %6834 = shalt.err (!%p6831_p11)
}
  0xf4   : > { %5997 = dma.hbm_to_vmem [thread:$0]  (!%p8409_p1), %s8341_s9, 16, %s408_s29, [#allocation18]  }
  0xf5   : > { %s4135_s16 = sshll.u32 %s7230_s28, 4  ;;  %s4384_s23 = sshll.u32 %s6985_s20, 8 }
  0xf6   : > { %s7382_s3 = scalar_lea.hbm %s8332_s0, %s4384_s23  ;;  %s422_s27 = scalar_lea.vmem [#allocation2], %s4135_s16 }
  0xf7   : > { %s429_s30 = sshll.u32 %s422_s27, 4  ;;  %s419_s1 = scalar_lea.sflag [#allocation3], %s7230_s28  ;;  %s7388_s30 = int_to_ptr.vmem [resolvable:$true] %s429_s30 }
  0xf8   : > { %s6835_s29 = scalar_lea.hbm %s7382_s3, 256  ;;  %p8410_p1 = scmp.ne.s32.totalorder %s8403_s21, 0 }
  0xf9   : > { %p6836_p3 = scmp.ne.s32.totalorder %s7382_s3, %s6835_s29  ;;  %s6840_s14 = scalar_lea.hbm %s8332_s0, 512 }
  0xfa   : > { %p6841_p0 = scmp.lt.u32.totalorder %s7382_s3, %s8332_s0  ;;  %p6842_p8 = scmp.lt.u32.totalorder %s6840_s14, %s6835_s29 }
  0xfb   : > { %p6838_p2 = pnand %p6836_p3, %p8410_p1  ;;  %p6844_p10 = scmp.lt.u32.totalorder %s6835_s29, %s7382_s3 }
  0xfc   : > { %p6843_p4 = por %p6842_p8, %p6841_p0 }
  0xfd   : > { %p6839_p6 = pneg %p6838_p2 }
  0xfe   : > { %p6845_p7 = por %p6844_p10, %p6843_p4 }
 0x100   : > { %p6846_p12 = pnand %p6845_p7, %p6839_p6 }
 0x102   : > { %6849 = shalt.err (!%p6846_p12)
}
 0x103   : > { %s6850_s13 = scalar_lea.vmem %s7388_s30, 256  ;;  %s6997_s17 = smov [#allocation2]  }
 0x104   : > { %p6851_p13 = scmp.ne.s32.totalorder %s7388_s30, %s6850_s13  ;;  %s6855_s16 = sshll.u32 %s6997_s17, 4  ;;  %s6856_s16 = int_to_ptr.vmem [resolvable:$false] %s6855_s16 }
 0x105   : > { %s6857_s23 = scalar_lea.vmem %s6856_s16, 512  ;;  %p6858_p11 = scmp.lt.s32.totalorder %s7388_s30, %s6856_s16 }
 0x106   : > { %p6853_p5 = pnand %p6851_p13, %p8410_p1  ;;  %p6859_p3 = scmp.lt.s32.totalorder %s6857_s23, %s6850_s13 }
 0x108   : > { %p6854_p9 = pneg %p6853_p5  ;;  %p6860_p2 = por %p6859_p3, %p6858_p11 }
 0x10a   : > { %p6861_p0 = pnand %p6860_p2, %p6854_p9 }
 0x10c   : > { %6864 = shalt.err (!%p6861_p0)
}
 0x10d   : > { %p8411_p6 = scmp.ne.s32.totalorder %s8401_s10, 0  ;;  %s6865_s15 = scalar_lea.hbm %s7292_s22, 4096 }
 0x10e   : > { %p6866_p8 = scmp.ne.s32.totalorder %s7292_s22, %s6865_s15  ;;  %s6870_s29 = scalar_lea.hbm %s8334_s2, 8192 }
 0x10f   : > { %6001 = dma.hbm_to_vmem [thread:$0]  (!%p8411_p6), %s7382_s3, 256, %s7388_s30, %s419_s1, %s8405_s11, %s8405_s11, %s8404_s7  }
 0x110   : > { %p6868_p4 = pnand %p6866_p8, %p8410_p1  ;;  %p6871_p7 = scmp.lt.u32.totalorder %s7292_s22, %s8334_s2 }
 0x111   : > { %p6872_p12 = scmp.lt.u32.totalorder %s6870_s29, %s6865_s15  ;;  %p6874_p5 = scmp.lt.u32.totalorder %s6865_s15, %s7292_s22 }
 0x112   : > { %p6869_p10 = pneg %p6868_p4 }
 0x113   : > { %p6873_p13 = por %p6872_p12, %p6871_p7 }
 0x115   : > { %p6875_p9 = por %p6874_p5, %p6873_p13 }
 0x117   : > { %p6876_p11 = pnand %p6875_p9, %p6869_p10 }
 0x119   : > { %6879 = shalt.err (!%p6876_p11)
}
 0x11a   : > { %s6880_s28 = scalar_lea.vmem %s7386_s19, 4096  ;;  %s6998_s3 = smov [#allocation7]  }
 0x11b   : > { %p6881_p3 = scmp.ne.s32.totalorder %s7386_s19, %s6880_s28  ;;  %s6885_s30 = sshll.u32 %s6998_s3, 4  ;;  %s6886_s30 = int_to_ptr.vmem [resolvable:$false] %s6885_s30 }
 0x11c   : > { %s6887_s1 = scalar_lea.vmem %s6886_s30, 8192  ;;  %p6888_p8 = scmp.lt.s32.totalorder %s7386_s19, %s6886_s30 }
 0x11d   : > { %p6883_p2 = pnand %p6881_p3, %p8410_p1  ;;  %p6889_p4 = scmp.lt.s32.totalorder %s6887_s1, %s6880_s28 }
 0x11f   : > { %p6884_p0 = pneg %p6883_p2  ;;  %p6890_p7 = por %p6889_p4, %p6888_p8 }
 0x121   : > { %p6891_p12 = pnand %p6890_p7, %p6884_p0 }
 0x123   : > { %6894 = shalt.err (!%p6891_p12)
}
 0x124   : > { %6007 = dma.hbm_to_vmem [thread:$0]  (!%p8411_p6), %s7292_s22, 4096, %s7386_s19, %s7254_s5, %s8405_s11, %s8405_s11, %s8404_s7  }
 0x125   : > { %s8412_s21 = sld [smem:[#allocation36_spill]] }
 0x12b   : > { %p8413_p1 = scmp.ne.s32.totalorder %s8412_s21, 0 }
 0x12c   : > { %s8414_s14 = sld [smem:[#allocation33_spill]] (!%p8413_p1)  ;;  %s8415_s25 = sld [smem:[#allocation39_spill]] (!%p8413_p1) }
 0x12d   : > { %483 = sbr.rel (%p8413_p1) target bundleno = 4159 (0x103f), region = 60 }
 0x132   : > { %s7445_s18 = sand.u32 (!%p8413_p1), 1, %s8414_s14   ;;  %p8416_p10 = scmp.ne.s32.totalorder (!%p8413_p1), %s8415_s25, 0 }
 0x133   : > { %s4145_s13 = sshll.u32 (!%p8413_p1), %s7445_s18, 4  ;;  %s486_s17 = scalar_lea.sflag (!%p8413_p1), [#allocation3], %s7445_s18 }
 0x134   : > { %s7451_s10 = scalar_lea.vmem [#allocation2], %s4145_s13 }
 0x135   : > { %6940 = dma.done.wait (%p8416_p10), %s486_s17, 256  }
 0x136   : > { %6942 = vsyncadd (%p8416_p10), %s486_s17, 4294967040  ;;  %s8417_s5 = sld [smem:[#allocation35_spill]]  ;;  %s4146_s7 = sshll.u32 %s7445_s18, 8 }
 0x137   : > { %s7459_s22 = scalar_lea.vmem [#allocation5], %s4146_s7 }
 0x13c   : > { %s494_s19 = sand.u32 1, %s8417_s5  }
 0x13d   : > { %s495_s11 = scalar_lea.sflag [#allocation6], %s494_s19 }
 0x13e   : > { %6944 = dma.done.wait (%p8416_p10), %s495_s11, 8192  }
 0x13f   : > { %6946 = vsyncadd (%p8416_p10), %s495_s11, 4294959104  ;;  %s7465_s16 = scalar_lea.vmem [#allocation7], %s4146_s7  ;;  %p8418_p6 = scmp.eq.s32.totalorder %s8417_s5, 0 }
 0x141   : > { %6948 = dma.done.wait (%p8418_p6), [#allocation9], 1024   ;;  %p8419_p13 = pmov %p8418_p6 }
 0x142   : > { %p8420_p5 = pmov %p8418_p6 }
 0x143   : > { %6950 = vsyncadd (%p8419_p13), [#allocation9], 4294966272 }
 0x144   : > { %6952 = dma.done.wait (%p8420_p5), [#allocation12], 1024   ;;  %p8421_p9 = pmov %p8420_p5 }
 0x145   : > { %p8422_p11 = pmov %p8420_p5 }
 0x146   : > { %6954 = vsyncadd (%p8421_p9), [#allocation12], 4294966272 }
 0x147   : > { %6956 = dma.done.wait (%p8422_p11), [#allocation15], 32   ;;  %p8423_p3 = pmov %p8420_p5 }
 0x149   : > { %6958 = vsyncadd (%p8423_p3), [#allocation15], 4294967264  ;;  %p8424_p2 = pmov %p8423_p3 }
 0x14b   : > { %6960 = dma.done.wait (%p8424_p2), [#allocation18], 16   ;;  %p8425_p0 = pmov %p8424_p2 }
 0x14c   : > { %vm664_vm0 = vcmask 261120   ;;  %v746_v0 = vld [vmem:[#allocation10] sm:$0xff]  ;;  %v747_v1 = vld [vmem:[#allocation10 + $0x8] sm:$0xff]  ;;  %v748_v2 = vld [vmem:[#allocation10 + $0x10] sm:$0xff]  ;;  %v6999_v46 = vmov 0.0|0.0   ;;  %vm7000_vm1 = vmmov 0  }
 0x14d   : > { %6962 = vsyncadd (%p8425_p0), [#allocation18], 4294967280  ;;  %v5462_v3 = vpack.c.bf16 %v747_v1, %v746_v0  ;;  %v749_v4 = vld [vmem:[#allocation10 + $0x18] sm:$0xff]  ;;  %v596_v5 = vld [vmem:[%s7459_s22] sm:$0xff]  ;;  %vm1396_vm2 = vcmask 64512   ;;  %s7002_s23 = smov 120  }
 0x14e   : > { %v5466_v6 = vpack.c.bf16 %v749_v4, %v748_v2  ;;  %4770 = vmatprep.mubr.msk.f32.mxu1 %vm664_vm0, %v596_v5  ;;  %v597_v7 = vld [vmem:[%s7459_s22 + $0x8] sm:$0xff]  ;;  %v598_v8 = vld [vmem:[%s7459_s22 + $0x10] sm:$0xff]  ;;  %v660_v9 = vld [vmem:[#allocation8] sm:$0xff]  ;;  %s4156_s15 = sshll.u32 %s7445_s18, 6  ;;  %s7003_s27 = smov 112  }
 0x14f   : > { %5463 = vmatprep.subr.bf16.mxu1 %v5462_v3  ;;  %v661_v10 = vld [vmem:[#allocation8 + $0x8] sm:$0xff]  ;;  %v662_v12 = vld [vmem:[#allocation8 + $0x10] sm:$0xff]  ;;  %v663_v13 = vld [vmem:[#allocation8 + $0x18] sm:$0xff]  ;;  %s7813_s24 = scalar_lea.vmem [#allocation20], %s4156_s15  ;;  %s7004_s29 = smov 104  }
 0x150   : > { %5465 = vmatpush3.bf16.msra.mxu1 %v5462_v3  ;;  %v5454_v11 = vpack.c.bf16 %v661_v10, %v660_v9  ;;  %v5458_v14 = vpack.c.bf16 %v663_v13, %v662_v12  ;;  %v594_v15 = vld [vmem:[%s7451_s10] sm:$0xff]  ;;  %v599_v16 = vld [vmem:[%s7459_s22 + $0x18] sm:$0xff]  ;;  %v601_v18 = vld [vmem:[%s7459_s22 + $0x28] sm:$0xff]  ;;  %s8428_s12 = sld [smem:[#allocation40_spill]]  ;;  %s4387_s26 = sshll.u32 %s8417_s5, 8 }
 0x151   : > { %5467 = vmatprep.subr.bf16.mxu1 %v5466_v6  ;;  %v600_v17 = vld [vmem:[%s7459_s22 + $0x20] sm:$0xff]  ;;  %4759 = vmatprep.mubr.msk.f32.mxu0 %vm664_vm0, %v594_v15  ;;  %v602_v19 = vld [vmem:[%s7459_s22 + $0x30] sm:$0xff]  ;;  %v595_v20 = vld [vmem:[%s7451_s10 + $0x8] sm:$0xff]  ;;  %s581_s28 = scalar_lea.vmem [#allocation19], %s4145_s13  ;;  %s8429_s21 = sld [smem:[#allocation46_spill]] }
 0x152   : > { %5455 = vmatprep.subr.bf16.mxu0 %v5454_v11  ;;  %v603_v21 = vld [vmem:[%s7459_s22 + $0x38] sm:$0xff]  ;;  %v604_v22 = vld [vmem:[%s7459_s22 + $0x40] sm:$0xff]  ;;  %v605_v23 = vld [vmem:[%s7459_s22 + $0x48] sm:$0xff]  ;;  %s3865_s3 = sshll.u32 %s581_s28, 4  ;;  %s3847_s25 = scalar_lea.sflag [#allocation4], %s7445_s18  ;;  %s8266_s3 = int_to_ptr.vmem [resolvable:$true] %s3865_s3 }
 0x153   : > { %5457 = vmatpush3.bf16.msra.mxu0 %v5454_v11  ;;  %v606_v24 = vld [vmem:[%s7459_s22 + $0x50] sm:$0xff]  ;;  %v607_v25 = vld [vmem:[%s7459_s22 + $0x58] sm:$0xff]  ;;  %v608_v26 = vld [vmem:[%s7459_s22 + $0x60] sm:$0xff]  ;;  %s6895_s13 = scalar_lea.vmem %s8266_s3, 256  ;;  %s7005_s17 = smov [#allocation19]  }
 0x154   : > { %5469 = vmatpush3.bf16.msra.mxu1 %v5466_v6  ;;  %5459 = vmatprep.subr.bf16.mxu0 %v5458_v14  ;;  %v609_v27 = vld [vmem:[%s7459_s22 + $0x68] sm:$0xff]  ;;  %v610_v28 = vld [vmem:[%s7459_s22 + $0x70] sm:$0xff]  ;;  %v611_v29 = vld [vmem:[%s7459_s22 + $0x78] sm:$0xff]  ;;  %v7001_v6 = vmov 0.0   ;;  %p6896_p8 = scmp.ne.s32.totalorder %s8266_s3, %s6895_s13 }
 0x155   : > { %v612_v30 = vld [vmem:[%s7459_s22 + $0x80] sm:$0xff]  ;;  %v613_v31 = vld [vmem:[%s7459_s22 + $0x88] sm:$0xff]  ;;  %v614_v32 = vld [vmem:[%s7459_s22 + $0x90] sm:$0xff]  ;;  %5478 = vmatprep.subr.bf16.mxu1 %v6999_v46 }
 0x156   : > { %v615_v33 = vld [vmem:[%s7459_s22 + $0x98] sm:$0xff]  ;;  %v616_v34 = vld [vmem:[%s7459_s22 + $0xa0] sm:$0xff]  ;;  %v617_v35 = vld [vmem:[%s7459_s22 + $0xa8] sm:$0xff]  ;;  %p8430_p4 = scmp.ne.s32.totalorder %s8428_s12, 0 }
 0x157   : > { %4771 = vmatmul.mubr.msk.f32.vlgmr.msra.gmra.mrb[0].mxu1 %vm664_vm0, %v597_v7  ;;  %5461 = vmatpush3.bf16.msra.mxu0 %v5458_v14  ;;  %v618_v36 = vld [vmem:[%s7459_s22 + $0xb0] sm:$0xff]  ;;  %v619_v37 = vld [vmem:[%s7459_s22 + $0xb8] sm:$0xff]  ;;  %v620_v38 = vld [vmem:[%s7459_s22 + $0xc0] sm:$0xff]  ;;  %s8264_s14 = scalar_lea.hbm %s8429_s21, %s4387_s26 }
 0x158   : > { %4773 = vmatprep.mubr.msk.f32.mxu1 %vm664_vm0, %v598_v8  ;;  %v621_v39 = vld [vmem:[%s7459_s22 + $0xc8] sm:$0xff]  ;;  %v622_v40 = vld [vmem:[%s7459_s22 + $0xd0] sm:$0xff]  ;;  %v623_v41 = vld [vmem:[%s7459_s22 + $0xd8] sm:$0xff]  ;;  %p6897_p7 = pnand %p6896_p8, %p8430_p4 }
 0x159   : > { %v624_v42 = vld [vmem:[%s7459_s22 + $0xe0] sm:$0xff]  ;;  %v625_v43 = vld [vmem:[%s7459_s22 + $0xe8] sm:$0xff]  ;;  %v626_v44 = vld [vmem:[%s7459_s22 + $0xf0] sm:$0xff] }
 0x15a   : > { %4760 = vmatmul.mubr.msk.f32.vlgmr.msra.gmra.mrb[0].mxu0 %vm664_vm0, %v595_v20  ;;  %v627_v45 = vld [vmem:[%s7459_s22 + $0xf8] sm:$0xff]  ;;  %v1071_v47 = vld [vmem:[#allocation11] sm:$0xff]  ;;  %v1072_v48 = vld [vmem:[#allocation11 + $0x8] sm:$0xff]  ;;  %p6898_p12 = pneg %p6897_p7 }
 0x15b   : > { %4774 = vmatmul.mubr.msk.f32.gmra.mrb[2].mxu1 %vm664_vm0, %v599_v16  ;;  %v5470_v49 = vpack.c.bf16 %v1072_v48, %v1071_v47  ;;  %v1073_v50 = vld [vmem:[#allocation11 + $0x10] sm:$0xff]  ;;  %v1074_v51 = vld [vmem:[#allocation11 + $0x18] sm:$0xff]  ;;  %v628_v53 = vld [vmem:[%s7465_s16] sm:$0xff] }
 0x15c   : > { %4776 = vmatprep.mubr.msk.f32.mxu1 %vm664_vm0, %v600_v17  ;;  %v5474_v52 = vpack.c.bf16 %v1074_v51, %v1073_v50  ;;  %4826 = vmatprep.mubr.msk.f32.mxu0 %vm664_vm0, %v628_v53  ;;  %v629_v54 = vld [vmem:[%s7465_s16 + $0x8] sm:$0xff]  ;;  %v630_v55 = vld [vmem:[%s7465_s16 + $0x10] sm:$0xff]  ;;  %v631_v56 = vld [vmem:[%s7465_s16 + $0x18] sm:$0xff] }
 0x15d   : > { %5471 = vmatprep.subr.bf16.mxu0 %v5470_v49  ;;  %v632_v57 = vld [vmem:[%s7465_s16 + $0x20] sm:$0xff]  ;;  %v633_v58 = vld [vmem:[%s7465_s16 + $0x28] sm:$0xff]  ;;  %v634_v59 = vld [vmem:[%s7465_s16 + $0x30] sm:$0xff] }
 0x15e   : > { %5473 = vmatpush3.bf16.msra.mxu0 %v5470_v49  ;;  %v635_v60 = vld [vmem:[%s7465_s16 + $0x38] sm:$0xff]  ;;  %v636_v61 = vld [vmem:[%s7465_s16 + $0x40] sm:$0xff]  ;;  %v637_v62 = vld [vmem:[%s7465_s16 + $0x48] sm:$0xff] }
 0x15f   : > { %4777 = vmatmul.mubr.msk.f32.gmra.mrb[4].mxu1 %vm664_vm0, %v601_v18  ;;  %5475 = vmatprep.subr.bf16.mxu0 %v5474_v52  ;;  %v638_v63 = vld [vmem:[%s7465_s16 + $0x50] sm:$0xff]  ;;  %v639_v0 = vld [vmem:[%s7465_s16 + $0x58] sm:$0xff]  ;;  %v640_v1 = vld [vmem:[%s7465_s16 + $0x60] sm:$0xff] }
 0x160   : > { %4779 = vmatprep.mubr.msk.f32.mxu1 %vm664_vm0, %v602_v19  ;;  %v641_v2 = vld [vmem:[%s7465_s16 + $0x68] sm:$0xff]  ;;  %v642_v3 = vld [vmem:[%s7465_s16 + $0x70] sm:$0xff]  ;;  %v643_v4 = vld [vmem:[%s7465_s16 + $0x78] sm:$0xff] }
 0x161   : > { %v644_v5 = vld [vmem:[%s7465_s16 + $0x80] sm:$0xff]  ;;  %v645_v7 = vld [vmem:[%s7465_s16 + $0x88] sm:$0xff]  ;;  %v646_v8 = vld [vmem:[%s7465_s16 + $0x90] sm:$0xff] }
 0x162   : > { %5477 = vmatpush3.bf16.msra.mxu0 %v5474_v52  ;;  %v647_v9 = vld [vmem:[%s7465_s16 + $0x98] sm:$0xff]  ;;  %v648_v10 = vld [vmem:[%s7465_s16 + $0xa0] sm:$0xff]  ;;  %v649_v11 = vld [vmem:[%s7465_s16 + $0xa8] sm:$0xff] }
 0x163   : > { %4780 = vmatmul.mubr.msk.f32.gmra.mrb[6].mxu1 %vm664_vm0, %v603_v21  ;;  %5510 = vmatprep.subr.bf16.mxu0 %v6999_v46  ;;  %v650_v12 = vld [vmem:[%s7465_s16 + $0xb0] sm:$0xff]  ;;  %v651_v13 = vld [vmem:[%s7465_s16 + $0xb8] sm:$0xff]  ;;  %v652_v14 = vld [vmem:[%s7465_s16 + $0xc0] sm:$0xff] }
 0x164   : > { %4782 = vmatprep.mubr.msk.f32.mxu1 %vm664_vm0, %v604_v22  ;;  %v653_v15 = vld [vmem:[%s7465_s16 + $0xc8] sm:$0xff]  ;;  %v654_v16 = vld [vmem:[%s7465_s16 + $0xd0] sm:$0xff]  ;;  %v655_v17 = vld [vmem:[%s7465_s16 + $0xd8] sm:$0xff] }
 0x165   : > { %4827 = vmatmul.mubr.msk.f32.vlgmr.msra.gmra.mrb[2].mxu0 %vm664_vm0, %v629_v54  ;;  %v656_v18 = vld [vmem:[%s7465_s16 + $0xe0] sm:$0xff]  ;;  %v657_v19 = vld [vmem:[%s7465_s16 + $0xe8] sm:$0xff]  ;;  %v658_v20 = vld [vmem:[%s7465_s16 + $0xf0] sm:$0xff] }
 0x166   : > { %4829 = vmatprep.mubr.msk.f32.mxu0 %vm664_vm0, %v630_v55  ;;  %v659_v21 = vld [vmem:[%s7465_s16 + $0xf8] sm:$0xff]  ;;  %vm7623_vm3 = vmpackc.low %vm1396_vm2, %vm1396_vm2 }
 0x167   : > { %4783 = vmatmul.mubr.msk.f32.gmra.mrb[8].mxu1 %vm664_vm0, %v605_v23 }
 0x168   : > { %4785 = vmatprep.mubr.msk.f32.mxu1 %vm664_vm0, %v606_v24 }
 0x169   : > { %4830 = vmatmul.mubr.msk.f32.gmra.mrb[4].mxu0 %vm664_vm0, %v631_v56 }
 0x16a   : > { %4832 = vmatprep.mubr.msk.f32.mxu0 %vm664_vm0, %v632_v57 }
 0x16b   : > { %4786 = vmatmul.mubr.msk.f32.gmra.mrb[10].mxu1 %vm664_vm0, %v607_v25 }
 0x16c   : > { %4788 = vmatprep.mubr.msk.f32.mxu1 %vm664_vm0, %v608_v26 }
 0x16d   : > { %4833 = vmatmul.mubr.msk.f32.gmra.mrb[6].mxu0 %vm664_vm0, %v633_v58 }
 0x16e   : > { %4835 = vmatprep.mubr.msk.f32.mxu0 %vm664_vm0, %v634_v59 }
 0x16f   : > { %4789 = vmatmul.mubr.msk.f32.gmra.mrb[12].mxu1 %vm664_vm0, %v609_v27 }
 0x170   : > { %4791 = vmatprep.mubr.msk.f32.mxu1 %vm664_vm0, %v610_v28 }
 0x171   : > { %4836 = vmatmul.mubr.msk.f32.gmra.mrb[8].mxu0 %vm664_vm0, %v635_v60 }
 0x172   : > { %4838 = vmatprep.mubr.msk.f32.mxu0 %vm664_vm0, %v636_v61 }
 0x173   : > { %4792 = vmatmul.mubr.msk.f32.gmra.mrb[14].mxu1 %vm664_vm0, %v611_v29 }
 0x174   : > { %4794 = vmatprep.mubr.msk.f32.mxu1 %vm664_vm0, %v612_v30 }
 0x175   : > { %4839 = vmatmul.mubr.msk.f32.gmra.mrb[10].mxu0 %vm664_vm0, %v637_v62 }
 0x176   : > { %4841 = vmatprep.mubr.msk.f32.mxu0 %vm664_vm0, %v638_v63 }
 0x177   : > { %4795 = vmatmul.mubr.msk.f32.gmra.mrb[16].mxu1 %vm664_vm0, %v613_v31 }
 0x178   : > { %4797 = vmatprep.mubr.msk.f32.mxu1 %vm664_vm0, %v614_v32 }
 0x179   : > { %4842 = vmatmul.mubr.msk.f32.gmra.mrb[12].mxu0 %vm664_vm0, %v639_v0 }
 0x17a   : > { %4844 = vmatprep.mubr.msk.f32.mxu0 %vm664_vm0, %v640_v1 }
 0x17b   : > { %4798 = vmatmul.mubr.msk.f32.gmra.mrb[18].mxu1 %vm664_vm0, %v615_v33 }
 0x17c   : > { %4800 = vmatprep.mubr.msk.f32.mxu1 %vm664_vm0, %v616_v34 }
 0x17d   : > { %4845 = vmatmul.mubr.msk.f32.gmra.mrb[14].mxu0 %vm664_vm0, %v641_v2 }
 0x17e   : > { %4847 = vmatprep.mubr.msk.f32.mxu0 %vm664_vm0, %v642_v3 }
 0x17f   : > { %4801 = vmatmul.mubr.msk.f32.gmra.mrb[20].mxu1 %vm664_vm0, %v617_v35 }
 0x180   : > { %4803 = vmatprep.mubr.msk.f32.mxu1 %vm664_vm0, %v618_v36 }
 0x181   : > { %4848 = vmatmul.mubr.msk.f32.gmra.mrb[16].mxu0 %vm664_vm0, %v643_v4 }
 0x182   : > { %4850 = vmatprep.mubr.msk.f32.mxu0 %vm664_vm0, %v644_v5 }
 0x183   : > { %4804 = vmatmul.mubr.msk.f32.gmra.mrb[22].mxu1 %vm664_vm0, %v619_v37 }
 0x184   : > { %4806 = vmatprep.mubr.msk.f32.mxu1 %vm664_vm0, %v620_v38 }
 0x185   : > { %4851 = vmatmul.mubr.msk.f32.gmra.mrb[18].mxu0 %vm664_vm0, %v645_v7 }
 0x186   : > { %4853 = vmatprep.mubr.msk.f32.mxu0 %vm664_vm0, %v646_v8 }
 0x187   : > { %4807 = vmatmul.mubr.msk.f32.gmra.mrb[24].mxu1 %vm664_vm0, %v621_v39 }
 0x188   : > { %4809 = vmatprep.mubr.msk.f32.mxu1 %vm664_vm0, %v622_v40 }
 0x189   : > { %4854 = vmatmul.mubr.msk.f32.gmra.mrb[20].mxu0 %vm664_vm0, %v647_v9 }
 0x18a   : > { %4856 = vmatprep.mubr.msk.f32.mxu0 %vm664_vm0, %v648_v10 }
 0x18b   : > { %4810 = vmatmul.mubr.msk.f32.gmra.mrb[26].mxu1 %vm664_vm0, %v623_v41 }
 0x18c   : > { %4812 = vmatprep.mubr.msk.f32.mxu1 %vm664_vm0, %v624_v42 }
 0x18d   : > { %4857 = vmatmul.mubr.msk.f32.gmra.mrb[22].mxu0 %vm664_vm0, %v649_v11 }
 0x18e   : > { %4859 = vmatprep.mubr.msk.f32.mxu0 %vm664_vm0, %v650_v12 }
 0x18f   : > { %4813 = vmatmul.mubr.msk.f32.gmra.mrb[28].mxu1 %vm664_vm0, %v625_v43 }
 0x190   : > { %4815 = vmatprep.mubr.msk.f32.mxu1 %vm664_vm0, %v626_v44 }
 0x191   : > { %4860 = vmatmul.mubr.msk.f32.gmra.mrb[24].mxu0 %vm664_vm0, %v651_v13 }
 0x192   : > { %4862 = vmatprep.mubr.msk.f32.mxu0 %vm664_vm0, %v652_v14 }
 0x193   : > { %4816 = vmatmul.mubr.msk.f32.gmra.mrb[30].mxu1 %vm664_vm0, %v627_v45 }
 0x194   : > { %4906 = vmatprep.mubr.msk.f32.mxu1 %vm7000_vm1, %v7001_v6 }
 0x195   : > { %4863 = vmatmul.mubr.msk.f32.gmra.mrb[26].mxu0 %vm664_vm0, %v653_v15 }
 0x196   : > { %4865 = vmatprep.mubr.msk.f32.mxu0 %vm664_vm0, %v654_v16 }
 0x199   : > { %4866 = vmatmul.mubr.msk.f32.gmra.mrb[28].mxu0 %vm664_vm0, %v655_v17 }
 0x19a   : > { %4868 = vmatprep.mubr.msk.f32.mxu0 %vm664_vm0, %v656_v18 }
 0x19d   : > { %4869 = vmatmul.mubr.msk.f32.gmra.mrb[30].mxu0 %vm664_vm0, %v657_v19 }
 0x19e   : > { %4871 = vmatprep.mubr.msk.f32.mxu0 %vm664_vm0, %v658_v20 }
 0x1a1   : > { %4872 = vmatmul.mubr.msk.f32.gmra.mrb[32].mxu0 %vm664_vm0, %v659_v21 }
 0x1a2   : > { %4941 = vmatprep.mubr.msk.f32.mxu0 %vm7000_vm1, %v7001_v6 }
 0x22a   : > { %v4772_v22 = vpop.f32.mrb[0].mxu1 }
 0x22b   : > { %v912_v23 = vpop.f32.mrb[1].mxu1 }
 0x22c   : > { %v5479_v25 = vpack.c.bf16 %v4772_v22, %v912_v23  ;;  %v7627_v26 = vpack.i.bf16 %v4772_v22, %v912_v23 }
 0x22d   : > { %v7634_v33 = vpop.f32.mrb[0].mxu0 }
 0x22e   : > { %v4775_v27 = vpop.f32.mrb[2].mxu1  ;;  %5481 = vmatpush3.bf16.xpose.msk.msra.mxu1 %vm7623_vm3, %v5479_v25  ;;  %v7636_v35 = vpop.f32.mrb[1].mxu0 }
 0x22f   : > { %v922_v28 = vpop.f32.mrb[3].mxu1  ;;  %5482 = vmatprep.subr.bf16.mxu1 %v6999_v46 }
 0x230   : > { %v5483_v29 = vpack.c.bf16 %v4775_v27, %v922_v28  ;;  %v7632_v30 = vpack.i.bf16 %v4775_v27, %v922_v28 }
 0x232   : > { %v4778_v31 = vpop.f32.mrb[4].mxu1 }
 0x233   : > { %v932_v32 = vpop.f32.mrb[5].mxu1 }
 0x234   : > { %v5487_v34 = vpack.c.bf16 %v4778_v31, %v932_v32  ;;  %v7638_v36 = vpack.i.bf16 %v4778_v31, %v932_v32 }
 0x236   : > { %v4781_v37 = vpop.f32.mrb[6].mxu1  ;;  %5485 = vmatpush3.bf16.xpose.msk.msra.mxu1 %vm7623_vm3, %v5483_v29 }
 0x237   : > { %v942_v38 = vpop.f32.mrb[7].mxu1  ;;  %5486 = vmatprep.subr.bf16.mxu1 %v6999_v46 }
 0x238   : > { %v5491_v39 = vpack.c.bf16 %v4781_v37, %v942_v38  ;;  %v7643_v40 = vpack.i.bf16 %v4781_v37, %v942_v38  ;;  %v4828_v29 = vpop.f32.mrb[2].mxu0 }
 0x239   : > { %v1237_v31 = vpop.f32.mrb[3].mxu0 }
 0x23a   : > { %v4784_v41 = vpop.f32.mrb[8].mxu1  ;;  %v7723_v32 = vpack.i.bf16 %v4828_v29, %v1237_v31 }
 0x23b   : > { %v952_v42 = vpop.f32.mrb[9].mxu1 }
 0x23c   : > { %v5495_v43 = vpack.c.bf16 %v4784_v41, %v952_v42  ;;  %v7645_v44 = vpack.i.bf16 %v4784_v41, %v952_v42  ;;  %v4831_v37 = vpop.f32.mrb[4].mxu0 }
 0x23d   : > { %v1247_v38 = vpop.f32.mrb[5].mxu0 }
 0x23e   : > { %v4787_v45 = vpop.f32.mrb[10].mxu1  ;;  %5489 = vmatpush3.bf16.xpose.msk.msra.mxu1 %vm7623_vm3, %v5487_v34  ;;  %v5543_v34 = vpack.c.bf16 %v4828_v29, %v1237_v31  ;;  %v5546_v41 = vpack.c.bf16 %v4831_v37, %v1247_v38 }
 0x23f   : > { %v962_v47 = vpop.f32.mrb[11].mxu1  ;;  %5490 = vmatprep.subr.bf16.mxu1 %v6999_v46 }
 0x240   : > { %v5499_v48 = vpack.c.bf16 %v4787_v45, %v962_v47  ;;  %v7650_v49 = vpack.i.bf16 %v4787_v45, %v962_v47  ;;  %v4834_v42 = vpop.f32.mrb[6].mxu0 }
 0x242   : > { %v4790_v50 = vpop.f32.mrb[12].mxu1 }
 0x243   : > { %v972_v51 = vpop.f32.mrb[13].mxu1 }
 0x244   : > { %v5503_v52 = vpack.c.bf16 %v4790_v50, %v972_v51  ;;  %v7652_v53 = vpack.i.bf16 %v4790_v50, %v972_v51 }
 0x246   : > { %v4793_v54 = vpop.f32.mrb[14].mxu1  ;;  %5493 = vmatpush3.bf16.xpose.msk.msra.mxu1 %vm7623_vm3, %v5491_v39  ;;  %v7726_v39 = vpack.i.bf16 %v4831_v37, %v1247_v38 }
 0x247   : > { %v982_v55 = vpop.f32.mrb[15].mxu1  ;;  %5494 = vmatprep.subr.bf16.mxu1 %v6999_v46 }
 0x248   : > { %v5507_v56 = vpack.c.bf16 %v4793_v54, %v982_v55  ;;  %v7657_v57 = vpack.i.bf16 %v4793_v54, %v982_v55 }
 0x24a   : > { %v4796_v58 = vpop.f32.mrb[16].mxu1 }
 0x24b   : > { %v992_v59 = vpop.f32.mrb[17].mxu1 }
 0x24c   : > { %v5511_v60 = vpack.c.bf16 %v4796_v58, %v992_v59  ;;  %v7659_v61 = vpack.i.bf16 %v4796_v58, %v992_v59 }
 0x24e   : > { %5497 = vmatpush3.bf16.xpose.msk.msra.mxu1 %vm7623_vm3, %v5495_v43  ;;  %6093 = vrot.lane.b32.xlu1 %v7659_v61, %s7002_s23  ;;  %v4799_v62 = vpop.f32.mrb[18].mxu1  ;;  %v1257_v43 = vpop.f32.mrb[7].mxu0 }
 0x24f   : > { %5513 = vmatpush3.bf16.xpose.msk.msra.mxu0 %vm7623_vm3, %v5511_v60  ;;  %v1002_v63 = vpop.f32.mrb[19].mxu1  ;;  %5498 = vmatprep.subr.bf16.mxu1 %v6999_v46  ;;  %v7729_v45 = vpack.i.bf16 %v4834_v42, %v1257_v43  ;;  %v5549_v47 = vpack.c.bf16 %v4834_v42, %v1257_v43 }
 0x250   : > { %v5515_v0 = vpack.c.bf16 %v4799_v62, %v1002_v63  ;;  %5514 = vmatprep.subr.bf16.mxu0 %v6999_v46  ;;  %v7669_v1 = vpack.i.bf16 %v4799_v62, %v1002_v63 }
 0x252   : > { %6098 = vrot.lane.b32.xlu1 %v7632_v30, %s7002_s23  ;;  %v4802_v2 = vpop.f32.mrb[20].mxu1 }
 0x253   : > { %v1012_v3 = vpop.f32.mrb[21].mxu1 }
 0x254   : > { %v5519_v4 = vpack.c.bf16 %v4802_v2, %v1012_v3  ;;  %v7673_v5 = vpack.i.bf16 %v4802_v2, %v1012_v3 }
 0x256   : > { %5501 = vmatpush3.bf16.xpose.msk.msra.mxu1 %vm7623_vm3, %v5499_v48  ;;  %v4805_v7 = vpop.f32.mrb[22].mxu1  ;;  %v4837_v48 = vpop.f32.mrb[8].mxu0 }
 0x257   : > { %5517 = vmatpush3.bf16.xpose.msk.msra.mxu0 %vm7623_vm3, %v5515_v0  ;;  %5502 = vmatprep.subr.bf16.mxu1 %v6999_v46  ;;  %v1022_v8 = vpop.f32.mrb[23].mxu1  ;;  %v1267_v50 = vpop.f32.mrb[9].mxu0 }
 0x258   : > { %5518 = vmatprep.subr.bf16.mxu0 %v6999_v46  ;;  %v5523_v9 = vpack.c.bf16 %v4805_v7, %v1022_v8  ;;  %v7681_v10 = vpack.i.bf16 %v4805_v7, %v1022_v8  ;;  %v7732_v51 = vpack.i.bf16 %v4837_v48, %v1267_v50  ;;  %v4840_v54 = vpop.f32.mrb[10].mxu0 }
 0x259   : > { %v1277_v55 = vpop.f32.mrb[11].mxu0 }
 0x25a   : > { %v4808_v11 = vpop.f32.mrb[24].mxu1  ;;  %v5555_v58 = vpack.c.bf16 %v4840_v54, %v1277_v55  ;;  %v4843_v59 = vpop.f32.mrb[12].mxu0 }
 0x25b   : > { %v1032_v12 = vpop.f32.mrb[25].mxu1  ;;  %v1287_v60 = vpop.f32.mrb[13].mxu0 }
 0x25c   : > { %v5527_v13 = vpack.c.bf16 %v4808_v11, %v1032_v12  ;;  %v7683_v14 = vpack.i.bf16 %v4808_v11, %v1032_v12  ;;  %v7738_v62 = vpack.i.bf16 %v4843_v59, %v1287_v60  ;;  %v5558_v63 = vpack.c.bf16 %v4843_v59, %v1287_v60  ;;  %v4846_v0 = vpop.f32.mrb[14].mxu0 }
 0x25d   : > { %v1297_v2 = vpop.f32.mrb[15].mxu0 }
 0x25e   : > { %5505 = vmatpush3.bf16.xpose.msk.msra.mxu1 %vm7623_vm3, %v5503_v52  ;;  %v4811_v15 = vpop.f32.mrb[26].mxu1  ;;  %v5552_v52 = vpack.c.bf16 %v4837_v48, %v1267_v50  ;;  %v7741_v3 = vpack.i.bf16 %v4846_v0, %v1297_v2  ;;  %v4849_v7 = vpop.f32.mrb[16].mxu0 }
 0x25f   : > { %5521 = vmatpush3.bf16.xpose.msk.msra.mxu0 %vm7623_vm3, %v5519_v4  ;;  %5506 = vmatprep.subr.bf16.mxu1 %v6999_v46  ;;  %v1042_v16 = vpop.f32.mrb[27].mxu1  ;;  %v5561_v4 = vpack.c.bf16 %v4846_v0, %v1297_v2  ;;  %v1307_v8 = vpop.f32.mrb[17].mxu0 }
 0x260   : > { %5522 = vmatprep.subr.bf16.mxu0 %v6999_v46  ;;  %v5531_v17 = vpack.c.bf16 %v4811_v15, %v1042_v16  ;;  %v7691_v18 = vpack.i.bf16 %v4811_v15, %v1042_v16  ;;  %v5564_v11 = vpack.c.bf16 %v4849_v7, %v1307_v8  ;;  %v4852_v12 = vpop.f32.mrb[18].mxu0 }
 0x262   : > { %v4814_v19 = vpop.f32.mrb[28].mxu1 }
 0x263   : > { %v1052_v20 = vpop.f32.mrb[29].mxu1 }
 0x264   : > { %v5535_v21 = vpack.c.bf16 %v4814_v19, %v1052_v20  ;;  %v7693_v22 = vpack.i.bf16 %v4814_v19, %v1052_v20 }
 0x266   : > { %5509 = vmatpush3.bf16.xpose.msk.msra.mxu1 %vm7623_vm3, %v5507_v56  ;;  %v4817_v23 = vpop.f32.mrb[30].mxu1  ;;  %v7735_v56 = vpack.i.bf16 %v4840_v54, %v1277_v55 }
 0x267   : > { %5525 = vmatpush3.bf16.xpose.msk.msra.mxu0 %vm7623_vm3, %v5523_v9  ;;  %v1062_v25 = vpop.f32.mrb[31].mxu1  ;;  %5542 = vmatprep.subr.bf16.mxu1 %v6999_v46  ;;  %v7744_v9 = vpack.i.bf16 %v4849_v7, %v1307_v8  ;;  %v1639_v7 = vlaneseq }
 0x268   : > { %5526 = vmatprep.subr.bf16.mxu0 %v6999_v46  ;;  %v5539_v27 = vpack.c.bf16 %v4817_v23, %v1062_v25  ;;  %v7701_v28 = vpack.i.bf16 %v4817_v23, %v1062_v25 }
 0x269   : > { %v7771_v8 = vand.u32 127, %v1639_v7 }
 0x26b   : > { %vm1641_vm4 = vcmp.lt.s32.totalorder %v7771_v8, 8 }
 0x26d   : > { %4907 = vmatmul.mubr.msk.f32.vlgmr.msra.gmra.mrb[32].mxu1 %vm1396_vm2, %v7636_v35 }
 0x26e   : > { %4976 = vmatprep.mubr.msk.f32.mxu1 %vm7000_vm1, %v7001_v6  ;;  %5544 = vmatpush3.bf16.msra.mxu1 %v5543_v34 }
 0x26f   : > { %5529 = vmatpush3.bf16.xpose.msk.msra.mxu0 %vm7623_vm3, %v5527_v13  ;;  %5545 = vmatprep.subr.bf16.mxu1 %v6999_v46  ;;  %v1317_v13 = vpop.f32.mrb[19].mxu0 }
 0x270   : > { %5530 = vmatprep.subr.bf16.mxu0 %v6999_v46  ;;  %v7747_v15 = vpack.i.bf16 %v4852_v12, %v1317_v13  ;;  %v5567_v16 = vpack.c.bf16 %v4852_v12, %v1317_v13 }
 0x272   : > { %5547 = vmatpush3.bf16.msra.mxu1 %v5546_v41 }
 0x273   : > { %5548 = vmatprep.subr.bf16.mxu1 %v6999_v46 }
 0x276   : > { %5550 = vmatpush3.bf16.msra.mxu1 %v5549_v47 }
 0x277   : > { %5533 = vmatpush3.bf16.xpose.msk.msra.mxu0 %vm7623_vm3, %v5531_v17  ;;  %5551 = vmatprep.subr.bf16.mxu1 %v6999_v46  ;;  %v4855_v17 = vpop.f32.mrb[20].mxu0 }
 0x278   : > { %5534 = vmatprep.subr.bf16.mxu0 %v6999_v46  ;;  %v1327_v19 = vpop.f32.mrb[21].mxu0 }
 0x279   : > { %v7750_v20 = vpack.i.bf16 %v4855_v17, %v1327_v19  ;;  %v4858_v23 = vpop.f32.mrb[22].mxu0 }
 0x27a   : > { %5553 = vmatpush3.bf16.msra.mxu1 %v5552_v52  ;;  %v1337_v25 = vpop.f32.mrb[23].mxu0 }
 0x27b   : > { %5554 = vmatprep.subr.bf16.mxu1 %v6999_v46  ;;  %v5573_v29 = vpack.c.bf16 %v4858_v23, %v1337_v25  ;;  %v4861_v31 = vpop.f32.mrb[24].mxu0 }
 0x27c   : > { %v1347_v34 = vpop.f32.mrb[25].mxu0 }
 0x27d   : > { %v7756_v37 = vpack.i.bf16 %v4861_v31, %v1347_v34  ;;  %v5576_v38 = vpack.c.bf16 %v4861_v31, %v1347_v34  ;;  %v4864_v41 = vpop.f32.mrb[26].mxu0 }
 0x27e   : > { %5556 = vmatpush3.bf16.msra.mxu1 %v5555_v58  ;;  %v1357_v42 = vpop.f32.mrb[27].mxu0 }
 0x27f   : > { %5537 = vmatpush3.bf16.xpose.msk.msra.mxu0 %vm7623_vm3, %v5535_v21  ;;  %5557 = vmatprep.subr.bf16.mxu1 %v6999_v46  ;;  %v5570_v21 = vpack.c.bf16 %v4855_v17, %v1327_v19  ;;  %v7759_v43 = vpack.i.bf16 %v4864_v41, %v1357_v42  ;;  %v5579_v47 = vpack.c.bf16 %v4864_v41, %v1357_v42  ;;  %v4867_v48 = vpop.f32.mrb[28].mxu0 }
 0x280   : > { %5538 = vmatprep.subr.bf16.mxu0 %v6999_v46  ;;  %v1367_v50 = vpop.f32.mrb[29].mxu0 }
 0x281   : > { %v7762_v52 = vpack.i.bf16 %v4867_v48, %v1367_v50  ;;  %v5582_v54 = vpack.c.bf16 %v4867_v48, %v1367_v50  ;;  %v4870_v55 = vpop.f32.mrb[30].mxu0 }
 0x282   : > { %5559 = vmatpush3.bf16.msra.mxu1 %v5558_v63  ;;  %v1377_v58 = vpop.f32.mrb[31].mxu0 }
 0x283   : > { %5560 = vmatprep.subr.bf16.mxu1 %v6999_v46  ;;  %v7765_v59 = vpack.i.bf16 %v4870_v55, %v1377_v58  ;;  %v5585_v60 = vpack.c.bf16 %v4870_v55, %v1377_v58  ;;  %v4873_v63 = vpop.f32.mrb[32].mxu0 }
 0x284   : > { %v1387_v0 = vpop.f32.mrb[33].mxu0 }
 0x285   : > { %v7768_v2 = vpack.i.bf16 %v4873_v63, %v1387_v0 }
 0x286   : > { %5562 = vmatpush3.bf16.msra.mxu1 %v5561_v4  ;;  %v5588_v4 = vpack.c.bf16 %v4873_v63, %v1387_v0 }
 0x287   : > { %5541 = vmatpush3.bf16.xpose.msk.msra.mxu0 %vm7623_vm3, %v5539_v27  ;;  %5563 = vmatprep.subr.bf16.mxu1 %v6999_v46  ;;  %v7753_v27 = vpack.i.bf16 %v4858_v23, %v1337_v25 }
 0x288   : > { %5566 = vmatprep.subr.bf16.mxu0 %v6999_v46 }
 0x28a   : > { %5565 = vmatpush3.bf16.msra.mxu1 %v5564_v11 }
 0x28b   : > { %5590 = vmatprep.subr.bf16.mxu1 %v6999_v46 }
 0x28e   : > { %4942 = vmatmul.mubr.msk.f32.vlgmr.msra.gmra.mrb[34].mxu0 %vm1396_vm2, %v7634_v33 }
 0x28f   : > { %5011 = vmatprep.mubr.msk.f32.mxu0 %vm7000_vm1, %v7001_v6  ;;  %5568 = vmatpush3.bf16.msra.mxu0 %v5567_v16 }
 0x290   : > { %5569 = vmatprep.subr.bf16.mxu0 %v6999_v46 }
 0x293   : > { %5571 = vmatpush3.bf16.msra.mxu0 %v5570_v21 }
 0x294   : > { %5572 = vmatprep.subr.bf16.mxu0 %v6999_v46 }
 0x297   : > { %5574 = vmatpush3.bf16.msra.mxu0 %v5573_v29 }
 0x298   : > { %5575 = vmatprep.subr.bf16.mxu0 %v6999_v46 }
 0x29b   : > { %5577 = vmatpush3.bf16.msra.mxu0 %v5576_v38 }
 0x29c   : > { %5578 = vmatprep.subr.bf16.mxu0 %v6999_v46 }
 0x29f   : > { %5580 = vmatpush3.bf16.msra.mxu0 %v5579_v47 }
 0x2a0   : > { %5581 = vmatprep.subr.bf16.mxu0 %v6999_v46 }
 0x2a3   : > { %5583 = vmatpush3.bf16.msra.mxu0 %v5582_v54 }
 0x2a4   : > { %5584 = vmatprep.subr.bf16.mxu0 %v6999_v46 }
 0x2a7   : > { %5586 = vmatpush3.bf16.msra.mxu0 %v5585_v60 }
 0x2a8   : > { %5587 = vmatprep.subr.bf16.mxu0 %v6999_v46 }
 0x2ab   : > { %5589 = vmatpush3.bf16.msra.mxu0 %v5588_v4 }
 0x2ac   : > { %5622 = vmatprep.subr.bf16.mxu0 %v6999_v46 }
 0x2c0   : > { %v6094_v42 = vpop.permute.xlu1 %6093 }
 0x2c4   : > { %v6099_v47 = vpop.permute.xlu1 %6098 }
 0x2c5   : > { %v6101_v0 = vunpack.i.h.bf16 %v6099_v47  ;;  %v6100_v4 = vunpack.i.l.bf16 %v6099_v47  ;;  %v6095_v47 = vunpack.i.l.bf16 %v6094_v42 }
 0x2c7   : > { %v5595_v7 = vpack.c.bf16 %v6101_v0, %v6100_v4 }
 0x340   : > { %v1514_v11 = vpop.f32.mrb[32].mxu1 }
 0x341   : > { %v1642_v12 = vsel %vm1641_vm4, %v1514_v11, -1e+30  ;;  %v4908_v13 = vpop.f32.mrb[33].mxu1 }
 0x342   : > { %1644 = vmax.xlane.f32.xlu0 %v1642_v12 }
 0x361   : > { %v1635_v16 = vpop.f32.mrb[34].mxu0 }
 0x362   : > { %v4943_v17 = vpop.f32.mrb[35].mxu0  ;;  %v1643_v19 = vsel %vm1641_vm4, %v1635_v16, -1e+30 }
 0x363   : > { %1646 = vmax.xlane.f32.xlu0 %v1643_v19 }
 0x379   : > { %6088 = vrot.lane.b32.xlu0 %v7627_v26, %s7002_s23 }
 0x37d   : > { %6108 = vrot.lane.b32.xlu0 %v7638_v36, %s7002_s23 }
 0x381   : > { %6118 = vrot.lane.b32.xlu0 %v7643_v40, %s7002_s23 }
 0x385   : > { %6128 = vrot.lane.b32.xlu0 %v7645_v44, %s7002_s23 }
 0x389   : > { %6138 = vrot.lane.b32.xlu0 %v7650_v49, %s7002_s23 }
 0x38d   : > { %6148 = vrot.lane.b32.xlu0 %v7652_v53, %s7002_s23 }
 0x391   : > { %6158 = vrot.lane.b32.xlu0 %v7657_v57, %s7002_s23 }
 0x395   : > { %1805 = vrot.lane.b32.xlu0 %v7636_v35, %s7002_s23 }
 0x3cf   : > { %v1645_v21 = vpop.xlane.xlu0 %1644 }
 0x3d0   : > { %v1648_v23 = vsub.f32 %v1642_v12, %v1645_v21 }
 0x3d2   : > { %v1650_v25 = vmul.f32 1.442695, %v1648_v23 }
 0x3d4   : > { %6567 = vpow2.f32 %v1650_v25 }
 0x3de   : > { %v6568_v29 = vpop.eup %6567 }
 0x3df   : > { %1654 = vadd.xlane.f32.xlu1 %v6568_v29 }
 0x3f0   : > { %v1647_v31 = vpop.xlane.xlu0 %1646 }
 0x3f1   : > { %v1649_v34 = vsub.f32 %v1643_v19, %v1647_v31 }
 0x3f3   : > { %v1652_v38 = vmul.f32 1.442695, %v1649_v34 }
 0x3f4   : > { %v6089_v50 = vpop.permute.xlu0 %6088 }
 0x3f5   : > { %6569 = vpow2.f32 %v1652_v38  ;;  %v6091_v54 = vunpack.i.h.bf16 %v6089_v50  ;;  %v6090_v55 = vunpack.i.l.bf16 %v6089_v50  ;;  %v6096_v38 = vunpack.i.h.bf16 %v6094_v42 }
 0x3f7   : > { %v5591_v63 = vpack.c.bf16 %v6091_v54, %v6090_v55  ;;  %v5623_v55 = vpack.c.bf16 %v6096_v38, %v6095_v47 }
 0x3f8   : > { %v6109_v11 = vpop.permute.xlu0 %6108 }
 0x3f9   : > { %v6111_v12 = vunpack.i.h.bf16 %v6109_v11  ;;  %v6110_v13 = vunpack.i.l.bf16 %v6109_v11 }
 0x3fb   : > { %v5599_v16 = vpack.c.bf16 %v6111_v12, %v6110_v13 }
 0x3fc   : > { %v6119_v17 = vpop.permute.xlu0 %6118 }
 0x3fd   : > { %v6121_v19 = vunpack.i.h.bf16 %v6119_v17  ;;  %v6120_v21 = vunpack.i.l.bf16 %v6119_v17 }
 0x3ff   : > { %v6570_v41 = vpop.eup %6569  ;;  %v5603_v25 = vpack.c.bf16 %v6121_v19, %v6120_v21 }
 0x400   : > { %1656 = vadd.xlane.f32.xlu1 %v6570_v41 }
 0x411   : > { %6103 = vrot.lane.b32.xlu1 %v7669_v1, %s7002_s23 }
 0x415   : > { %6113 = vrot.lane.b32.xlu1 %v7673_v5, %s7002_s23 }
 0x419   : > { %6123 = vrot.lane.b32.xlu1 %v7681_v10, %s7002_s23 }
 0x41d   : > { %6133 = vrot.lane.b32.xlu1 %v7683_v14, %s7002_s23 }
 0x421   : > { %6143 = vrot.lane.b32.xlu1 %v7691_v18, %s7002_s23 }
 0x425   : > { %6153 = vrot.lane.b32.xlu1 %v7693_v22, %s7002_s23 }
 0x429   : > { %6163 = vrot.lane.b32.xlu1 %v7701_v28, %s7002_s23 }
 0x42d   : > { %1943 = vrot.lane.b32.xlu1 %v7634_v33, %s7002_s23 }
 0x431   : > { %6173 = vrot.lane.b32.xlu1 %v7747_v15, %s7002_s23 }
 0x46c   : > { %v1655_v48 = vpop.xlane.xlu1 %1654 }
 0x46d   : > { %6571 = vrcp.f32 %v1655_v48 }
 0x477   : > { %v6572_v58 = vpop.eup %6571 }
 0x478   : > { %v1659_v60 = vmul.f32 %v6572_v58, %v6568_v29  ;;  %v6129_v29 = vpop.permute.xlu0 %6128 }
 0x479   : > { %v6131_v31 = vunpack.i.h.bf16 %v6129_v29  ;;  %v6130_v34 = vunpack.i.l.bf16 %v6129_v29 }
 0x47a   : > { %1662 = vst [vmem:[%s7813_s24] sm:$0xff] %v1659_v60  ;;  %4977 = vmatmul.mubr.f32.vlgmr.msra.gmra.mrb[34].mxu1 %v1659_v60 }
 0x47b   : > { %5593 = vmatpush3.bf16.xpose.msk.msra.mxu1 %vm7623_vm3, %v5591_v63  ;;  %5046 = vmatprep.mubr.msk.f32.mxu1 %vm7000_vm1, %v7001_v6  ;;  %v5607_v50 = vpack.c.bf16 %v6131_v31, %v6130_v34 }
 0x47c   : > { %5594 = vmatprep.subr.bf16.mxu1 %v6999_v46  ;;  %v6139_v58 = vpop.permute.xlu0 %6138 }
 0x47d   : > { %v6141_v63 = vunpack.i.h.bf16 %v6139_v58  ;;  %v6140_v0 = vunpack.i.l.bf16 %v6139_v58 }
 0x47f   : > { %v5611_v4 = vpack.c.bf16 %v6141_v63, %v6140_v0 }
 0x483   : > { %5597 = vmatpush3.bf16.xpose.msk.msra.mxu1 %vm7623_vm3, %v5595_v7  ;;  %v6149_v7 = vpop.permute.xlu0 %6148 }
 0x484   : > { %5598 = vmatprep.subr.bf16.mxu1 %v6999_v46  ;;  %v6151_v13 = vunpack.i.h.bf16 %v6149_v7 }
 0x48b   : > { %5601 = vmatpush3.bf16.xpose.msk.msra.mxu1 %vm7623_vm3, %v5599_v16  ;;  %v6150_v16 = vunpack.i.l.bf16 %v6149_v7 }
 0x48c   : > { %5602 = vmatprep.subr.bf16.mxu1 %v6999_v46 }
 0x48d   : > { %v1657_v23 = vpop.xlane.xlu1 %1656  ;;  %v5615_v21 = vpack.c.bf16 %v6151_v13, %v6150_v16 }
 0x48e   : > { %6573 = vrcp.f32 %v1657_v23  ;;  %v6159_v23 = vpop.permute.xlu0 %6158 }
 0x48f   : > { %v6161_v31 = vunpack.i.h.bf16 %v6159_v23  ;;  %v6160_v34 = vunpack.i.l.bf16 %v6159_v23 }
 0x491   : > { %v6104_v60 = vpop.permute.xlu1 %6103 }
 0x492   : > { %v6105_v42 = vunpack.i.l.bf16 %v6104_v60 }
 0x493   : > { %5605 = vmatpush3.bf16.xpose.msk.msra.mxu1 %vm7623_vm3, %v5603_v25 }
 0x494   : > { %5606 = vmatprep.subr.bf16.mxu1 %v6999_v46 }
 0x495   : > { %v6114_v12 = vpop.permute.xlu1 %6113 }
 0x496   : > { %v6116_v17 = vunpack.i.h.bf16 %v6114_v12  ;;  %v6115_v19 = vunpack.i.l.bf16 %v6114_v12 }
 0x498   : > { %v6574_v48 = vpop.eup %6573  ;;  %v5631_v25 = vpack.c.bf16 %v6116_v17, %v6115_v19 }
 0x499   : > { %v1661_v54 = vmul.f32 %v6574_v48, %v6570_v41  ;;  %v6106_v41 = vunpack.i.h.bf16 %v6104_v60  ;;  %v6124_v29 = vpop.permute.xlu1 %6123  ;;  %v5619_v48 = vpack.c.bf16 %v6161_v31, %v6160_v34  ;;  %v1806_v60 = vpop.permute.xlu0 %1805 }
 0x49a   : > { %v6126_v38 = vunpack.i.h.bf16 %v6124_v29  ;;  %v6125_v47 = vunpack.i.l.bf16 %v6124_v29 }
 0x49b   : > { %1663 = vst [vmem:[%s7813_s24 + $0x8] sm:$0xff] %v1661_v54  ;;  %5012 = vmatmul.mubr.f32.vlgmr.msra.gmra.mrb[36].mxu0 %v1661_v54  ;;  %5609 = vmatpush3.bf16.xpose.msk.msra.mxu1 %vm7623_vm3, %v5607_v50  ;;  %v5627_v11 = vpack.c.bf16 %v6106_v41, %v6105_v42 }
 0x49c   : > { %5625 = vmatpush3.bf16.xpose.msk.msra.mxu0 %vm7623_vm3, %v5623_v55  ;;  %5610 = vmatprep.subr.bf16.mxu1 %v6999_v46  ;;  %v5635_v50 = vpack.c.bf16 %v6126_v38, %v6125_v47 }
 0x49d   : > { %5626 = vmatprep.subr.bf16.mxu0 %v6999_v46  ;;  %5081 = vmatprep.mubr.msk.f32.mxu0 %vm7000_vm1, %v7001_v6  ;;  %v6134_v54 = vpop.permute.xlu1 %6133 }
 0x49e   : > { %v6136_v55 = vunpack.i.h.bf16 %v6134_v54  ;;  %v6135_v58 = vunpack.i.l.bf16 %v6134_v54 }
 0x4a0   : > { %v5639_v63 = vpack.c.bf16 %v6136_v55, %v6135_v58 }
 0x4a1   : > { %v6144_v0 = vpop.permute.xlu1 %6143 }
 0x4a2   : > { %v6146_v41 = vunpack.i.h.bf16 %v6144_v0  ;;  %v6145_v42 = vunpack.i.l.bf16 %v6144_v0 }
 0x4a3   : > { %5613 = vmatpush3.bf16.xpose.msk.msra.mxu1 %vm7623_vm3, %v5611_v4 }
 0x4a4   : > { %5629 = vmatpush3.bf16.xpose.msk.msra.mxu0 %vm7623_vm3, %v5627_v11  ;;  %5614 = vmatprep.subr.bf16.mxu1 %v6999_v46  ;;  %v5643_v7 = vpack.c.bf16 %v6146_v41, %v6145_v42 }
 0x4a5   : > { %5630 = vmatprep.subr.bf16.mxu0 %v6999_v46  ;;  %v6154_v4 = vpop.permute.xlu1 %6153 }
 0x4a6   : > { %v6156_v11 = vunpack.i.h.bf16 %v6154_v4  ;;  %v6155_v12 = vunpack.i.l.bf16 %v6154_v4 }
 0x4a8   : > { %v5647_v16 = vpack.c.bf16 %v6156_v11, %v6155_v12 }
 0x4a9   : > { %v6164_v13 = vpop.permute.xlu1 %6163 }
 0x4aa   : > { %v6166_v19 = vunpack.i.h.bf16 %v6164_v13 }
 0x4ab   : > { %5617 = vmatpush3.bf16.xpose.msk.msra.mxu1 %vm7623_vm3, %v5615_v21  ;;  %v6165_v21 = vunpack.i.l.bf16 %v6164_v13 }
 0x4ac   : > { %5633 = vmatpush3.bf16.xpose.msk.msra.mxu0 %vm7623_vm3, %v5631_v25  ;;  %5618 = vmatprep.subr.bf16.mxu1 %v6999_v46 }
 0x4ad   : > { %5634 = vmatprep.subr.bf16.mxu0 %v6999_v46  ;;  %v1944_v17 = vpop.permute.xlu1 %1943  ;;  %v5651_v23 = vpack.c.bf16 %v6166_v19, %v6165_v21 }
 0x4b1   : > { %v6174_v25 = vpop.permute.xlu1 %6173 }
 0x4b2   : > { %v6176_v29 = vunpack.i.h.bf16 %v6174_v25  ;;  %v6175_v31 = vunpack.i.l.bf16 %v6174_v25 }
 0x4b3   : > { %5621 = vmatpush3.bf16.xpose.msk.msra.mxu1 %vm7623_vm3, %v5619_v48 }
 0x4b4   : > { %5637 = vmatpush3.bf16.xpose.msk.msra.mxu0 %vm7623_vm3, %v5635_v50  ;;  %5654 = vmatprep.subr.bf16.mxu1 %v6999_v46  ;;  %v5679_v34 = vpack.c.bf16 %v6176_v29, %v6175_v31 }
 0x4b5   : > { %5638 = vmatprep.subr.bf16.mxu0 %v6999_v46 }
 0x4ba   : > { %5047 = vmatmul.mubr.msk.f32.vlgmr.msra.gmra.mrb[36].mxu1 %vm1396_vm2, %v1806_v60 }
 0x4bb   : > { %5116 = vmatprep.mubr.msk.f32.mxu1 %vm7000_vm1, %v7001_v6 }
 0x4bc   : > { %5641 = vmatpush3.bf16.xpose.msk.msra.mxu0 %vm7623_vm3, %v5639_v63 }
 0x4bd   : > { %5642 = vmatprep.subr.bf16.mxu0 %v6999_v46 }
 0x4c4   : > { %5645 = vmatpush3.bf16.xpose.msk.msra.mxu0 %vm7623_vm3, %v5643_v7 }
 0x4c5   : > { %5646 = vmatprep.subr.bf16.mxu0 %v6999_v46 }
 0x4cc   : > { %5649 = vmatpush3.bf16.xpose.msk.msra.mxu0 %vm7623_vm3, %v5647_v16 }
 0x4cd   : > { %5650 = vmatprep.subr.bf16.mxu0 %v6999_v46 }
 0x4d4   : > { %5653 = vmatpush3.bf16.xpose.msk.msra.mxu0 %vm7623_vm3, %v5651_v23 }
 0x4d5   : > { %5678 = vmatprep.subr.bf16.mxu0 %v6999_v46 }
 0x4db   : > { %5082 = vmatmul.mubr.msk.f32.vlgmr.msra.gmra.mrb[38].mxu0 %vm1396_vm2, %v1944_v17 }
 0x4dc   : > { %5680 = vmatpush3.bf16.msra.mxu0 %v5679_v34  ;;  %5151 = vmatprep.mubr.msk.f32.mxu0 %vm7000_vm1, %v7001_v6 }
 0x4dd   : > { %5681 = vmatprep.subr.bf16.mxu0 %v6999_v46 }
 0x54d   : > { %v7876_v38 = vpop.f32.mrb[34].mxu1 }
 0x54e   : > { %v4978_v47 = vpop.f32.mrb[35].mxu1 }
 0x56e   : > { %v7878_v48 = vpop.f32.mrb[36].mxu0 }
 0x56f   : > { %v5013_v50 = vpop.f32.mrb[37].mxu0 }
 0x58d   : > { %v1939_v54 = vpop.f32.mrb[36].mxu1 }
 0x58e   : > { %v5048_v55 = vpop.f32.mrb[37].mxu1  ;;  %v2081_v58 = vsel %vm1641_vm4, %v1939_v54, -1e+30 }
 0x58f   : > { %2083 = vmax.xlane.f32.xlu0 %v2081_v58 }
 0x5a5   : > { %6168 = vrot.lane.b32.xlu0 %v7723_v32, %s7002_s23 }
 0x5a9   : > { %6178 = vrot.lane.b32.xlu0 %v7726_v39, %s7002_s23 }
 0x5ad   : > { %6188 = vrot.lane.b32.xlu0 %v7729_v45, %s7002_s23 }
 0x5ae   : > { %v2077_v60 = vpop.f32.mrb[38].mxu0 }
 0x5af   : > { %v5083_v63 = vpop.f32.mrb[39].mxu0  ;;  %v2082_v0 = vsel %vm1641_vm4, %v2077_v60, -1e+30 }
 0x5b0   : > { %2085 = vmax.xlane.f32.xlu1 %v2082_v0 }
 0x5b1   : > { %6198 = vrot.lane.b32.xlu0 %v7732_v51, %s7002_s23 }
 0x5b5   : > { %6208 = vrot.lane.b32.xlu0 %v7735_v56, %s7002_s23 }
 0x5b9   : > { %6218 = vrot.lane.b32.xlu0 %v7738_v62, %s7002_s23 }
 0x5bd   : > { %6228 = vrot.lane.b32.xlu0 %v7741_v3, %s7002_s23 }
 0x5c1   : > { %6183 = vrot.lane.b32.xlu1 %v7750_v20, %s7002_s23 }
 0x5c5   : > { %6193 = vrot.lane.b32.xlu1 %v7753_v27, %s7002_s23 }
 0x5c9   : > { %6203 = vrot.lane.b32.xlu1 %v7756_v37, %s7002_s23 }
 0x5cd   : > { %6213 = vrot.lane.b32.xlu1 %v7759_v43, %s7002_s23 }
 0x5d1   : > { %6223 = vrot.lane.b32.xlu1 %v7762_v52, %s7002_s23 }
 0x5d5   : > { %6233 = vrot.lane.b32.xlu1 %v7765_v59, %s7002_s23 }
 0x61c   : > { %v2084_v41 = vpop.xlane.xlu0 %2083 }
 0x61d   : > { %v2087_v42 = vsub.f32 %v2081_v58, %v2084_v41 }
 0x61f   : > { %v2089_v4 = vmul.f32 1.442695, %v2087_v42 }
 0x620   : > { %v6169_v7 = vpop.permute.xlu0 %6168 }
 0x621   : > { %6575 = vpow2.f32 %v2089_v4  ;;  %v6171_v11 = vunpack.i.h.bf16 %v6169_v7  ;;  %v6170_v12 = vunpack.i.l.bf16 %v6169_v7 }
 0x623   : > { %v5655_v13 = vpack.c.bf16 %v6171_v11, %v6170_v12 }
 0x624   : > { %v6179_v16 = vpop.permute.xlu0 %6178 }
 0x625   : > { %v6181_v17 = vunpack.i.h.bf16 %v6179_v16  ;;  %v6180_v19 = vunpack.i.l.bf16 %v6179_v16  ;;  %5656 = vmatpush3.bf16.msra.mxu1 %v5655_v13 }
 0x626   : > { %5657 = vmatprep.subr.bf16.mxu1 %v6999_v46 }
 0x627   : > { %v5658_v21 = vpack.c.bf16 %v6181_v17, %v6180_v19 }
 0x628   : > { %v6189_v23 = vpop.permute.xlu0 %6188 }
 0x629   : > { %v6191_v25 = vunpack.i.h.bf16 %v6189_v23  ;;  %v6190_v29 = vunpack.i.l.bf16 %v6189_v23  ;;  %5659 = vmatpush3.bf16.msra.mxu1 %v5658_v21 }
 0x62a   : > { %5660 = vmatprep.subr.bf16.mxu1 %v6999_v46 }
 0x62b   : > { %v7912_v31 = vpop.eup %6575  ;;  %v5661_v34 = vpack.c.bf16 %v6191_v25, %v6190_v29 }
 0x62c   : > { %2093 = vadd.xlane.f32.xlu0 %v7912_v31  ;;  %v6199_v47 = vpop.permute.xlu0 %6198 }
 0x62d   : > { %v6201_v50 = vunpack.i.h.bf16 %v6199_v47  ;;  %v6200_v54 = vunpack.i.l.bf16 %v6199_v47  ;;  %5662 = vmatpush3.bf16.msra.mxu1 %v5661_v34 }
 0x62e   : > { %5663 = vmatprep.subr.bf16.mxu1 %v6999_v46 }
 0x62f   : > { %v5664_v55 = vpack.c.bf16 %v6201_v50, %v6200_v54 }
 0x630   : > { %v6209_v58 = vpop.permute.xlu0 %6208 }
 0x631   : > { %v6211_v60 = vunpack.i.h.bf16 %v6209_v58  ;;  %v6210_v63 = vunpack.i.l.bf16 %v6209_v58  ;;  %5665 = vmatpush3.bf16.msra.mxu1 %v5664_v55 }
 0x632   : > { %5666 = vmatprep.subr.bf16.mxu1 %v6999_v46 }
 0x633   : > { %v5667_v41 = vpack.c.bf16 %v6211_v60, %v6210_v63 }
 0x634   : > { %v6219_v42 = vpop.permute.xlu0 %6218 }
 0x635   : > { %v6221_v4 = vunpack.i.h.bf16 %v6219_v42  ;;  %v6220_v7 = vunpack.i.l.bf16 %v6219_v42  ;;  %5668 = vmatpush3.bf16.msra.mxu1 %v5667_v41 }
 0x636   : > { %5669 = vmatprep.subr.bf16.mxu1 %v6999_v46 }
 0x637   : > { %v5670_v11 = vpack.c.bf16 %v6221_v4, %v6220_v7 }
 0x638   : > { %v6229_v12 = vpop.permute.xlu0 %6228 }
 0x639   : > { %v6231_v13 = vunpack.i.h.bf16 %v6229_v12  ;;  %v6230_v16 = vunpack.i.l.bf16 %v6229_v12  ;;  %5671 = vmatpush3.bf16.msra.mxu1 %v5670_v11 }
 0x63a   : > { %5672 = vmatprep.subr.bf16.mxu1 %v6999_v46 }
 0x63b   : > { %v5673_v17 = vpack.c.bf16 %v6231_v13, %v6230_v16 }
 0x63d   : > { %v2086_v19 = vpop.xlane.xlu1 %2085  ;;  %5674 = vmatpush3.bf16.msra.mxu1 %v5673_v17 }
 0x63e   : > { %v2088_v21 = vsub.f32 %v2082_v0, %v2086_v19  ;;  %5675 = vmatprep.subr.bf16.mxu1 %v6999_v46 }
 0x640   : > { %v2091_v23 = vmul.f32 1.442695, %v2088_v21 }
 0x641   : > { %v6184_v25 = vpop.permute.xlu1 %6183 }
 0x642   : > { %6577 = vpow2.f32 %v2091_v23  ;;  %v6186_v29 = vunpack.i.h.bf16 %v6184_v25  ;;  %v6185_v34 = vunpack.i.l.bf16 %v6184_v25  ;;  %6238 = vrot.lane.b32.xlu0 %v7744_v9, %s7002_s23 }
 0x644   : > { %v5682_v47 = vpack.c.bf16 %v6186_v29, %v6185_v34 }
 0x645   : > { %v6194_v50 = vpop.permute.xlu1 %6193 }
 0x646   : > { %v6196_v54 = vunpack.i.h.bf16 %v6194_v50  ;;  %v6195_v55 = vunpack.i.l.bf16 %v6194_v50  ;;  %5683 = vmatpush3.bf16.msra.mxu0 %v5682_v47  ;;  %6248 = vrot.lane.b32.xlu0 %v7627_v26, %s7003_s27 }
 0x647   : > { %5684 = vmatprep.subr.bf16.mxu0 %v6999_v46 }
 0x648   : > { %v5685_v0 = vpack.c.bf16 %v6196_v54, %v6195_v55 }
 0x649   : > { %v6204_v58 = vpop.permute.xlu1 %6203 }
 0x64a   : > { %v6206_v60 = vunpack.i.h.bf16 %v6204_v58  ;;  %v6205_v63 = vunpack.i.l.bf16 %v6204_v58  ;;  %5686 = vmatpush3.bf16.msra.mxu0 %v5685_v0  ;;  %6258 = vrot.lane.b32.xlu0 %v7632_v30, %s7003_s27  ;;  %v1804_v0 = vld [vmem:[#allocation13] sm:$0xff] }
 0x64b   : > { %5687 = vmatprep.subr.bf16.mxu0 %v6999_v46 }
 0x64c   : > { %v7928_v41 = vpop.eup %6577  ;;  %v5688_v42 = vpack.c.bf16 %v6206_v60, %v6205_v63 }
 0x64d   : > { %2095 = vadd.xlane.f32.xlu1 %v7928_v41  ;;  %v6214_v4 = vpop.permute.xlu1 %6213 }
 0x64e   : > { %v6216_v7 = vunpack.i.h.bf16 %v6214_v4  ;;  %v6215_v11 = vunpack.i.l.bf16 %v6214_v4  ;;  %5689 = vmatpush3.bf16.msra.mxu0 %v5688_v42  ;;  %6268 = vrot.lane.b32.xlu0 %v7638_v36, %s7003_s27 }
 0x64f   : > { %5690 = vmatprep.subr.bf16.mxu0 %v6999_v46 }
 0x650   : > { %v5691_v12 = vpack.c.bf16 %v6216_v7, %v6215_v11 }
 0x651   : > { %v6224_v13 = vpop.permute.xlu1 %6223 }
 0x652   : > { %v6226_v16 = vunpack.i.h.bf16 %v6224_v13  ;;  %v6225_v17 = vunpack.i.l.bf16 %v6224_v13  ;;  %5692 = vmatpush3.bf16.msra.mxu0 %v5691_v12  ;;  %6278 = vrot.lane.b32.xlu0 %v7643_v40, %s7003_s27 }
 0x653   : > { %5693 = vmatprep.subr.bf16.mxu0 %v6999_v46 }
 0x654   : > { %v5694_v19 = vpack.c.bf16 %v6226_v16, %v6225_v17 }
 0x655   : > { %v6234_v21 = vpop.permute.xlu1 %6233 }
 0x656   : > { %v6236_v23 = vunpack.i.h.bf16 %v6234_v21  ;;  %v6235_v25 = vunpack.i.l.bf16 %v6234_v21  ;;  %5695 = vmatpush3.bf16.msra.mxu0 %v5694_v19  ;;  %6288 = vrot.lane.b32.xlu0 %v7645_v44, %s7003_s27 }
 0x657   : > { %5696 = vmatprep.subr.bf16.mxu0 %v6999_v46 }
 0x658   : > { %v5697_v29 = vpack.c.bf16 %v6236_v23, %v6235_v25 }
 0x65a   : > { %5698 = vmatpush3.bf16.msra.mxu0 %v5697_v29  ;;  %6298 = vrot.lane.b32.xlu0 %v7650_v49, %s7003_s27 }
 0x65b   : > { %5699 = vmatprep.subr.bf16.mxu0 %v6999_v46 }
 0x65e   : > { %6243 = vrot.lane.b32.xlu1 %v7768_v2, %s7002_s23  ;;  %6308 = vrot.lane.b32.xlu0 %v7652_v53, %s7003_s27 }
 0x662   : > { %6253 = vrot.lane.b32.xlu1 %v7659_v61, %s7003_s27  ;;  %6318 = vrot.lane.b32.xlu0 %v7657_v57, %s7003_s27 }
 0x666   : > { %6263 = vrot.lane.b32.xlu1 %v7669_v1, %s7003_s27  ;;  %2535 = vrot.lane.b32.xlu0 %v7636_v35, %s7003_s27 }
 0x66a   : > { %6273 = vrot.lane.b32.xlu1 %v7673_v5, %s7003_s27 }
 0x66e   : > { %6283 = vrot.lane.b32.xlu1 %v7681_v10, %s7003_s27 }
 0x672   : > { %6293 = vrot.lane.b32.xlu1 %v7683_v14, %s7003_s27 }
 0x676   : > { %6303 = vrot.lane.b32.xlu1 %v7691_v18, %s7003_s27 }
 0x67a   : > { %6313 = vrot.lane.b32.xlu1 %v7693_v22, %s7003_s27 }
 0x67e   : > { %6323 = vrot.lane.b32.xlu1 %v7701_v28, %s7003_s27 }
 0x682   : > { %2673 = vrot.lane.b32.xlu1 %v7634_v33, %s7003_s27 }
 0x6b9   : > { %v2094_v34 = vpop.xlane.xlu0 %2093 }
 0x6ba   : > { %6579 = vrcp.f32 %v2094_v34 }
 0x6bd   : > { %v6239_v47 = vpop.permute.xlu0 %6238 }
 0x6be   : > { %v6241_v50 = vunpack.i.h.bf16 %v6239_v47  ;;  %v6240_v54 = vunpack.i.l.bf16 %v6239_v47 }
 0x6c0   : > { %v5676_v55 = vpack.c.bf16 %v6241_v50, %v6240_v54 }
 0x6c2   : > { %5677 = vmatpush3.bf16.msra.mxu1 %v5676_v55 }
 0x6c3   : > { %5159 = vmatprep.subr.mxu1 %v1804_v0 }
 0x6c4   : > { %v6580_v58 = vpop.eup %6579 }
 0x6c5   : > { %v2098_v60 = vmul.f32 %v6580_v58, %v7912_v31 }
 0x6c7   : > { %4291 = vst [vmem:[%s7813_s24 + $0x10] sm:$0xff] %v2098_v60  ;;  %5117 = vmatmul.mubr.f32.vlgmr.msra.gmra.mrb[38].mxu1 %v2098_v60 }
 0x6c8   : > { %5161 = vmatprep.mubr.msk.f32.mxu1 %vm1396_vm2, %v7876_v38  ;;  %5160 = vmatpush3.msra.mxu1 %v1804_v0 }
 0x6c9   : > { %5734 = vmatprep.subr.bf16.mxu1 %v6999_v46 }
 0x6cb   : > { %5162 = vmatmul.mubr.msk.f32.vlgmr.msra.gmra.mrb[40].mxu1 %vm1396_vm2, %v7878_v48 }
 0x6cc   : > { %5231 = vmatprep.mubr.msk.f32.mxu1 %vm7000_vm1, %v7001_v6 }
 0x6da   : > { %v2096_v63 = vpop.xlane.xlu1 %2095 }
 0x6db   : > { %6581 = vrcp.f32 %v2096_v63 }
 0x6de   : > { %v6244_v42 = vpop.permute.xlu1 %6243 }
 0x6df   : > { %v6246_v4 = vunpack.i.h.bf16 %v6244_v42  ;;  %v6245_v31 = vunpack.i.l.bf16 %v6244_v42 }
 0x6e1   : > { %v5700_v7 = vpack.c.bf16 %v6246_v4, %v6245_v31 }
 0x6e2   : > { %v6254_v11 = vpop.permute.xlu1 %6253 }
 0x6e3   : > { %v6256_v12 = vunpack.i.h.bf16 %v6254_v11  ;;  %v6255_v13 = vunpack.i.l.bf16 %v6254_v11  ;;  %5701 = vmatpush3.bf16.msra.mxu0 %v5700_v7 }
 0x6e5   : > { %v6582_v38 = vpop.eup %6581  ;;  %v5735_v16 = vpack.c.bf16 %v6256_v12, %v6255_v13 }
 0x6e6   : > { %v6264_v17 = vpop.permute.xlu1 %6263  ;;  %v2100_v19 = vmul.f32 %v6582_v38, %v7928_v41 }
 0x6e7   : > { %5737 = vmatpush3.bf16.xpose.msk.msra.mxu1 %vm7623_vm3, %v5735_v16  ;;  %v6266_v48 = vunpack.i.h.bf16 %v6264_v17  ;;  %v6265_v21 = vunpack.i.l.bf16 %v6264_v17 }
 0x6e8   : > { %4292 = vst [vmem:[%s7813_s24 + $0x18] sm:$0xff] %v2100_v19  ;;  %5152 = vmatmul.mubr.f32.vlgmr.msra.gmra.mrb[40].mxu0 %v2100_v19  ;;  %5738 = vmatprep.subr.bf16.mxu1 %v6999_v46 }
 0x6e9   : > { %v5739_v23 = vpack.c.bf16 %v6266_v48, %v6265_v21  ;;  %v2372_v48 = vld [vmem:[#allocation13 + $0x8] sm:$0xff] }
 0x6ea   : > { %v6274_v25 = vpop.permute.xlu1 %6273  ;;  %5154 = vmatprep.subr.mxu0 %v2372_v48 }
 0x6eb   : > { %v6276_v29 = vunpack.i.h.bf16 %v6274_v25  ;;  %v6275_v34 = vunpack.i.l.bf16 %v6274_v25  ;;  %5155 = vmatpush3.msra.mxu0 %v2372_v48 }
 0x6ec   : > { %5702 = vmatprep.subr.bf16.mxu0 %v6999_v46 }
 0x6ed   : > { %v5743_v47 = vpack.c.bf16 %v6276_v29, %v6275_v34  ;;  %v6249_v34 = vpop.permute.xlu0 %6248 }
 0x6ee   : > { %v6284_v41 = vpop.permute.xlu1 %6283 }
 0x6ef   : > { %5741 = vmatpush3.bf16.xpose.msk.msra.mxu1 %vm7623_vm3, %v5739_v23  ;;  %v6286_v50 = vunpack.i.h.bf16 %v6284_v41  ;;  %v6285_v54 = vunpack.i.l.bf16 %v6284_v41  ;;  %v6250_v41 = vunpack.i.l.bf16 %v6249_v34 }
 0x6f0   : > { %5742 = vmatprep.subr.bf16.mxu1 %v6999_v46 }
 0x6f1   : > { %v5747_v55 = vpack.c.bf16 %v6286_v50, %v6285_v54 }
 0x6f2   : > { %v6294_v0 = vpop.permute.xlu1 %6293 }
 0x6f3   : > { %v6296_v58 = vunpack.i.h.bf16 %v6294_v0  ;;  %v6295_v60 = vunpack.i.l.bf16 %v6294_v0 }
 0x6f5   : > { %v5751_v63 = vpack.c.bf16 %v6296_v58, %v6295_v60 }
 0x6f6   : > { %v6304_v42 = vpop.permute.xlu1 %6303 }
 0x6f7   : > { %5745 = vmatpush3.bf16.xpose.msk.msra.mxu1 %vm7623_vm3, %v5743_v47  ;;  %v6306_v4 = vunpack.i.h.bf16 %v6304_v42  ;;  %v6305_v31 = vunpack.i.l.bf16 %v6304_v42  ;;  %v6251_v47 = vunpack.i.h.bf16 %v6249_v34 }
 0x6f8   : > { %5746 = vmatprep.subr.bf16.mxu1 %v6999_v46 }
 0x6f9   : > { %v5755_v7 = vpack.c.bf16 %v6306_v4, %v6305_v31  ;;  %v5703_v50 = vpack.c.bf16 %v6251_v47, %v6250_v41 }
 0x6fa   : > { %v6314_v11 = vpop.permute.xlu1 %6313 }
 0x6fb   : > { %v6316_v12 = vunpack.i.h.bf16 %v6314_v11  ;;  %v6315_v13 = vunpack.i.l.bf16 %v6314_v11 }
 0x6fd   : > { %v5759_v38 = vpack.c.bf16 %v6316_v12, %v6315_v13 }
 0x6fe   : > { %v6324_v16 = vpop.permute.xlu1 %6323 }
 0x6ff   : > { %5749 = vmatpush3.bf16.xpose.msk.msra.mxu1 %vm7623_vm3, %v5747_v55  ;;  %v6326_v17 = vunpack.i.h.bf16 %v6324_v16  ;;  %v6325_v19 = vunpack.i.l.bf16 %v6324_v16  ;;  %v6259_v55 = vpop.permute.xlu0 %6258 }
 0x700   : > { %5750 = vmatprep.subr.bf16.mxu1 %v6999_v46  ;;  %v6261_v58 = vunpack.i.h.bf16 %v6259_v55  ;;  %v6260_v60 = vunpack.i.l.bf16 %v6259_v55 }
 0x701   : > { %v5763_v21 = vpack.c.bf16 %v6326_v17, %v6325_v19 }
 0x702   : > { %v2674_v23 = vpop.permute.xlu1 %2673 }
 0x703   : > { %v6269_v42 = vpop.permute.xlu0 %6268 }
 0x704   : > { %v6271_v4 = vunpack.i.h.bf16 %v6269_v42  ;;  %v6270_v31 = vunpack.i.l.bf16 %v6269_v42 }
 0x707   : > { %5753 = vmatpush3.bf16.xpose.msk.msra.mxu1 %vm7623_vm3, %v5751_v63  ;;  %v5707_v63 = vpack.c.bf16 %v6261_v58, %v6260_v60  ;;  %v6279_v11 = vpop.permute.xlu0 %6278 }
 0x708   : > { %5754 = vmatprep.subr.bf16.mxu1 %v6999_v46  ;;  %v6281_v12 = vunpack.i.h.bf16 %v6279_v11  ;;  %v6280_v13 = vunpack.i.l.bf16 %v6279_v11 }
 0x70b   : > { %v6289_v16 = vpop.permute.xlu0 %6288 }
 0x70c   : > { %v6291_v17 = vunpack.i.h.bf16 %v6289_v16  ;;  %v6290_v19 = vunpack.i.l.bf16 %v6289_v16 }
 0x70e   : > { %v5719_v48 = vpack.c.bf16 %v6291_v17, %v6290_v19 }
 0x70f   : > { %5757 = vmatpush3.bf16.xpose.msk.msra.mxu1 %vm7623_vm3, %v5755_v7  ;;  %v5711_v7 = vpack.c.bf16 %v6271_v4, %v6270_v31 }
 0x710   : > { %5758 = vmatprep.subr.bf16.mxu1 %v6999_v46 }
 0x717   : > { %5761 = vmatpush3.bf16.xpose.msk.msra.mxu1 %vm7623_vm3, %v5759_v38  ;;  %v5715_v38 = vpack.c.bf16 %v6281_v12, %v6280_v13 }
 0x718   : > { %5762 = vmatprep.subr.bf16.mxu1 %v6999_v46 }
 0x71f   : > { %5765 = vmatpush3.bf16.xpose.msk.msra.mxu1 %vm7623_vm3, %v5763_v21  ;;  %v6299_v21 = vpop.permute.xlu0 %6298 }
 0x720   : > { %5790 = vmatprep.subr.bf16.mxu1 %v6999_v46 }
 0x723   : > { %v6309_v34 = vpop.permute.xlu0 %6308 }
 0x724   : > { %v6311_v47 = vunpack.i.h.bf16 %v6309_v34  ;;  %v6310_v41 = vunpack.i.l.bf16 %v6309_v34 }
 0x726   : > { %5232 = vmatmul.mubr.msk.f32.vlgmr.msra.gmra.mrb[42].mxu1 %vm1396_vm2, %v2674_v23  ;;  %v6301_v23 = vunpack.i.h.bf16 %v6299_v21 }
 0x727   : > { %5301 = vmatprep.mubr.msk.f32.mxu1 %vm7000_vm1, %v7001_v6 }
 0x79a   : > { %v2234_v25 = vpop.f32.mrb[38].mxu1 }
 0x79b   : > { %v5118_v29 = vpop.f32.mrb[39].mxu1  ;;  %5156 = vmatprep.mubr.msk.f32.mxu0 %vm1396_vm2, %v2234_v25  ;;  %v6300_v25 = vunpack.i.l.bf16 %v6299_v21 }
 0x79d   : > { %v5723_v29 = vpack.c.bf16 %v6301_v23, %v6300_v25 }
 0x7bb   : > { %v2368_v54 = vpop.f32.mrb[40].mxu0 }
 0x7bc   : > { %v5153_v0 = vpop.f32.mrb[41].mxu0  ;;  %5157 = vmatmul.mubr.msk.f32.vlgmr.msra.gmra.mrb[42].mxu0 %vm1396_vm2, %v2368_v54  ;;  %v6319_v54 = vpop.permute.xlu0 %6318 }
 0x7bd   : > { %5705 = vmatpush3.bf16.xpose.msk.msra.mxu0 %vm7623_vm3, %v5703_v50  ;;  %5196 = vmatprep.mubr.msk.f32.mxu0 %vm7000_vm1, %v7001_v6  ;;  %v5727_v50 = vpack.c.bf16 %v6311_v47, %v6310_v41  ;;  %v6321_v55 = vunpack.i.h.bf16 %v6319_v54  ;;  %v6320_v0 = vunpack.i.l.bf16 %v6319_v54 }
 0x7be   : > { %5706 = vmatprep.subr.bf16.mxu0 %v6999_v46 }
 0x7bf   : > { %v5731_v58 = vpack.c.bf16 %v6321_v55, %v6320_v0 }
 0x7c0   : > { %v2536_v4 = vpop.permute.xlu0 %2535 }
 0x7c5   : > { %5709 = vmatpush3.bf16.xpose.msk.msra.mxu0 %vm7623_vm3, %v5707_v63 }
 0x7c6   : > { %5710 = vmatprep.subr.bf16.mxu0 %v6999_v46 }
 0x7cd   : > { %5713 = vmatpush3.bf16.xpose.msk.msra.mxu0 %vm7623_vm3, %v5711_v7 }
 0x7ce   : > { %5714 = vmatprep.subr.bf16.mxu0 %v6999_v46 }
 0x7d5   : > { %5717 = vmatpush3.bf16.xpose.msk.msra.mxu0 %vm7623_vm3, %v5715_v38 }
 0x7d6   : > { %5718 = vmatprep.subr.bf16.mxu0 %v6999_v46 }
 0x7dd   : > { %5721 = vmatpush3.bf16.xpose.msk.msra.mxu0 %vm7623_vm3, %v5719_v48 }
 0x7de   : > { %5722 = vmatprep.subr.bf16.mxu0 %v6999_v46 }
 0x7e5   : > { %5725 = vmatpush3.bf16.xpose.msk.msra.mxu0 %vm7623_vm3, %v5723_v29 }
 0x7e6   : > { %5726 = vmatprep.subr.bf16.mxu0 %v6999_v46 }
 0x7ed   : > { %5729 = vmatpush3.bf16.xpose.msk.msra.mxu0 %vm7623_vm3, %v5727_v50 }
 0x7ee   : > { %5730 = vmatprep.subr.bf16.mxu0 %v6999_v46 }
 0x7f5   : > { %5733 = vmatpush3.bf16.xpose.msk.msra.mxu0 %vm7623_vm3, %v5731_v58 }
 0x7f6   : > { %5766 = vmatprep.subr.bf16.mxu0 %v6999_v46 }
 0x7f9   : > { %v2807_v60 = vpop.f32.mrb[42].mxu1 }
 0x7fa   : > { %v5233_v63 = vpop.f32.mrb[43].mxu1  ;;  %v2812_v42 = vsel %vm1641_vm4, %v2807_v60, -1e+30 }
 0x7fb   : > { %2815 = vmax.xlane.f32.xlu1 %v2812_v42 }
 0x7fc   : > { %5197 = vmatmul.mubr.msk.f32.vlgmr.msra.gmra.mrb[44].mxu0 %vm1396_vm2, %v2536_v4 }
 0x7fd   : > { %5266 = vmatprep.mubr.msk.f32.mxu0 %vm7000_vm1, %v7001_v6 }
 0x80c   : > { %6333 = vrot.lane.b32.xlu1 %v7747_v15, %s7003_s27 }
 0x810   : > { %6343 = vrot.lane.b32.xlu1 %v7750_v20, %s7003_s27 }
 0x888   : > { %v2816_v31 = vpop.xlane.xlu1 %2815 }
 0x889   : > { %v2818_v7 = vsub.f32 %v2812_v42, %v2816_v31 }
 0x88b   : > { %v2821_v11 = vmul.f32 1.442695, %v2818_v7 }
 0x88c   : > { %v6334_v12 = vpop.permute.xlu1 %6333 }
 0x88d   : > { %6583 = vpow2.f32 %v2821_v11  ;;  %v6336_v13 = vunpack.i.h.bf16 %v6334_v12  ;;  %v6335_v38 = vunpack.i.l.bf16 %v6334_v12 }
 0x88f   : > { %v5791_v16 = vpack.c.bf16 %v6336_v13, %v6335_v38  ;;  %v8045_v17 = vpop.f32.mrb[42].mxu0 }
 0x890   : > { %v6344_v19 = vpop.permute.xlu1 %6343  ;;  %v8047_v48 = vpop.f32.mrb[43].mxu0 }
 0x891   : > { %v6346_v21 = vunpack.i.h.bf16 %v6344_v19  ;;  %v6345_v23 = vunpack.i.l.bf16 %v6344_v19  ;;  %5792 = vmatpush3.bf16.msra.mxu1 %v5791_v16 }
 0x892   : > { %5793 = vmatprep.subr.bf16.mxu1 %v6999_v46 }
 0x893   : > { %v5794_v25 = vpack.c.bf16 %v6346_v21, %v6345_v23 }
 0x895   : > { %5795 = vmatpush3.bf16.msra.mxu1 %v5794_v25 }
 0x896   : > { %5796 = vmatprep.subr.bf16.mxu1 %v6999_v46 }
 0x897   : > { %v6584_v29 = vpop.eup %6583 }
 0x898   : > { %2825 = vadd.xlane.f32.xlu1 %v6584_v29 }
 0x8a9   : > { %6353 = vrot.lane.b32.xlu1 %v7753_v27, %s7003_s27 }
 0x8ad   : > { %6363 = vrot.lane.b32.xlu1 %v7756_v37, %s7003_s27 }
 0x8b1   : > { %6373 = vrot.lane.b32.xlu1 %v7759_v43, %s7003_s27 }
 0x8b5   : > { %6383 = vrot.lane.b32.xlu1 %v7762_v52, %s7003_s27 }
 0x8b9   : > { %6393 = vrot.lane.b32.xlu1 %v7765_v59, %s7003_s27 }
 0x8bd   : > { %6403 = vrot.lane.b32.xlu1 %v7768_v2, %s7003_s27 }
 0x8c1   : > { %6413 = vrot.lane.b32.xlu1 %v7659_v61, %s7004_s29 }
 0x8c5   : > { %6423 = vrot.lane.b32.xlu1 %v7669_v1, %s7004_s29 }
 0x8c9   : > { %6433 = vrot.lane.b32.xlu1 %v7673_v5, %s7004_s29 }
 0x8cd   : > { %6443 = vrot.lane.b32.xlu1 %v7681_v10, %s7004_s29 }
 0x8cf   : > { %v2669_v34 = vpop.f32.mrb[44].mxu0 }
 0x8d0   : > { %v5198_v47 = vpop.f32.mrb[45].mxu0  ;;  %v2811_v41 = vsel %vm1641_vm4, %v2669_v34, -1e+30 }
 0x8d1   : > { %2813 = vmax.xlane.f32.xlu0 %v2811_v41  ;;  %6453 = vrot.lane.b32.xlu1 %v7683_v14, %s7004_s29 }
 0x8d5   : > { %6463 = vrot.lane.b32.xlu1 %v7691_v18, %s7004_s29 }
 0x8d9   : > { %6473 = vrot.lane.b32.xlu1 %v7693_v22, %s7004_s29 }
 0x8dd   : > { %6483 = vrot.lane.b32.xlu1 %v7701_v28, %s7004_s29 }
 0x8e1   : > { %3292 = vrot.lane.b32.xlu1 %v7634_v33, %s7004_s29 }
 0x8e5   : > { %6493 = vrot.lane.b32.xlu1 %v7747_v15, %s7004_s29 }
 0x8e7   : > { %6328 = vrot.lane.b32.xlu0 %v7723_v32, %s7003_s27 }
 0x8eb   : > { %6338 = vrot.lane.b32.xlu0 %v7726_v39, %s7003_s27 }
 0x8ef   : > { %6348 = vrot.lane.b32.xlu0 %v7729_v45, %s7003_s27 }
 0x8f3   : > { %6358 = vrot.lane.b32.xlu0 %v7732_v51, %s7003_s27 }
 0x8f7   : > { %6368 = vrot.lane.b32.xlu0 %v7735_v56, %s7003_s27 }
 0x8fb   : > { %6378 = vrot.lane.b32.xlu0 %v7738_v62, %s7003_s27 }
 0x8ff   : > { %6388 = vrot.lane.b32.xlu0 %v7741_v3, %s7003_s27 }
 0x925   : > { %v2826_v33 = vpop.xlane.xlu1 %2825 }
 0x926   : > { %6585 = vrcp.f32 %v2826_v33 }
 0x929   : > { %v6354_v61 = vpop.permute.xlu1 %6353 }
 0x92a   : > { %v6356_v1 = vunpack.i.h.bf16 %v6354_v61  ;;  %v6355_v5 = vunpack.i.l.bf16 %v6354_v61 }
 0x92c   : > { %v5797_v10 = vpack.c.bf16 %v6356_v1, %v6355_v5 }
 0x92d   : > { %v6364_v14 = vpop.permute.xlu1 %6363 }
 0x92e   : > { %v6366_v18 = vunpack.i.h.bf16 %v6364_v14  ;;  %v6365_v22 = vunpack.i.l.bf16 %v6364_v14  ;;  %5798 = vmatpush3.bf16.msra.mxu1 %v5797_v10 }
 0x92f   : > { %5799 = vmatprep.subr.bf16.mxu1 %v6999_v46 }
 0x930   : > { %v6586_v28 = vpop.eup %6585  ;;  %v5800_v15 = vpack.c.bf16 %v6366_v18, %v6365_v22 }
 0x931   : > { %v6374_v50 = vpop.permute.xlu1 %6373  ;;  %v2830_v54 = vmul.f32 %v6586_v28, %v6584_v29 }
 0x932   : > { %v6376_v55 = vunpack.i.h.bf16 %v6374_v50  ;;  %v6375_v0 = vunpack.i.l.bf16 %v6374_v50  ;;  %5801 = vmatpush3.bf16.msra.mxu1 %v5800_v15 }
 0x933   : > { %5802 = vmatprep.subr.bf16.mxu1 %v6999_v46  ;;  %4332 = vst [vmem:[%s7813_s24 + $0x28] sm:$0xff] %v2830_v54 }
 0x934   : > { %v5803_v58 = vpack.c.bf16 %v6376_v55, %v6375_v0 }
 0x935   : > { %v6384_v60 = vpop.permute.xlu1 %6383 }
 0x936   : > { %v6386_v63 = vunpack.i.h.bf16 %v6384_v60  ;;  %v6385_v42 = vunpack.i.l.bf16 %v6384_v60  ;;  %5804 = vmatpush3.bf16.msra.mxu1 %v5803_v58 }
 0x937   : > { %5805 = vmatprep.subr.bf16.mxu1 %v6999_v46 }
 0x938   : > { %v5806_v4 = vpack.c.bf16 %v6386_v63, %v6385_v42 }
 0x939   : > { %v6394_v31 = vpop.permute.xlu1 %6393 }
 0x93a   : > { %v6396_v7 = vunpack.i.h.bf16 %v6394_v31  ;;  %v6395_v11 = vunpack.i.l.bf16 %v6394_v31  ;;  %5807 = vmatpush3.bf16.msra.mxu1 %v5806_v4 }
 0x93b   : > { %5808 = vmatprep.subr.bf16.mxu1 %v6999_v46 }
 0x93c   : > { %v5809_v12 = vpack.c.bf16 %v6396_v7, %v6395_v11 }
 0x93d   : > { %v6404_v13 = vpop.permute.xlu1 %6403 }
 0x93e   : > { %v6406_v38 = vunpack.i.h.bf16 %v6404_v13  ;;  %v6405_v16 = vunpack.i.l.bf16 %v6404_v13  ;;  %5810 = vmatpush3.bf16.msra.mxu1 %v5809_v12 }
 0x93f   : > { %5811 = vmatprep.subr.bf16.mxu1 %v6999_v46 }
 0x940   : > { %v5812_v19 = vpack.c.bf16 %v6406_v38, %v6405_v16 }
 0x942   : > { %5813 = vmatpush3.bf16.msra.mxu1 %v5812_v19 }
 0x945   : > { %5302 = vmatmul.mubr.f32.vlgmr.msra.gmra.mrb[44].mxu1 %v2830_v54 }
 0x95e   : > { %v2814_v21 = vpop.xlane.xlu0 %2813 }
 0x95f   : > { %v2817_v23 = vsub.f32 %v2811_v41, %v2814_v21 }
 0x961   : > { %v2819_v25 = vmul.f32 1.442695, %v2817_v23 }
 0x962   : > { %v6329_v29 = vpop.permute.xlu0 %6328 }
 0x963   : > { %6587 = vpow2.f32 %v2819_v25  ;;  %v6331_v34 = vunpack.i.h.bf16 %v6329_v29  ;;  %v6330_v47 = vunpack.i.l.bf16 %v6329_v29 }
 0x965   : > { %v5767_v33 = vpack.c.bf16 %v6331_v34, %v6330_v47 }
 0x966   : > { %v6339_v61 = vpop.permute.xlu0 %6338 }
 0x967   : > { %v6341_v1 = vunpack.i.h.bf16 %v6339_v61  ;;  %v6340_v5 = vunpack.i.l.bf16 %v6339_v61  ;;  %5768 = vmatpush3.bf16.msra.mxu0 %v5767_v33 }
 0x968   : > { %5769 = vmatprep.subr.bf16.mxu0 %v6999_v46 }
 0x969   : > { %v5770_v10 = vpack.c.bf16 %v6341_v1, %v6340_v5 }
 0x96a   : > { %v6349_v14 = vpop.permute.xlu0 %6348 }
 0x96b   : > { %v6351_v18 = vunpack.i.h.bf16 %v6349_v14  ;;  %v6350_v22 = vunpack.i.l.bf16 %v6349_v14  ;;  %5771 = vmatpush3.bf16.msra.mxu0 %v5770_v10 }
 0x96c   : > { %5772 = vmatprep.subr.bf16.mxu0 %v6999_v46 }
 0x96d   : > { %v6588_v41 = vpop.eup %6587  ;;  %v5773_v28 = vpack.c.bf16 %v6351_v18, %v6350_v22 }
 0x96e   : > { %2823 = vadd.xlane.f32.xlu0 %v6588_v41  ;;  %v6359_v15 = vpop.permute.xlu0 %6358 }
 0x96f   : > { %v6361_v50 = vunpack.i.h.bf16 %v6359_v15  ;;  %v6360_v54 = vunpack.i.l.bf16 %v6359_v15  ;;  %5774 = vmatpush3.bf16.msra.mxu0 %v5773_v28 }
 0x970   : > { %5775 = vmatprep.subr.bf16.mxu0 %v6999_v46 }
 0x971   : > { %v5776_v55 = vpack.c.bf16 %v6361_v50, %v6360_v54 }
 0x972   : > { %v6369_v0 = vpop.permute.xlu0 %6368 }
 0x973   : > { %v6371_v58 = vunpack.i.h.bf16 %v6369_v0  ;;  %v6370_v60 = vunpack.i.l.bf16 %v6369_v0  ;;  %5777 = vmatpush3.bf16.msra.mxu0 %v5776_v55 }
 0x974   : > { %5778 = vmatprep.subr.bf16.mxu0 %v6999_v46 }
 0x975   : > { %v5779_v63 = vpack.c.bf16 %v6371_v58, %v6370_v60 }
 0x976   : > { %v6379_v42 = vpop.permute.xlu0 %6378 }
 0x977   : > { %v6381_v4 = vunpack.i.h.bf16 %v6379_v42  ;;  %v6380_v31 = vunpack.i.l.bf16 %v6379_v42  ;;  %5780 = vmatpush3.bf16.msra.mxu0 %v5779_v63 }
 0x978   : > { %5781 = vmatprep.subr.bf16.mxu0 %v6999_v46 }
 0x979   : > { %v5782_v7 = vpack.c.bf16 %v6381_v4, %v6380_v31 }
 0x97a   : > { %v6389_v11 = vpop.permute.xlu0 %6388 }
 0x97b   : > { %v6391_v12 = vunpack.i.h.bf16 %v6389_v11  ;;  %v6390_v13 = vunpack.i.l.bf16 %v6389_v11  ;;  %5783 = vmatpush3.bf16.msra.mxu0 %v5782_v7 }
 0x97c   : > { %5784 = vmatprep.subr.bf16.mxu0 %v6999_v46 }
 0x97d   : > { %v5785_v38 = vpack.c.bf16 %v6391_v12, %v6390_v13 }
 0x97f   : > { %5786 = vmatpush3.bf16.msra.mxu0 %v5785_v38 }
 0x980   : > { %5787 = vmatprep.subr.bf16.mxu0 %v6999_v46 }
 0x984   : > { %6398 = vrot.lane.b32.xlu0 %v7744_v9, %s7003_s27 }
 0x988   : > { %6408 = vrot.lane.b32.xlu0 %v7627_v26, %s7004_s29  ;;  %v3070_v26 = vld [vmem:[#allocation13 + $0x10] sm:$0xff] }
 0x989   : > { %5304 = vmatprep.subr.mxu1 %v3070_v26 }
 0x98a   : > { %5305 = vmatpush3.msra.mxu1 %v3070_v26  ;;  %v6414_v26 = vpop.permute.xlu1 %6413 }
 0x98b   : > { %5846 = vmatprep.subr.bf16.mxu1 %v6999_v46 }
 0x98c   : > { %6418 = vrot.lane.b32.xlu0 %v7632_v30, %s7004_s29 }
 0x990   : > { %6428 = vrot.lane.b32.xlu0 %v7638_v36, %s7004_s29 }
 0x994   : > { %6438 = vrot.lane.b32.xlu0 %v7643_v40, %s7004_s29 }
 0x998   : > { %6448 = vrot.lane.b32.xlu0 %v7645_v44, %s7004_s29 }
 0x99c   : > { %6458 = vrot.lane.b32.xlu0 %v7650_v49, %s7004_s29 }
 0x9a0   : > { %6468 = vrot.lane.b32.xlu0 %v7652_v53, %s7004_s29 }
 0x9a4   : > { %6478 = vrot.lane.b32.xlu0 %v7657_v57, %s7004_s29 }
 0x9a8   : > { %3154 = vrot.lane.b32.xlu0 %v7636_v35, %s7004_s29 }
 0x9fb   : > { %v2824_v30 = vpop.xlane.xlu0 %2823 }
 0x9fc   : > { %6589 = vrcp.f32 %v2824_v30  ;;  %v6416_v30 = vunpack.i.h.bf16 %v6414_v26 }
 0x9ff   : > { %v6399_v36 = vpop.permute.xlu0 %6398 }
 0xa00   : > { %v6401_v40 = vunpack.i.h.bf16 %v6399_v36  ;;  %v6400_v44 = vunpack.i.l.bf16 %v6399_v36  ;;  %v6415_v36 = vunpack.i.l.bf16 %v6414_v26 }
 0xa02   : > { %v5788_v49 = vpack.c.bf16 %v6401_v40, %v6400_v44  ;;  %v5847_v44 = vpack.c.bf16 %v6416_v30, %v6415_v36 }
 0xa03   : > { %v6409_v16 = vpop.permute.xlu0 %6408 }
 0xa04   : > { %5789 = vmatpush3.bf16.msra.mxu0 %v5788_v49  ;;  %v6411_v57 = vunpack.i.h.bf16 %v6409_v16  ;;  %v6410_v19 = vunpack.i.l.bf16 %v6409_v16  ;;  %v6424_v16 = vpop.permute.xlu1 %6423 }
 0xa05   : > { %5814 = vmatprep.subr.bf16.mxu0 %v6999_v46 }
 0xa06   : > { %v6590_v53 = vpop.eup %6589  ;;  %v5815_v21 = vpack.c.bf16 %v6411_v57, %v6410_v19  ;;  %v6425_v57 = vunpack.i.l.bf16 %v6424_v16 }
 0xa07   : > { %v2828_v35 = vmul.f32 %v6590_v53, %v6588_v41  ;;  %v6419_v23 = vpop.permute.xlu0 %6418  ;;  %v6426_v53 = vunpack.i.h.bf16 %v6424_v16 }
 0xa08   : > { %v6421_v25 = vunpack.i.h.bf16 %v6419_v23  ;;  %v6420_v29 = vunpack.i.l.bf16 %v6419_v23 }
 0xa09   : > { %4331 = vst [vmem:[%s7813_s24 + $0x20] sm:$0xff] %v2828_v35  ;;  %5267 = vmatmul.mubr.f32.vlgmr.msra.gmra.mrb[46].mxu0 %v2828_v35  ;;  %v5851_v19 = vpack.c.bf16 %v6426_v53, %v6425_v57  ;;  %v6434_v35 = vpop.permute.xlu1 %6433 }
 0xa0a   : > { %5341 = vmatprep.mubr.msk.f32.mxu0 %vm7000_vm1, %v7001_v6  ;;  %v5819_v34 = vpack.c.bf16 %v6421_v25, %v6420_v29  ;;  %v6435_v23 = vunpack.i.l.bf16 %v6434_v35 }
 0xa0b   : > { %v6429_v47 = vpop.permute.xlu0 %6428 }
 0xa0c   : > { %v6431_v33 = vunpack.i.h.bf16 %v6429_v47  ;;  %v6430_v61 = vunpack.i.l.bf16 %v6429_v47 }
 0xa0d   : > { %5817 = vmatpush3.bf16.xpose.msk.msra.mxu0 %vm7623_vm3, %v5815_v21  ;;  %v6436_v21 = vunpack.i.h.bf16 %v6434_v35  ;;  %v6444_v29 = vpop.permute.xlu1 %6443 }
 0xa0e   : > { %5818 = vmatprep.subr.bf16.mxu0 %v6999_v46  ;;  %v5823_v10 = vpack.c.bf16 %v6431_v33, %v6430_v61  ;;  %v6445_v47 = vunpack.i.l.bf16 %v6444_v29 }
 0xa0f   : > { %v6439_v14 = vpop.permute.xlu0 %6438  ;;  %v5855_v25 = vpack.c.bf16 %v6436_v21, %v6435_v23 }
 0xa10   : > { %v6441_v18 = vunpack.i.h.bf16 %v6439_v14  ;;  %v6440_v22 = vunpack.i.l.bf16 %v6439_v14 }
 0xa11   : > { %v6454_v61 = vpop.permute.xlu1 %6453 }
 0xa12   : > { %v5827_v41 = vpack.c.bf16 %v6441_v18, %v6440_v22 }
 0xa13   : > { %v6449_v28 = vpop.permute.xlu0 %6448 }
 0xa14   : > { %v6451_v15 = vunpack.i.h.bf16 %v6449_v28  ;;  %v6450_v50 = vunpack.i.l.bf16 %v6449_v28 }
 0xa15   : > { %5821 = vmatpush3.bf16.xpose.msk.msra.mxu0 %vm7623_vm3, %v5819_v34  ;;  %v6446_v34 = vunpack.i.h.bf16 %v6444_v29  ;;  %v6464_v14 = vpop.permute.xlu1 %6463 }
 0xa16   : > { %5822 = vmatprep.subr.bf16.mxu0 %v6999_v46  ;;  %v5831_v54 = vpack.c.bf16 %v6451_v15, %v6450_v50  ;;  %v6466_v18 = vunpack.i.h.bf16 %v6464_v14  ;;  %v6465_v22 = vunpack.i.l.bf16 %v6464_v14 }
 0xa17   : > { %v6459_v55 = vpop.permute.xlu0 %6458  ;;  %v5859_v33 = vpack.c.bf16 %v6446_v34, %v6445_v47 }
 0xa18   : > { %v3066_v1 = vpop.f32.mrb[44].mxu1  ;;  %v6461_v0 = vunpack.i.h.bf16 %v6459_v55  ;;  %v6460_v58 = vunpack.i.l.bf16 %v6459_v55  ;;  %v5867_v28 = vpack.c.bf16 %v6466_v18, %v6465_v22 }
 0xa19   : > { %v5303_v5 = vpop.f32.mrb[45].mxu1 }
 0xa1a   : > { %v5835_v60 = vpack.c.bf16 %v6461_v0, %v6460_v58  ;;  %v6455_v5 = vunpack.i.l.bf16 %v6454_v61 }
 0xa1b   : > { %v6469_v63 = vpop.permute.xlu0 %6468 }
 0xa1c   : > { %v6471_v42 = vunpack.i.h.bf16 %v6469_v63  ;;  %v6470_v4 = vunpack.i.l.bf16 %v6469_v63 }
 0xa1d   : > { %5825 = vmatpush3.bf16.xpose.msk.msra.mxu0 %vm7623_vm3, %v5823_v10 }
 0xa1e   : > { %5826 = vmatprep.subr.bf16.mxu0 %v6999_v46  ;;  %v5839_v31 = vpack.c.bf16 %v6471_v42, %v6470_v4 }
 0xa1f   : > { %v6479_v7 = vpop.permute.xlu0 %6478 }
 0xa20   : > { %v6481_v11 = vunpack.i.h.bf16 %v6479_v7  ;;  %v6480_v12 = vunpack.i.l.bf16 %v6479_v7 }
 0xa22   : > { %v5843_v13 = vpack.c.bf16 %v6481_v11, %v6480_v12 }
 0xa23   : > { %v3155_v38 = vpop.permute.xlu0 %3154 }
 0xa25   : > { %5829 = vmatpush3.bf16.xpose.msk.msra.mxu0 %vm7623_vm3, %v5827_v41  ;;  %v6474_v41 = vpop.permute.xlu1 %6473 }
 0xa26   : > { %5830 = vmatprep.subr.bf16.mxu0 %v6999_v46  ;;  %v6476_v15 = vunpack.i.h.bf16 %v6474_v41  ;;  %v6475_v50 = vunpack.i.l.bf16 %v6474_v41 }
 0xa28   : > { %v5871_v55 = vpack.c.bf16 %v6476_v15, %v6475_v50 }
 0xa2d   : > { %5833 = vmatpush3.bf16.xpose.msk.msra.mxu0 %vm7623_vm3, %v5831_v54  ;;  %v6484_v54 = vpop.permute.xlu1 %6483 }
 0xa2e   : > { %5834 = vmatprep.subr.bf16.mxu0 %v6999_v46  ;;  %v6486_v58 = vunpack.i.h.bf16 %v6484_v54 }
 0xa31   : > { %v3293_v0 = vpop.permute.xlu1 %3292 }
 0xa35   : > { %5837 = vmatpush3.bf16.xpose.msk.msra.mxu0 %vm7623_vm3, %v5835_v60  ;;  %v6485_v60 = vunpack.i.l.bf16 %v6484_v54  ;;  %v6494_v42 = vpop.permute.xlu1 %6493 }
 0xa36   : > { %5838 = vmatprep.subr.bf16.mxu0 %v6999_v46  ;;  %v6496_v4 = vunpack.i.h.bf16 %v6494_v42 }
 0xa37   : > { %v5875_v63 = vpack.c.bf16 %v6486_v58, %v6485_v60 }
 0xa3d   : > { %5841 = vmatpush3.bf16.xpose.msk.msra.mxu0 %vm7623_vm3, %v5839_v31  ;;  %v6495_v31 = vunpack.i.l.bf16 %v6494_v42 }
 0xa3e   : > { %5842 = vmatprep.subr.bf16.mxu0 %v6999_v46 }
 0xa3f   : > { %v5903_v7 = vpack.c.bf16 %v6496_v4, %v6495_v31 }
 0xa45   : > { %5845 = vmatpush3.bf16.xpose.msk.msra.mxu0 %vm7623_vm3, %v5843_v13 }
 0xa46   : > { %5878 = vmatprep.subr.bf16.mxu0 %v6999_v46 }
 0xa4c   : > { %5342 = vmatmul.mubr.msk.f32.vlgmr.msra.gmra.mrb[48].mxu0 %vm1396_vm2, %v3155_v38 }
 0xa4d   : > { %5411 = vmatprep.mubr.msk.f32.mxu0 %vm7000_vm1, %v7001_v6 }
 0xadc   : > { %v2948_v40 = vpop.f32.mrb[46].mxu0 }
 0xadd   : > { %v5268_v49 = vpop.f32.mrb[47].mxu0  ;;  %5306 = vmatprep.mubr.msk.f32.mxu1 %vm1396_vm2, %v2948_v40 }
 0xade   : > { %5307 = vmatmul.mubr.msk.f32.vlgmr.msra.gmra.mrb[40].mxu1 %vm1396_vm2, %v3066_v1  ;;  %v6456_v1 = vunpack.i.h.bf16 %v6454_v61 }
 0xadf   : > { %5849 = vmatpush3.bf16.xpose.msk.msra.mxu1 %vm7623_vm3, %v5847_v44  ;;  %5376 = vmatprep.mubr.msk.f32.mxu1 %vm7000_vm1, %v7001_v6 }
 0xae0   : > { %5850 = vmatprep.subr.bf16.mxu1 %v6999_v46  ;;  %v5863_v10 = vpack.c.bf16 %v6456_v1, %v6455_v5 }
 0xae7   : > { %5853 = vmatpush3.bf16.xpose.msk.msra.mxu1 %vm7623_vm3, %v5851_v19 }
 0xae8   : > { %5854 = vmatprep.subr.bf16.mxu1 %v6999_v46 }
 0xaef   : > { %5857 = vmatpush3.bf16.xpose.msk.msra.mxu1 %vm7623_vm3, %v5855_v25 }
 0xaf0   : > { %5858 = vmatprep.subr.bf16.mxu1 %v6999_v46 }
 0xaf7   : > { %5861 = vmatpush3.bf16.xpose.msk.msra.mxu1 %vm7623_vm3, %v5859_v33 }
 0xaf8   : > { %5862 = vmatprep.subr.bf16.mxu1 %v6999_v46 }
 0xaff   : > { %5865 = vmatpush3.bf16.xpose.msk.msra.mxu1 %vm7623_vm3, %v5863_v10 }
 0xb00   : > { %5866 = vmatprep.subr.bf16.mxu1 %v6999_v46 }
 0xb07   : > { %5869 = vmatpush3.bf16.xpose.msk.msra.mxu1 %vm7623_vm3, %v5867_v28 }
 0xb08   : > { %5870 = vmatprep.subr.bf16.mxu1 %v6999_v46 }
 0xb0f   : > { %5873 = vmatpush3.bf16.xpose.msk.msra.mxu1 %vm7623_vm3, %v5871_v55 }
 0xb10   : > { %5874 = vmatprep.subr.bf16.mxu1 %v6999_v46 }
 0xb17   : > { %5877 = vmatpush3.bf16.xpose.msk.msra.mxu1 %vm7623_vm3, %v5875_v63 }
 0xb18   : > { %5902 = vmatprep.subr.bf16.mxu1 %v6999_v46 }
 0xb1e   : > { %5377 = vmatmul.mubr.msk.f32.vlgmr.msra.gmra.mrb[46].mxu1 %vm1396_vm2, %v3293_v0 }
 0xb1f   : > { %5904 = vmatpush3.bf16.msra.mxu1 %v5903_v7  ;;  %v3288_v11 = vpop.f32.mrb[48].mxu0  ;;  %5446 = vmatprep.mubr.msk.f32.mxu1 %vm7000_vm1, %v7001_v6 }
 0xb20   : > { %v5343_v12 = vpop.f32.mrb[49].mxu0  ;;  %v3430_v13 = vsel %vm1641_vm4, %v3288_v11, -1e+30  ;;  %5905 = vmatprep.subr.bf16.mxu1 %v6999_v46 }
 0xb21   : > { %3432 = vmax.xlane.f32.xlu0 %v3430_v13 }
 0xb37   : > { %6488 = vrot.lane.b32.xlu0 %v7723_v32, %s7004_s29 }
 0xb3b   : > { %6498 = vrot.lane.b32.xlu0 %v7726_v39, %s7004_s29 }
 0xbae   : > { %v3433_v24 = vpop.xlane.xlu0 %3432 }
 0xbaf   : > { %v3436_v38 = vsub.f32 %v3430_v13, %v3433_v24 }
 0xbb1   : > { %v3438_v26 = vmul.f32 1.442695, %v3436_v38 }
 0xbb2   : > { %v6489_v30 = vpop.permute.xlu0 %6488 }
 0xbb3   : > { %6591 = vpow2.f32 %v3438_v26  ;;  %v6491_v36 = vunpack.i.h.bf16 %v6489_v30  ;;  %v6490_v6 = vunpack.i.l.bf16 %v6489_v30 }
 0xbb5   : > { %v5879_v40 = vpack.c.bf16 %v6491_v36, %v6490_v6 }
 0xbb6   : > { %v6499_v44 = vpop.permute.xlu0 %6498 }
 0xbb7   : > { %v6501_v49 = vunpack.i.h.bf16 %v6499_v44  ;;  %v6500_v16 = vunpack.i.l.bf16 %v6499_v44  ;;  %5880 = vmatpush3.bf16.msra.mxu0 %v5879_v40 }
 0xbb8   : > { %5881 = vmatprep.subr.bf16.mxu0 %v6999_v46 }
 0xbb9   : > { %v5882_v53 = vpack.c.bf16 %v6501_v49, %v6500_v16 }
 0xbbb   : > { %5883 = vmatpush3.bf16.msra.mxu0 %v5882_v53 }
 0xbbc   : > { %5884 = vmatprep.subr.bf16.mxu0 %v6999_v46 }
 0xbbd   : > { %v6592_v32 = vpop.eup %6591 }
 0xbbe   : > { %3442 = vadd.xlane.f32.xlu0 %v6592_v32 }
 0xbd4   : > { %6508 = vrot.lane.b32.xlu0 %v7729_v45, %s7004_s29 }
 0xbd8   : > { %6518 = vrot.lane.b32.xlu0 %v7732_v51, %s7004_s29 }
 0xbdc   : > { %6528 = vrot.lane.b32.xlu0 %v7735_v56, %s7004_s29 }
 0xbe0   : > { %6538 = vrot.lane.b32.xlu0 %v7738_v62, %s7004_s29 }
 0xbe4   : > { %6548 = vrot.lane.b32.xlu0 %v7741_v3, %s7004_s29 }
 0xbe8   : > { %6558 = vrot.lane.b32.xlu0 %v7744_v9, %s7004_s29 }
 0xbf1   : > { %v3426_v39 = vpop.f32.mrb[46].mxu1 }
 0xbf2   : > { %v3431_v57 = vsel %vm1641_vm4, %v3426_v39, -1e+30  ;;  %v5378_v45 = vpop.f32.mrb[47].mxu1 }
 0xbf3   : > { %3434 = vmax.xlane.f32.xlu1 %v3431_v57 }
 0xc04   : > { %6503 = vrot.lane.b32.xlu1 %v7750_v20, %s7004_s29 }
 0xc08   : > { %6513 = vrot.lane.b32.xlu1 %v7753_v27, %s7004_s29 }
 0xc0c   : > { %6523 = vrot.lane.b32.xlu1 %v7756_v37, %s7004_s29 }
 0xc10   : > { %6533 = vrot.lane.b32.xlu1 %v7759_v43, %s7004_s29 }
 0xc14   : > { %6543 = vrot.lane.b32.xlu1 %v7762_v52, %s7004_s29 }
 0xc18   : > { %6553 = vrot.lane.b32.xlu1 %v7765_v59, %s7004_s29 }
 0xc4b   : > { %v3443_v51 = vpop.xlane.xlu0 %3442 }
 0xc4c   : > { %6593 = vrcp.f32 %v3443_v51  ;;  %v3689_v51 = vld [vmem:[#allocation13 + $0x18] sm:$0xff] }
 0xc4f   : > { %v6509_v56 = vpop.permute.xlu0 %6508 }
 0xc50   : > { %v6511_v62 = vunpack.i.h.bf16 %v6509_v56  ;;  %v6510_v3 = vunpack.i.l.bf16 %v6509_v56 }
 0xc52   : > { %v5885_v9 = vpack.c.bf16 %v6511_v62, %v6510_v3 }
 0xc53   : > { %v6519_v20 = vpop.permute.xlu0 %6518 }
 0xc54   : > { %v6521_v27 = vunpack.i.h.bf16 %v6519_v20  ;;  %v6520_v8 = vunpack.i.l.bf16 %v6519_v20  ;;  %5886 = vmatpush3.bf16.msra.mxu0 %v5885_v9 }
 0xc55   : > { %5887 = vmatprep.subr.bf16.mxu0 %v6999_v46 }
 0xc56   : > { %v6594_v37 = vpop.eup %6593  ;;  %v5888_v43 = vpack.c.bf16 %v6521_v27, %v6520_v8  ;;  %v4373_v27 = vld [vmem:[#allocation14] ss:$0 sm:$0xff] }
 0xc57   : > { %v6529_v19 = vpop.permute.xlu0 %6528  ;;  %v3447_v52 = vmul.f32 %v6594_v37, %v6592_v32 }
 0xc58   : > { %v6531_v35 = vunpack.i.h.bf16 %v6529_v19  ;;  %v6530_v21 = vunpack.i.l.bf16 %v6529_v19  ;;  %5889 = vmatpush3.bf16.msra.mxu0 %v5888_v43 }
 0xc59   : > { %5890 = vmatprep.subr.bf16.mxu0 %v6999_v46  ;;  %4369 = vst [vmem:[%s7813_s24 + $0x30] sm:$0xff] %v3447_v52 }
 0xc5a   : > { %v5891_v59 = vpack.c.bf16 %v6531_v35, %v6530_v21  ;;  %v6607_v35 = vld [vmem:[%s7451_s10 + $0x8] sm:$0xff] }
 0xc5b   : > { %v6539_v23 = vpop.permute.xlu0 %6538 }
 0xc5c   : > { %v6541_v25 = vunpack.i.h.bf16 %v6539_v23  ;;  %v6540_v29 = vunpack.i.l.bf16 %v6539_v23  ;;  %5892 = vmatpush3.bf16.msra.mxu0 %v5891_v59  ;;  %v6608_v59 = vld [vmem:[%s7451_s10] sm:$0xff]  ;;  %s6899_s10 = sshll.u32 %s7005_s17, 4  ;;  %s6900_s10 = int_to_ptr.vmem [resolvable:$false] %s6899_s10 }
 0xc5d   : > { %5893 = vmatprep.subr.bf16.mxu0 %v6999_v46  ;;  %s6901_s19 = scalar_lea.vmem %s6900_s10, 512  ;;  %p6902_p1 = scmp.lt.s32.totalorder %s8266_s3, %s6900_s10 }
 0xc5e   : > { %v5894_v34 = vpack.c.bf16 %v6541_v25, %v6540_v29  ;;  %p6903_p10 = scmp.lt.s32.totalorder %s6901_s19, %s6895_s13 }
 0xc5f   : > { %v6549_v47 = vpop.permute.xlu0 %6548 }
 0xc60   : > { %v6551_v33 = vunpack.i.h.bf16 %v6549_v47  ;;  %v6550_v61 = vunpack.i.l.bf16 %v6549_v47  ;;  %5895 = vmatpush3.bf16.msra.mxu0 %v5894_v34  ;;  %p6904_p6 = por %p6903_p10, %p6902_p1 }
 0xc61   : > { %5896 = vmatprep.subr.bf16.mxu0 %v6999_v46 }
 0xc62   : > { %v5897_v1 = vpack.c.bf16 %v6551_v33, %v6550_v61  ;;  %p6905_p13 = pnand %p6904_p6, %p6898_p12 }
 0xc63   : > { %v6559_v5 = vpop.permute.xlu0 %6558 }
 0xc64   : > { %v6561_v10 = vunpack.i.h.bf16 %v6559_v5  ;;  %v6560_v14 = vunpack.i.l.bf16 %v6559_v5  ;;  %5898 = vmatpush3.bf16.msra.mxu0 %v5897_v1 }
 0xc65   : > { %5899 = vmatprep.subr.bf16.mxu0 %v6999_v46 }
 0xc66   : > { %v5900_v18 = vpack.c.bf16 %v6561_v10, %v6560_v14 }
 0xc68   : > { %5901 = vmatpush3.bf16.msra.mxu0 %v5900_v18 }
 0xc6b   : > { %5412 = vmatmul.mubr.f32.vlgmr.msra.gmra.mrb[50].mxu0 %v3447_v52 }
 0xc80   : > { %v3435_v22 = vpop.xlane.xlu1 %3434 }
 0xc81   : > { %v3437_v41 = vsub.f32 %v3431_v57, %v3435_v22 }
 0xc83   : > { %v3440_v28 = vmul.f32 1.442695, %v3437_v41 }
 0xc84   : > { %v6504_v15 = vpop.permute.xlu1 %6503 }
 0xc85   : > { %6595 = vpow2.f32 %v3440_v28  ;;  %v6506_v50 = vunpack.i.h.bf16 %v6504_v15  ;;  %v6505_v54 = vunpack.i.l.bf16 %v6504_v15 }
 0xc87   : > { %v5906_v55 = vpack.c.bf16 %v6506_v50, %v6505_v54 }
 0xc88   : > { %v6514_v0 = vpop.permute.xlu1 %6513 }
 0xc89   : > { %v6516_v58 = vunpack.i.h.bf16 %v6514_v0  ;;  %v6515_v60 = vunpack.i.l.bf16 %v6514_v0  ;;  %5907 = vmatpush3.bf16.msra.mxu1 %v5906_v55 }
 0xc8a   : > { %5908 = vmatprep.subr.bf16.mxu1 %v6999_v46 }
 0xc8b   : > { %v5909_v63 = vpack.c.bf16 %v6516_v58, %v6515_v60 }
 0xc8c   : > { %v6524_v42 = vpop.permute.xlu1 %6523 }
 0xc8d   : > { %v6526_v4 = vunpack.i.h.bf16 %v6524_v42  ;;  %v6525_v31 = vunpack.i.l.bf16 %v6524_v42  ;;  %5910 = vmatpush3.bf16.msra.mxu1 %v5909_v63 }
 0xc8e   : > { %5911 = vmatprep.subr.bf16.mxu1 %v6999_v46 }
 0xc8f   : > { %v6596_v7 = vpop.eup %6595  ;;  %v5912_v11 = vpack.c.bf16 %v6526_v4, %v6525_v31 }
 0xc90   : > { %3444 = vadd.xlane.f32.xlu1 %v6596_v7  ;;  %v6534_v12 = vpop.permute.xlu1 %6533 }
 0xc91   : > { %v6536_v13 = vunpack.i.h.bf16 %v6534_v12  ;;  %v6535_v24 = vunpack.i.l.bf16 %v6534_v12  ;;  %5913 = vmatpush3.bf16.msra.mxu1 %v5912_v11  ;;  %v4374_v12 = vld [vmem:[#allocation16] ss:$0 sm:$0xff] }
 0xc92   : > { %5914 = vmatprep.subr.bf16.mxu1 %v6999_v46 }
 0xc93   : > { %v5915_v38 = vpack.c.bf16 %v6536_v13, %v6535_v24  ;;  %v4375_v24 = vld [vmem:[#allocation17] ss:$0 sm:$0xff] }
 0xc94   : > { %v6544_v26 = vpop.permute.xlu1 %6543 }
 0xc95   : > { %v6546_v30 = vunpack.i.h.bf16 %v6544_v26  ;;  %v6545_v36 = vunpack.i.l.bf16 %v6544_v26  ;;  %5916 = vmatpush3.bf16.msra.mxu1 %v5915_v38 }
 0xc96   : > { %5917 = vmatprep.subr.bf16.mxu1 %v6999_v46 }
 0xc97   : > { %v5918_v6 = vpack.c.bf16 %v6546_v30, %v6545_v36 }
 0xc98   : > { %v6554_v40 = vpop.permute.xlu1 %6553 }
 0xc99   : > { %v6556_v44 = vunpack.i.h.bf16 %v6554_v40  ;;  %v6555_v49 = vunpack.i.l.bf16 %v6554_v40  ;;  %5919 = vmatpush3.bf16.msra.mxu1 %v5918_v6 }
 0xc9a   : > { %5920 = vmatprep.subr.bf16.mxu1 %v6999_v46 }
 0xc9b   : > { %v5921_v16 = vpack.c.bf16 %v6556_v44, %v6555_v49 }
 0xc9d   : > { %5922 = vmatpush3.bf16.msra.mxu1 %v5921_v16 }
 0xc9e   : > { %5923 = vmatprep.subr.bf16.mxu1 %v6999_v46 }
 0xca1   : > { %6563 = vrot.lane.b32.xlu1 %v7768_v2, %s7004_s29 }
 0xd1d   : > { %v3445_v53 = vpop.xlane.xlu1 %3444 }
 0xd1e   : > { %6597 = vrcp.f32 %v3445_v53 }
 0xd21   : > { %v6564_v32 = vpop.permute.xlu1 %6563 }
 0xd22   : > { %v6566_v39 = vunpack.i.h.bf16 %v6564_v32  ;;  %v6565_v57 = vunpack.i.l.bf16 %v6564_v32 }
 0xd24   : > { %v5924_v45 = vpack.c.bf16 %v6566_v39, %v6565_v57 }
 0xd26   : > { %5925 = vmatpush3.bf16.msra.mxu1 %v5924_v45 }
 0xd27   : > { %5449 = vmatprep.subr.mxu1 %v3689_v51 }
 0xd28   : > { %v6598_v56 = vpop.eup %6597 }
 0xd29   : > { %v3449_v62 = vmul.f32 %v6598_v56, %v6596_v7 }
 0xd2b   : > { %4370 = vst [vmem:[%s7813_s24 + $0x38] sm:$0xff] %v3449_v62  ;;  %5447 = vmatmul.mubr.f32.vlgmr.msra.gmra.mrb[48].mxu1 %v3449_v62 }
 0xd2c   : > { %5450 = vmatpush3.msra.mxu1 %v3689_v51 }
 0xd3e   : > { %v3567_v46 = vpop.f32.mrb[50].mxu0 }
 0xd3f   : > { %v5413_v3 = vpop.f32.mrb[51].mxu0  ;;  %5451 = vmatprep.mubr.msk.f32.mxu1 %vm1396_vm2, %v3567_v46 }
 0xdfe   : > { %v3685_v2 = vpop.f32.mrb[48].mxu1 }
 0xdff   : > { %v5448_v9 = vpop.f32.mrb[49].mxu1  ;;  %5452 = vmatmul.mubr.msk.f32.vlgmr.msra.gmra.mrb[40].mxu1 %vm1396_vm2, %v3685_v2 }
 0xed2   : > { %v5453_v20 = vpop.f32.mrb[40].mxu1 }
 0xed3   : > { %v5926_v8 = vadd.f32 %v5453_v20, %v8045_v17  ;;  %v3762_v37 = vpop.f32.mrb[41].mxu1 }
 0xed4   : > { %v5927_v43 = vadd.f32 %v3762_v37, %v8047_v48 }
 0xed5   : > { %v3781_v19 = vadd.f32 %v5926_v8, %v4373_v27 }
 0xed6   : > { %v3780_v52 = vadd.f32 %v5927_v43, %v4373_v27 }
 0xed7   : > { %v3783_v21 = vadd.f32 %v6607_v35, %v3781_v19 }
 0xed8   : > { %v3782_v23 = vadd.f32 %v6608_v59, %v3780_v52 }
 0xed9   : > { %v3787_v25 = vsel %vm664_vm0, %v3783_v21, 0.0 }
 0xeda   : > { %3788 = vadd.xlane.f32.xlu1 %v3787_v25  ;;  %v3784_v29 = vsel %vm664_vm0, %v3782_v23, 0.0 }
 0xedb   : > { %3785 = vadd.xlane.f32.xlu0 %v3784_v29 }
 0xf67   : > { %v3789_v34 = vpop.xlane.xlu1 %3788 }
 0xf68   : > { %v3792_v47 = vmul.f32 0.03125, %v3789_v34  ;;  %v3786_v33 = vpop.xlane.xlu0 %3785 }
 0xf69   : > { %v3791_v61 = vmul.f32 0.03125, %v3786_v33 }
 0xf6a   : > { %v3794_v17 = vsub.f32 %v3783_v21, %v3792_v47 }
 0xf6b   : > { %v3793_v1 = vsub.f32 %v3782_v23, %v3791_v61 }
 0xf6c   : > { %v3796_v10 = vmul.f32 %v3794_v17, %v3794_v17 }
 0xf6d   : > { %v3795_v5 = vmul.f32 %v3793_v1, %v3793_v1 }
 0xf6e   : > { %v3800_v14 = vsel %vm664_vm0, %v3796_v10, 0.0 }
 0xf6f   : > { %v3797_v48 = vsel %vm664_vm0, %v3795_v5, 0.0 }
 0xf70   : > { %3798 = vadd.xlane.f32.xlu0 %v3797_v48 }
 0xf74   : > { %3801 = vadd.xlane.f32.xlu0 %v3800_v14 }
 0xffd   : > { %v3799_v18 = vpop.xlane.xlu0 %3798 }
 0xffe   : > { %v3804_v22 = vmul.f32 0.032258064, %v3799_v18 }
0x1000   : > { %6599 = vrsqrt.f32 %v3804_v22  ;;  %vm3808_vm5 = vcmp.eq.f32.partialorder %v3804_v22, inf  ;;  %v3811_v54 = vand.u32 2147483648, %v3804_v22  ;;  %vm3810_vm6 = vcmp.eq.f32.partialorder %v3804_v22, 0.0 }
0x1001   : > { %v3802_v41 = vpop.xlane.xlu0 %3801 }
0x1002   : > { %v3805_v28 = vmul.f32 0.032258064, %v3802_v41 }
0x1004   : > { %6601 = vrsqrt.f32 %v3805_v28  ;;  %vm3815_vm7 = vcmp.eq.f32.partialorder %v3805_v28, inf  ;;  %v3818_v42 = vand.u32 2147483648, %v3805_v28  ;;  %vm3817_vm8 = vcmp.eq.f32.partialorder %v3805_v28, 0.0 }
0x100a   : > { %v6600_v15 = vpop.eup %6599 }
0x100b   : > { %v3807_v50 = vmul.f32 %v6600_v15, %v3804_v22 }
0x100d   : > { %v3809_v55 = vsel %vm3808_vm5, %v3804_v22, %v3807_v50 }
0x100e   : > { %v6602_v0 = vpop.eup %6601  ;;  %v3812_v58 = vsel %vm3810_vm6, %v3811_v54, %v3809_v55 }
0x100f   : > { %v3820_v60 = vadd.f32 0.001, %v3812_v58  ;;  %v3814_v63 = vmul.f32 %v6602_v0, %v3805_v28 }
0x1011   : > { %6603 = vrcp.f32 %v3820_v60  ;;  %v3816_v4 = vsel %vm3815_vm7, %v3805_v28, %v3814_v63 }
0x1012   : > { %v3819_v31 = vsel %vm3817_vm8, %v3818_v42, %v3816_v4 }
0x1013   : > { %v3821_v7 = vadd.f32 0.001, %v3819_v31 }
0x1015   : > { %6605 = vrcp.f32 %v3821_v7 }
0x101b   : > { %v6604_v11 = vpop.eup %6603 }
0x101c   : > { %v3824_v13 = vmul.f32 %v6604_v11, %v3793_v1 }
0x101e   : > { %v3833_v38 = vmul.f32 %v4374_v12, %v3824_v13 }
0x101f   : > { %v6606_v26 = vpop.eup %6605 }
0x1020   : > { %v3825_v30 = vmul.f32 %v6606_v26, %v3794_v17  ;;  %v3842_v36 = vadd.f32 %v4375_v24, %v3833_v38 }
0x1022   : > { %v3834_v6 = vmul.f32 %v4374_v12, %v3825_v30  ;;  %3844 = vst.msk [vmem:[%s581_s28] sm:$0xff] %vm664_vm0, %v3842_v36 }
0x1024   : > { %v3843_v40 = vadd.f32 %v4375_v24, %v3834_v6 }
0x1026   : > { %3845 = vst.msk [vmem:[%s581_s28 + $0x8] sm:$0xff] %vm664_vm0, %v3843_v40 }
0x1027   : > { %6908 = shalt.err (!%p6905_p13)
}
0x1028   : > { %s6909_s7 = scalar_lea.hbm %s8264_s14, 256  ;;  %s6913_s16 = scalar_lea.hbm %s8429_s21, 512 }
0x1029   : > { %p6910_p5 = scmp.ne.s32.totalorder %s8264_s14, %s6909_s7  ;;  %p6914_p3 = scmp.lt.u32.totalorder %s8264_s14, %s8429_s21 }
0x102a   : > { %p6915_p2 = scmp.lt.u32.totalorder %s6913_s16, %s6909_s7  ;;  %p6917_p8 = scmp.lt.u32.totalorder %s6909_s7, %s8264_s14 }
0x102b   : > { %p6911_p9 = pnand %p6910_p5, %p8430_p4 }
0x102c   : > { %p6916_p0 = por %p6915_p2, %p6914_p3 }
0x102d   : > { %p6912_p11 = pneg %p6911_p9 }
0x102e   : > { %p6918_p7 = por %p6917_p8, %p6916_p0 }
0x1030   : > { %p6919_p12 = pnand %p6918_p7, %p6912_p11 }
0x1032   : > { %6922 = shalt.err (!%p6919_p12)
}
0x1033   : > { %s7006_s27 = smov 128   ;;  %s7007_s29 = smov 8  }
0x1034   : > { %5966 = dma.vmem_to_hbm [thread:$0]  (%p8430_p4), %s8266_s3, 256, %s8264_s14, %s3847_s25, %s7006_s27, %s7006_s27, %s7007_s29  }
0x1035   : > { %s3852_s28 = scalar_lea.sflag [#allocation21], %s7445_s18 }
0x1036   : > { %s8431_s13 = sld [smem:[#allocation47_spill]]  ;;  %s3897_s10 = sshll.u32 %s7813_s24, 4  ;;  %s3898_s10 = int_to_ptr.vmem [resolvable:$true] %s3897_s10 }
0x1037   : > { %s7008_s19 = smov 256   ;;  %s7009_s18 = smov 512  }
0x1038   : > { %5967 = sst [smem:[#allocation23]] (%p8430_p4), %s7008_s19  ;;  %s7010_s5 = smov 2  }
0x1039   : > { %5968 = sst [smem:[#allocation23 + $0x1]] (%p8430_p4), %s7009_s18  ;;  %s7011_s3 = smov 128  }
0x103a   : > { %5969 = sst [smem:[#allocation23 + $0x2]] (%p8430_p4), %s7010_s5  ;;  %s7012_s14 = smov 8  }
0x103b   : > { %5970 = sst [smem:[#allocation23 + $0x3]] (%p8430_p4), %s7011_s3  ;;  %s7014_s24 = smov 0  }
0x103c   : > { %s3880_s17 = scalar_lea.hbm %s8431_s13, %s4387_s26  ;;  %5971 = sst [smem:[#allocation23 + $0x4]] (%p8430_p4), %s7011_s3 }
0x103d   : > { %5972 = sst [smem:[#allocation23 + $0x5]] (%p8430_p4), %s7012_s14  ;;  %s7013_s26 = smov [#allocation22]  }
0x103e   : > { %5973 = dma.general (%p8430_p4), %s3898_s10, 1024, %s3880_s17, %s3852_s28, %s7013_s26, [#allocation23], %s7014_s24, 0  }
0x103f PF: > { %s8432_s25 = sld [smem:[#allocation32_spill]]  ;;  %s8433_s7 = sld [smem:[#allocation41_spill]] }
0x1040   : > { %p8435_p10 = scmp.ge.s32.totalorder %s6985_s20, 2 }
0x1045   : > { %s3925_s11 = sand.u32 1, %s8432_s25   ;;  %p8434_p1 = scmp.ne.s32.totalorder %s8433_s7, 0 }
0x1046   : > { %s3926_s22 = scalar_lea.sflag [#allocation4], %s3925_s11 }
0x1047   : > { %p6009_p6 = pnand %p8435_p10, %p8434_p1 }
0x1049   : > { %6964 = dma.done.wait (!%p6009_p6), %s3926_s22, 256  }
0x104a   : > { %6966 = vsyncadd (!%p6009_p6), %s3926_s22, 4294967040  ;;  %s3935_s16 = scalar_lea.sflag [#allocation21], %s3925_s11 }
0x104b   : > { %6968 = dma.done.wait (!%p6009_p6), %s3935_s16, 1024  }
0x104c   : > { %6970 = vsyncadd (!%p6009_p6), %s3935_s16, 4294966272  ;;  %s8436_s20 = sld [smem:[#allocation37_spill]]  ;;  %s8437_s17 = sld [smem:[#allocation33_spill]] }
0x104d   : > { %s8438_s18 = sld [smem:[#allocation34_spill]]  ;;  %s8439_s19 = sld [smem:[#allocation38_spill]] }
0x1052   : > { %p35_p4 = scmp.ge.s32.totalorder %s8436_s20, 4  }
0x1054   :  { %37 = sbr.rel (!%p35_p4) target bundleno = 20 (0x14), region = 182 }
0x105b   :  { %3940 = vsyncpa [#allocation3], 1 }
0x105c   :  { %3942 = vsyncpa [#allocation3 + $0x1], 1 }
0x105d   :  { %3943 = vsyncpa [#allocation6], 1 }
0x105e   :  { %3945 = vsyncpa [#allocation6 + $0x1], 1 }
0x105f   :  { %3946 = vsyncpa [#allocation9], 1 }
0x1060   :  { %3947 = vsyncpa [#allocation12], 1 }
0x1061   :  { %3948 = vsyncpa [#allocation15], 1 }
0x1062   :  { %3949 = vsyncpa [#allocation18], 1 }
0x1063   :  { %3950 = vsyncpa [#allocation4], 1 }
0x1064   :  { %3952 = vsyncpa [#allocation4 + $0x1], 1 }
0x1065   :  { %3953 = vsyncpa [#allocation21], 1 }
0x1066   :  { %3955 = vsyncpa [#allocation21 + $0x1], 1 }

</bundles_post_ra>
